<compile_context>
chip_gen: v7x
topology: tpu7x:2x2x1
jax: 0.10.0
libtpu: 0.0.40
codegen_flags: <defaults>
</compile_context>

<pallas_src>
import functools
import math

import jax
import jax.numpy as jnp
from jax import lax
from jax.experimental import pallas as pl
from jax.experimental.pallas import tpu as pltpu

MAX_REL = 64          # max_relative_position in the PyTorch module
LN_EPS = 1e-5
BN_EPS = 1e-5


# ------------------------------ fused kernel --------------------------------

def _fused_discriminator_kernel(
    # inputs (per grid step `li` = encoder-layer index)
    x_ref,                                   # (M, hid) f32  (same block each step)
    wqkv_ref, bqkv_ref, wo_ref, bo_ref,      # layer li attention weights
    ln1g_ref, ln1b_ref,
    ffw1_ref, ffb1_ref, ffw2_ref, ffb2_ref,
    ln2g_ref, ln2b_ref,
    relkt_ref, relv_ref,                     # compact rel tables of layer li
    fc1w_ref, fc1b_ref, bng_ref, bnb_ref, fc2w_ref, fc2b_ref,   # head (constant)
    # outputs
    out_ref, enc_ref,
    # scratch
    h_scratch,                               # (M, hid) f32 carried activations
    *, B, L, hid, n_heads, Dh):
  M = B * L
  W = 2 * L - 1
  li = pl.program_id(0)

  def layer_norm(y, g, b):
    mu = jnp.mean(y, axis=-1, keepdims=True)
    d = y - mu
    var = jnp.mean(d * d, axis=-1, keepdims=True)
    return d * lax.rsqrt(var + LN_EPS) * g + b

  # Step 0: load the token-major input slab into the carried VMEM activation.
  @pl.when(li == 0)
  def _():
    h_scratch[...] = x_ref[...]

  h = h_scratch[...]                                      # (M, hid) f32
  hb = h.astype(jnp.bfloat16)

  # Packed Q|K|V projection: one lane-dense MXU matmul (bf16 in, f32 accum).
  # 1/sqrt(Dh) is already folded into the Q columns of wqkv / bqkv.
  qkv = jnp.dot(hb, wqkv_ref[...],
                preferred_element_type=jnp.float32) + bqkv_ref[...]

  relk_t = relkt_ref[...]                                 # (Dh, W) f32
  relv = relv_ref[...]                                    # (W, Dh) f32
  wo = wo_ref[...]                                        # (hid, hid) bf16

  # One-hot window-select masks (shared across heads), built from 2-D iotas:
  #   sel[j][q, k]  = 1  iff  k - q + (L-1) == j   (scores: (B,L,W) -> (B,L,L))
  #   usel[k][q, j] = 1  iff  j == k - q + (L-1)   (values: (B,L,L) -> (B,L,W))
  kq = (lax.broadcasted_iota(jnp.int32, (L, L), 1)
        - lax.broadcasted_iota(jnp.int32, (L, L), 0) + (L - 1))
  sel = [(kq == j).astype(jnp.float32) for j in range(W)]
  jw = lax.broadcasted_iota(jnp.int32, (L, W), 1)
  qw = lax.broadcasted_iota(jnp.int32, (L, W), 0)
  usel = [(jw == (k - qw + (L - 1))).astype(jnp.float32) for k in range(L)]
  # TODO(synk): at large L replace the statically-unrolled masked adds below
  # with pltpu.roll(stride=1, stride_axis=...) or the Transformer-XL
  # pad+reshape skew so the window select is O(L^2) data movement.

  attn_acc = jnp.zeros((M, hid), jnp.float32)
  for hd in range(n_heads):                               # static head loop
    c0 = hd * Dh
    q2 = qkv[:, c0:c0 + Dh]                               # (M, Dh), pre-scaled
    k2 = qkv[:, hid + c0:hid + c0 + Dh]
    v2 = qkv[:, 2 * hid + c0:2 * hid + c0 + Dh]
    q3 = q2.reshape(B, L, Dh)
    k3 = k2.reshape(B, L, Dh)
    v3 = v2.reshape(B, L, Dh)

    # content-content scores (MXU, leading batch dim).
    a = jnp.einsum("bqd,bkd->bqk", q3, k3,
                   preferred_element_type=jnp.float32)

    # content-position scores: compact-table matmul on the MXU, then the
    # per-query window select (no (B,L,L,Dh) temporary is ever built).
    rs3 = jnp.dot(q2, relk_t,
                  preferred_element_type=jnp.float32).reshape(B, L, W)
    for j in range(W):
      a = a + rs3[:, :, j:j + 1] * sel[j][None]

    # softmax over keys (EUP exp + approx reciprocal, no VALU divide).
    m = jnp.max(a, axis=-1, keepdims=True)
    e = jnp.exp(a - m)
    p = e * pl.reciprocal(jnp.sum(e, axis=-1, keepdims=True), approx=True)

    # content values (MXU).
    ctx = jnp.einsum("bqk,bkd->bqd", p, v3,
                     preferred_element_type=jnp.float32).reshape(M, Dh)

    # relative-position values: spread p into the compact window layout, then
    # a single (M, W) @ (W, Dh) MXU matmul against the compact table.
    p_w = jnp.zeros((B, L, W), jnp.float32)
    for k in range(L):
      p_w = p_w + p[:, :, k:k + 1] * usel[k][None]
    ctx = ctx + jnp.dot(p_w.reshape(M, W), relv,
                        preferred_element_type=jnp.float32)

    # output projection accumulated per head: ctx_h @ Wo[rows of head hd].
    attn_acc = attn_acc + jnp.dot(ctx.astype(jnp.bfloat16), wo[c0:c0 + Dh, :],
                                  preferred_element_type=jnp.float32)
  attn_out = attn_acc + bo_ref[...]

  # residual + LayerNorm, feed-forward (bf16 matmuls), residual + LayerNorm.
  s1 = layer_norm(h + attn_out, ln1g_ref[...], ln1b_ref[...])
  ff = jnp.dot(s1.astype(jnp.bfloat16), ffw1_ref[...],
               preferred_element_type=jnp.float32) + ffb1_ref[...]
  ff = jnp.maximum(ff, 0.0)
  ff = jnp.dot(ff.astype(jnp.bfloat16), ffw2_ref[...],
               preferred_element_type=jnp.float32) + ffb2_ref[...]
  h_new = layer_norm(s1 + ff, ln2g_ref[...], ln2b_ref[...])
  h_scratch[...] = h_new

  # Final layer: emit encoder output + fc1 -> BatchNorm(batch stats) -> fc2.
  @pl.when(li == pl.num_programs(0) - 1)
  def _():
    enc_ref[...] = h_new.astype(enc_ref.dtype)
    f1 = jnp.dot(h_new.astype(jnp.bfloat16), fc1w_ref[...],
                 preferred_element_type=jnp.float32) + fc1b_ref[...]    # (M, 64)
    mu = jnp.mean(f1, axis=0, keepdims=True)
    d = f1 - mu
    var = jnp.mean(d * d, axis=0, keepdims=True)    # biased var (torch BN train)
    bn = d * lax.rsqrt(var + BN_EPS) * bng_ref[...] + bnb_ref[...]      # (M, 64)
    # fc2 over flattened (L*64) features: out[b] = sum_{l,c} bn[b,l,c]*W2[l,c].
    bn3 = bn.reshape(B, L, bn.shape[-1])
    prod = bn3 * fc2w_ref[...][None, :, :]
    logit = jnp.sum(jnp.sum(prod, axis=1), axis=-1, keepdims=True) + fc2b_ref[...]
    out_ref[...] = jax.nn.sigmoid(logit).astype(out_ref.dtype)


def discriminator_pallas(x, pp, *, num_layers, n_heads):
  B, L, hid = x.shape
  Dh = hid // n_heads
  M = B * L
  pos_ff = pp["ffw1"].shape[-1]
  W = pp["rel_v"].shape[1]

  def per_layer(shape):    # stacked (num_layers, *shape): stream layer li's slab
    n = len(shape)
    return pl.BlockSpec((None,) + tuple(shape), lambda li: (li,) + (0,) * n)

  def resident(shape):     # same block every step (loaded once, stays in VMEM)
    n = len(shape)
    return pl.BlockSpec(tuple(shape), lambda li: (0,) * n)

  in_specs = [
      resident((M, hid)),                 # x
      per_layer((hid, 3 * hid)),          # wqkv  (bf16, scale folded into Q)
      per_layer((1, 3 * hid)),            # bqkv
      per_layer((hid, hid)),              # wo    (bf16)
      per_layer((1, hid)),                # bo
      per_layer((1, hid)),                # ln1_g
      per_layer((1, hid)),                # ln1_b
      per_layer((hid, pos_ff)),           # ffw1  (bf16)
      per_layer((1, pos_ff)),             # ffb1
      per_layer((pos_ff, hid)),           # ffw2  (bf16)
      per_layer((1, hid)),                # ffb2
      per_layer((1, hid)),                # ln2_g
      per_layer((1, hid)),                # ln2_b
      per_layer((Dh, W)),                 # rel_k_t (compact, transposed)
      per_layer((W, Dh)),                 # rel_v   (compact)
      resident((hid, 64)),                # fc1w  (bf16)
      resident((1, 64)),                  # fc1b
      resident((1, 64)),                  # bn_g
      resident((1, 64)),                  # bn_b
      resident((L, 64)),                  # fc2w
      resident((1, 1)),                   # fc2b
  ]
  out_specs = (
      pl.BlockSpec((B, 1), lambda li: (0, 0)),      # sigmoid(logit)
      # NOTE: at hid >= 128 this slab is lane-dense; the (B, L*hid) x_flatten
      # view is a free row-major metadata reshape done in the wrapper below.
      pl.BlockSpec((M, hid), lambda li: (0, 0)),    # encoder output
  )

  # Scoped VMEM: 2x (double-buffered) per-layer weight slabs + resident
  # activations / head params + headroom, floored at 32 MiB.
  nbytes = lambda a: int(a.size) * a.dtype.itemsize
  per_layer_bytes = sum(nbytes(pp[k]) // num_layers for k in
                        ("wqkv", "bqkv", "wo", "bo", "ln1_g", "ln1_b", "ffw1",
                         "ffb1", "ffw2", "ffb2", "ln2_g", "ln2_b",
                         "rel_k_t", "rel_v"))
  resident_bytes = 3 * M * hid * 4 + sum(nbytes(pp[k]) for k in
                                         ("fc1w", "fc1b", "bn_g", "bn_b",
                                          "fc2w", "fc2b"))
  vmem_limit = max(2 * per_layer_bytes + resident_bytes + (4 << 20), 32 << 20)
  vmem_limit = min(vmem_limit, 96 << 20)

  # TODO(synk): on v7x, add a "parallel" grid axis over token tiles so both
  # TensorCores are used for the encoder; the BatchNorm head then needs a
  # cross-tile reduction for its batch statistics (or a separate tiny call).
  kern = functools.partial(_fused_discriminator_kernel,
                           B=B, L=L, hid=hid, n_heads=n_heads, Dh=Dh)
  out, enc2d = pl.pallas_call(
      kern,
      out_shape=(jax.ShapeDtypeStruct((B, 1), jnp.float32),
                 jax.ShapeDtypeStruct((M, hid), jnp.float32)),
      grid_spec=pltpu.PrefetchScalarGridSpec(
          num_scalar_prefetch=0,
          grid=(num_layers,),
          in_specs=in_specs,
          out_specs=out_specs,
          scratch_shapes=[pltpu.VMEM((M, hid), jnp.float32)]),
      compiler_params=pltpu.CompilerParams(
          dimension_semantics=("arbitrary",),   # carried state -> sequential
          vmem_limit_bytes=vmem_limit),
  )(x.reshape(M, hid),
    pp["wqkv"], pp["bqkv"], pp["wo"], pp["bo"],
    pp["ln1_g"], pp["ln1_b"],
    pp["ffw1"], pp["ffb1"], pp["ffw2"], pp["ffb2"],
    pp["ln2_g"], pp["ln2_b"],
    pp["rel_k_t"], pp["rel_v"],
    pp["fc1w"], pp["fc1b"], pp["bn_g"], pp["bn_b"], pp["fc2w"], pp["fc2b"])
  return out, enc2d.reshape(B, L * hid)


# ---------------------- parameter init / preparation ------------------------

def init_linear(key, out_f, in_f):
  kw, kb = jax.random.split(key)
  bound = 1.0 / math.sqrt(in_f)
  w = jax.random.uniform(kw, (out_f, in_f), jnp.float32, -bound, bound)
  b = jax.random.uniform(kb, (out_f,), jnp.float32, -bound, bound)
  return w, b


def init_params(key, num_layers, hid, n_heads, pos_ff, output_len):
  Dh = hid // n_heads
  layers = []
  for _ in range(num_layers):
    key, *ks = jax.random.split(key, 9)
    wq, bq = init_linear(ks[0], hid, hid)
    wk, bk = init_linear(ks[1], hid, hid)
    wv, bv = init_linear(ks[2], hid, hid)
    wo, bo = init_linear(ks[3], hid, hid)
    ff_w1, ff_b1 = init_linear(ks[4], pos_ff, hid)
    ff_w2, ff_b2 = init_linear(ks[5], hid, pos_ff)
    xav = math.sqrt(6.0 / (Dh + (2 * MAX_REL + 1)))
    rel_k = jax.random.uniform(ks[6], (2 * MAX_REL + 1, Dh), jnp.float32, -xav, xav)
    rel_v = jax.random.uniform(ks[7], (2 * MAX_REL + 1, Dh), jnp.float32, -xav, xav)
    layers.append(dict(
        wq=wq, bq=bq, wk=wk, bk=bk, wv=wv, bv=bv, wo=wo, bo=bo,
        ff_w1=ff_w1, ff_b1=ff_b1, ff_w2=ff_w2, ff_b2=ff_b2,
        rel_k=rel_k, rel_v=rel_v,
        ln1_g=jnp.ones((hid,), jnp.float32), ln1_b=jnp.zeros((hid,), jnp.float32),
        ln2_g=jnp.ones((hid,), jnp.float32), ln2_b=jnp.zeros((hid,), jnp.float32)))
  key, k1, k2 = jax.random.split(key, 3)
  fc1_w, fc1_b = init_linear(k1, 64, hid)
  fc2_w, fc2_b = init_linear(k2, 1, 64 * output_len)
  return dict(layers=layers, fc1_w=fc1_w, fc1_b=fc1_b,
              bn_g=jnp.ones((64,), jnp.float32), bn_b=jnp.zeros((64,), jnp.float32),
              fc2_w=fc2_w, fc2_b=fc2_b)


def prepare_params(params, L, hid, n_heads, wdtype=jnp.bfloat16):
  """Pack / pre-transpose / stack torch-layout params for the fused kernel.

  * weight matrices are cast to bf16 (f32 accumulation in-kernel),
  * 1/sqrt(head_dim) is folded into the packed Q weights and bias,
  * relative-position tables are reduced to the COMPACT (2L-1, Dh) window with
    the +/-MAX_REL clipping applied once here (plain-JAX glue).
  """
  Dh = hid // n_heads
  inv_scale = 1.0 / math.sqrt(Dh)
  W = 2 * L - 1
  rel_idx = jnp.clip(jnp.arange(W) - (L - 1), -MAX_REL, MAX_REL) + MAX_REL
  layers = params["layers"]
  stack = lambda f: jnp.stack([f(lp) for lp in layers])
  return dict(
      wqkv=stack(lambda lp: jnp.concatenate(
          [lp["wq"].T * inv_scale, lp["wk"].T, lp["wv"].T], axis=1)).astype(wdtype),
      bqkv=stack(lambda lp: jnp.concatenate(
          [lp["bq"] * inv_scale, lp["bk"], lp["bv"]]).reshape(1, 3 * hid)),
      wo=stack(lambda lp: lp["wo"].T).astype(wdtype),
      bo=stack(lambda lp: lp["bo"].reshape(1, hid)),
      ln1_g=stack(lambda lp: lp["ln1_g"].reshape(1, hid)),
      ln1_b=stack(lambda lp: lp["ln1_b"].reshape(1, hid)),
      ffw1=stack(lambda lp: lp["ff_w1"].T).astype(wdtype),
      ffb1=stack(lambda lp: lp["ff_b1"].reshape(1, -1)),
      ffw2=stack(lambda lp: lp["ff_w2"].T).astype(wdtype),
      ffb2=stack(lambda lp: lp["ff_b2"].reshape(1, hid)),
      ln2_g=stack(lambda lp: lp["ln2_g"].reshape(1, hid)),
      ln2_b=stack(lambda lp: lp["ln2_b"].reshape(1, hid)),
      rel_k_t=stack(lambda lp: lp["rel_k"][rel_idx].T),   # (Dh, 2L-1)
      rel_v=stack(lambda lp: lp["rel_v"][rel_idx]),       # (2L-1, Dh)
      fc1w=params["fc1_w"].T.astype(wdtype),
      fc1b=params["fc1_b"].reshape(1, -1),
      bn_g=params["bn_g"].reshape(1, -1),
      bn_b=params["bn_b"].reshape(1, -1),
      fc2w=params["fc2_w"].reshape(L, 64),   # W2[l, c] = fc2_w[0, l*64 + c]
      fc2b=params["fc2_b"].reshape(1, 1),
  )


# --------------------- pure-JAX reference (f32, torch layout) ----------------

def discriminator_ref(x, params, *, n_heads):
  B, L, hid = x.shape
  Dh = hid // n_heads
  scale = math.sqrt(Dh)

  def ln(y, g, b):
    mu = jnp.mean(y, -1, keepdims=True)
    var = jnp.mean((y - mu) ** 2, -1, keepdims=True)
    return (y - mu) / jnp.sqrt(var + LN_EPS) * g + b

  def rel_emb(table, lq, lk):
    dist = jnp.arange(lk)[None, :] - jnp.arange(lq)[:, None]
    idx = jnp.clip(dist, -MAX_REL, MAX_REL) + MAX_REL
    return table[idx]                                     # (lq, lk, Dh)

  h = x
  for lp in params["layers"]:
    q = h @ lp["wq"].T + lp["bq"]
    k = h @ lp["wk"].T + lp["bk"]
    v = h @ lp["wv"].T + lp["bv"]
    split = lambda t: t.reshape(B, L, n_heads, Dh).transpose(0, 2, 1, 3)
    q4, k4, v4 = split(q), split(k), split(v)
    rk = rel_emb(lp["rel_k"], L, L)
    rv = rel_emb(lp["rel_v"], L, L)
    attn = (jnp.einsum("bhqd,bhkd->bhqk", q4, k4)
            + jnp.einsum("bhqd,qkd->bhqk", q4, rk)) / scale
    p = jax.nn.softmax(attn, axis=-1)
    ctx = (jnp.einsum("bhqk,bhkd->bhqd", p, v4)
           + jnp.einsum("bhqk,qkd->bhqd", p, rv))
    ctx = ctx.transpose(0, 2, 1, 3).reshape(B, L, hid)
    attn_out = ctx @ lp["wo"].T + lp["bo"]
    s1 = ln(h + attn_out, lp["ln1_g"], lp["ln1_b"])
    ff = jnp.maximum(s1 @ lp["ff_w1"].T + lp["ff_b1"], 0.0)
    ff = ff @ lp["ff_w2"].T + lp["ff_b2"]
    h = ln(s1 + ff, lp["ln2_g"], lp["ln2_b"])

  x_flat = h.reshape(B, L * hid)
  f1 = (h @ params["fc1_w"].T + params["fc1_b"]).reshape(B * L, 64)
  mu = jnp.mean(f1, 0, keepdims=True)
  var = jnp.mean((f1 - mu) ** 2, 0, keepdims=True)
  bn = (f1 - mu) / jnp.sqrt(var + BN_EPS) * params["bn_g"] + params["bn_b"]
  flat = bn.reshape(B, L * 64)
  out = jax.nn.sigmoid(flat @ params["fc2_w"].T + params["fc2_b"])
  return out, x_flat


# ----------------------------------- main ------------------------------------

if __name__ == "__main__":
  num_layers, hid, n_heads, pos_ff, output_len = 2, 32, 4, 64, 8
  B = 2
  key = jax.random.PRNGKey(0)
  kx, kp = jax.random.split(key)
  x = jax.random.normal(kx, (B, output_len, hid), jnp.float32)   # (B, L, hid)
  params = init_params(kp, num_layers, hid, n_heads, pos_ff, output_len)
  pp = prepare_params(params, output_len, hid, n_heads)

  out, x_flat = discriminator_pallas(x, pp, num_layers=num_layers,
                                     n_heads=n_heads)
  out = jax.block_until_ready(out)
  x_flat = jax.block_until_ready(x_flat)

  ref_out, ref_flat = discriminator_ref(x, params, n_heads=n_heads)
  assert out.shape == (B, 1), out.shape
  assert x_flat.shape == (B, output_len * hid), x_flat.shape
  # bf16 matmul operands (f32 accumulation) in the kernel vs f32 reference.
  assert jnp.allclose(out, ref_out, atol=2e-2, rtol=2e-2)
  assert jnp.allclose(x_flat, ref_flat, atol=5e-2, rtol=5e-2)
  print("KERNEL_OK")
</pallas_src>

<mosaic_0001>
module attributes {stable_mosaic.version = 11 : i64} {
  func.func @_fused_discriminator_kernel(%arg0: i32, %arg1: memref<16x32xf32, #tpu.memory_space<vmem>>, %arg2: memref<1x32x96xbf16, #tpu.memory_space<vmem>>, %arg3: memref<1x1x96xf32, #tpu.memory_space<vmem>>, %arg4: memref<1x32x32xbf16, #tpu.memory_space<vmem>>, %arg5: memref<1x1x32xf32, #tpu.memory_space<vmem>>, %arg6: memref<1x1x32xf32, #tpu.memory_space<vmem>>, %arg7: memref<1x1x32xf32, #tpu.memory_space<vmem>>, %arg8: memref<1x32x64xbf16, #tpu.memory_space<vmem>>, %arg9: memref<1x1x64xf32, #tpu.memory_space<vmem>>, %arg10: memref<1x64x32xbf16, #tpu.memory_space<vmem>>, %arg11: memref<1x1x32xf32, #tpu.memory_space<vmem>>, %arg12: memref<1x1x32xf32, #tpu.memory_space<vmem>>, %arg13: memref<1x1x32xf32, #tpu.memory_space<vmem>>, %arg14: memref<1x8x15xf32, #tpu.memory_space<vmem>>, %arg15: memref<1x15x8xf32, #tpu.memory_space<vmem>>, %arg16: memref<32x64xbf16, #tpu.memory_space<vmem>>, %arg17: memref<1x64xf32, #tpu.memory_space<vmem>>, %arg18: memref<1x64xf32, #tpu.memory_space<vmem>>, %arg19: memref<1x64xf32, #tpu.memory_space<vmem>>, %arg20: memref<8x64xf32, #tpu.memory_space<vmem>>, %arg21: memref<1x1xf32, #tpu.memory_space<vmem>>, %arg22: memref<2x1xf32, #tpu.memory_space<vmem>>, %arg23: memref<16x32xf32, #tpu.memory_space<vmem>>, %arg24: memref<16x32xf32, #tpu.memory_space<vmem>>) attributes {dimension_semantics = [#tpu.dimension_semantics<arbitrary>], iteration_bounds = array<i64: 2>, scalar_prefetch = 0 : i64, scratch_operands = 1 : i64, tpu.core_type = #tpu.core_type<tc>, window_params = [{pipeline_mode = #tpu.pipeline_mode<synchronous>, transform_indices = @transform_0, window_bounds = array<i64: 16, 32>}, {transform_indices = @transform_1, window_bounds = array<i64: 1, 32, 96>}, {transform_indices = @transform_2, window_bounds = array<i64: 1, 1, 96>}, {transform_indices = @transform_3, window_bounds = array<i64: 1, 32, 32>}, {transform_indices = @transform_4, window_bounds = array<i64: 1, 1, 32>}, {transform_indices = @transform_5, window_bounds = array<i64: 1, 1, 32>}, {transform_indices = @transform_6, window_bounds = array<i64: 1, 1, 32>}, {transform_indices = @transform_7, window_bounds = array<i64: 1, 32, 64>}, {transform_indices = @transform_8, window_bounds = array<i64: 1, 1, 64>}, {transform_indices = @transform_9, window_bounds = array<i64: 1, 64, 32>}, {transform_indices = @transform_10, window_bounds = array<i64: 1, 1, 32>}, {transform_indices = @transform_11, window_bounds = array<i64: 1, 1, 32>}, {transform_indices = @transform_12, window_bounds = array<i64: 1, 1, 32>}, {transform_indices = @transform_13, window_bounds = array<i64: 1, 8, 15>}, {transform_indices = @transform_14, window_bounds = array<i64: 1, 15, 8>}, {pipeline_mode = #tpu.pipeline_mode<synchronous>, transform_indices = @transform_15, window_bounds = array<i64: 32, 64>}, {pipeline_mode = #tpu.pipeline_mode<synchronous>, transform_indices = @transform_16, window_bounds = array<i64: 1, 64>}, {pipeline_mode = #tpu.pipeline_mode<synchronous>, transform_indices = @transform_17, window_bounds = array<i64: 1, 64>}, {pipeline_mode = #tpu.pipeline_mode<synchronous>, transform_indices = @transform_18, window_bounds = array<i64: 1, 64>}, {pipeline_mode = #tpu.pipeline_mode<synchronous>, transform_indices = @transform_19, window_bounds = array<i64: 8, 64>}, {pipeline_mode = #tpu.pipeline_mode<synchronous>, transform_indices = @transform_20, window_bounds = array<i64: 1, 1>}, {pipeline_mode = #tpu.pipeline_mode<synchronous>, transform_indices = @transform_21, window_bounds = array<i64: 2, 1>}, {pipeline_mode = #tpu.pipeline_mode<synchronous>, transform_indices = @transform_22, window_bounds = array<i64: 16, 32>}]} {
    %c0_i32 = arith.constant 0 : i32
    %0 = arith.cmpi eq, %arg0, %c0_i32 : i32
    %1 = arith.extui %0 : i1 to i32
    %c0_i32_0 = arith.constant 0 : i32
    %2 = arith.cmpi ne, %1, %c0_i32_0 : i32
    scf.if %2 {
      %c0_112 = arith.constant 0 : index
      %c0_113 = arith.constant 0 : index
      %886 = vector.load %arg1[%c0_112, %c0_113] : memref<16x32xf32, #tpu.memory_space<vmem>>, vector<16x32xf32>
      %c0_114 = arith.constant 0 : index
      %c0_115 = arith.constant 0 : index
      %887 = vector.load %arg24[%c0_114, %c0_115] : memref<16x32xf32, #tpu.memory_space<vmem>>, vector<16x32xf32>
      tpu.vector_store %arg24[%c0_114, %c0_115], %886 {strides = array<i32>} : memref<16x32xf32, #tpu.memory_space<vmem>>, vector<16x32xf32>,
    } else {
    }
    %c0 = arith.constant 0 : index
    %c0_1 = arith.constant 0 : index
    %3 = vector.load %arg24[%c0, %c0_1] : memref<16x32xf32, #tpu.memory_space<vmem>>, vector<16x32xf32>
    %4 = arith.truncf %3 : vector<16x32xf32> to vector<16x32xbf16>
    %c0_2 = arith.constant 0 : index
    %c0_3 = arith.constant 0 : index
    %c0_4 = arith.constant 0 : index
    %5 = vector.load %arg2[%c0_2, %c0_3, %c0_4] : memref<1x32x96xbf16, #tpu.memory_space<vmem>>, vector<1x32x96xbf16>
    %6 = vector.shape_cast %5 : vector<1x32x96xbf16> to vector<32x96xbf16>
    %cst = arith.constant dense<0.000000e+00> : vector<16x96xf32>
    %7 = tpu.matmul %4, %6, %cst {dimension_numbers = #tpu.dot_dimension_numbers<[1], [0], [0], [1], [0, 0, 1, 1], [], []>} : vector<16x32xbf16>, vector<32x96xbf16>, vector<16x96xf32> -> vector<16x96xf32>
    %c0_5 = arith.constant 0 : index
    %c0_6 = arith.constant 0 : index
    %c0_7 = arith.constant 0 : index
    %8 = vector.load %arg3[%c0_5, %c0_6, %c0_7] : memref<1x1x96xf32, #tpu.memory_space<vmem>>, vector<1x1x96xf32>
    %9 = vector.shape_cast %8 : vector<1x1x96xf32> to vector<1x96xf32>
    %10 = vector.broadcast %9 : vector<1x96xf32> to vector<16x96xf32>
    %11 = arith.addf %7, %10 : vector<16x96xf32>
    %c0_8 = arith.constant 0 : index
    %c0_9 = arith.constant 0 : index
    %c0_10 = arith.constant 0 : index
    %12 = vector.load %arg14[%c0_8, %c0_9, %c0_10] : memref<1x8x15xf32, #tpu.memory_space<vmem>>, vector<1x8x15xf32>
    %13 = vector.shape_cast %12 : vector<1x8x15xf32> to vector<8x15xf32>
    %c0_11 = arith.constant 0 : index
    %c0_12 = arith.constant 0 : index
    %c0_13 = arith.constant 0 : index
    %14 = vector.load %arg15[%c0_11, %c0_12, %c0_13] : memref<1x15x8xf32, #tpu.memory_space<vmem>>, vector<1x15x8xf32>
    %15 = vector.shape_cast %14 : vector<1x15x8xf32> to vector<15x8xf32>
    %c0_14 = arith.constant 0 : index
    %c0_15 = arith.constant 0 : index
    %c0_16 = arith.constant 0 : index
    %16 = vector.load %arg4[%c0_14, %c0_15, %c0_16] : memref<1x32x32xbf16, #tpu.memory_space<vmem>>, vector<1x32x32xbf16>
    %17 = vector.shape_cast %16 : vector<1x32x32xbf16> to vector<32x32xbf16>
    %18 = tpu.iota {dimensions = array<i32: 1>} : vector<8x8xi32>
    %19 = tpu.iota {dimensions = array<i32: 0>} : vector<8x8xi32>
    %20 = arith.subi %18, %19 : vector<8x8xi32>
    %c7_i32 = arith.constant 7 : i32
    %21 = vector.broadcast %c7_i32 : i32 to vector<8x8xi32>
    %22 = arith.addi %20, %21 : vector<8x8xi32>
    %c0_i32_17 = arith.constant 0 : i32
    %23 = vector.broadcast %c0_i32_17 : i32 to vector<8x8xi32>
    %24 = arith.cmpi eq, %22, %23 : vector<8x8xi32>
    %25 = arith.extui %24 : vector<8x8xi1> to vector<8x8xi32>
    %26 = arith.sitofp %25 : vector<8x8xi32> to vector<8x8xf32>
    %c1_i32 = arith.constant 1 : i32
    %27 = vector.broadcast %c1_i32 : i32 to vector<8x8xi32>
    %28 = arith.cmpi eq, %22, %27 : vector<8x8xi32>
    %29 = arith.extui %28 : vector<8x8xi1> to vector<8x8xi32>
    %30 = arith.sitofp %29 : vector<8x8xi32> to vector<8x8xf32>
    %c2_i32 = arith.constant 2 : i32
    %31 = vector.broadcast %c2_i32 : i32 to vector<8x8xi32>
    %32 = arith.cmpi eq, %22, %31 : vector<8x8xi32>
    %33 = arith.extui %32 : vector<8x8xi1> to vector<8x8xi32>
    %34 = arith.sitofp %33 : vector<8x8xi32> to vector<8x8xf32>
    %c3_i32 = arith.constant 3 : i32
    %35 = vector.broadcast %c3_i32 : i32 to vector<8x8xi32>
    %36 = arith.cmpi eq, %22, %35 : vector<8x8xi32>
    %37 = arith.extui %36 : vector<8x8xi1> to vector<8x8xi32>
    %38 = arith.sitofp %37 : vector<8x8xi32> to vector<8x8xf32>
    %c4_i32 = arith.constant 4 : i32
    %39 = vector.broadcast %c4_i32 : i32 to vector<8x8xi32>
    %40 = arith.cmpi eq, %22, %39 : vector<8x8xi32>
    %41 = arith.extui %40 : vector<8x8xi1> to vector<8x8xi32>
    %42 = arith.sitofp %41 : vector<8x8xi32> to vector<8x8xf32>
    %c5_i32 = arith.constant 5 : i32
    %43 = vector.broadcast %c5_i32 : i32 to vector<8x8xi32>
    %44 = arith.cmpi eq, %22, %43 : vector<8x8xi32>
    %45 = arith.extui %44 : vector<8x8xi1> to vector<8x8xi32>
    %46 = arith.sitofp %45 : vector<8x8xi32> to vector<8x8xf32>
    %c6_i32 = arith.constant 6 : i32
    %47 = vector.broadcast %c6_i32 : i32 to vector<8x8xi32>
    %48 = arith.cmpi eq, %22, %47 : vector<8x8xi32>
    %49 = arith.extui %48 : vector<8x8xi1> to vector<8x8xi32>
    %50 = arith.sitofp %49 : vector<8x8xi32> to vector<8x8xf32>
    %c7_i32_18 = arith.constant 7 : i32
    %51 = vector.broadcast %c7_i32_18 : i32 to vector<8x8xi32>
    %52 = arith.cmpi eq, %22, %51 : vector<8x8xi32>
    %53 = arith.extui %52 : vector<8x8xi1> to vector<8x8xi32>
    %54 = arith.sitofp %53 : vector<8x8xi32> to vector<8x8xf32>
    %c8_i32 = arith.constant 8 : i32
    %55 = vector.broadcast %c8_i32 : i32 to vector<8x8xi32>
    %56 = arith.cmpi eq, %22, %55 : vector<8x8xi32>
    %57 = arith.extui %56 : vector<8x8xi1> to vector<8x8xi32>
    %58 = arith.sitofp %57 : vector<8x8xi32> to vector<8x8xf32>
    %c9_i32 = arith.constant 9 : i32
    %59 = vector.broadcast %c9_i32 : i32 to vector<8x8xi32>
    %60 = arith.cmpi eq, %22, %59 : vector<8x8xi32>
    %61 = arith.extui %60 : vector<8x8xi1> to vector<8x8xi32>
    %62 = arith.sitofp %61 : vector<8x8xi32> to vector<8x8xf32>
    %c10_i32 = arith.constant 10 : i32
    %63 = vector.broadcast %c10_i32 : i32 to vector<8x8xi32>
    %64 = arith.cmpi eq, %22, %63 : vector<8x8xi32>
    %65 = arith.extui %64 : vector<8x8xi1> to vector<8x8xi32>
    %66 = arith.sitofp %65 : vector<8x8xi32> to vector<8x8xf32>
    %c11_i32 = arith.constant 11 : i32
    %67 = vector.broadcast %c11_i32 : i32 to vector<8x8xi32>
    %68 = arith.cmpi eq, %22, %67 : vector<8x8xi32>
    %69 = arith.extui %68 : vector<8x8xi1> to vector<8x8xi32>
    %70 = arith.sitofp %69 : vector<8x8xi32> to vector<8x8xf32>
    %c12_i32 = arith.constant 12 : i32
    %71 = vector.broadcast %c12_i32 : i32 to vector<8x8xi32>
    %72 = arith.cmpi eq, %22, %71 : vector<8x8xi32>
    %73 = arith.extui %72 : vector<8x8xi1> to vector<8x8xi32>
    %74 = arith.sitofp %73 : vector<8x8xi32> to vector<8x8xf32>
    %c13_i32 = arith.constant 13 : i32
    %75 = vector.broadcast %c13_i32 : i32 to vector<8x8xi32>
    %76 = arith.cmpi eq, %22, %75 : vector<8x8xi32>
    %77 = arith.extui %76 : vector<8x8xi1> to vector<8x8xi32>
    %78 = arith.sitofp %77 : vector<8x8xi32> to vector<8x8xf32>
    %c14_i32 = arith.constant 14 : i32
    %79 = vector.broadcast %c14_i32 : i32 to vector<8x8xi32>
    %80 = arith.cmpi eq, %22, %79 : vector<8x8xi32>
    %81 = arith.extui %80 : vector<8x8xi1> to vector<8x8xi32>
    %82 = arith.sitofp %81 : vector<8x8xi32> to vector<8x8xf32>
    %83 = tpu.iota {dimensions = array<i32: 1>} : vector<8x15xi32>
    %84 = tpu.iota {dimensions = array<i32: 0>} : vector<8x15xi32>
    %c0_i32_19 = arith.constant 0 : i32
    %85 = vector.broadcast %c0_i32_19 : i32 to vector<8x15xi32>
    %86 = arith.subi %85, %84 : vector<8x15xi32>
    %c7_i32_20 = arith.constant 7 : i32
    %87 = vector.broadcast %c7_i32_20 : i32 to vector<8x15xi32>
    %88 = arith.addi %86, %87 : vector<8x15xi32>
    %89 = arith.cmpi eq, %83, %88 : vector<8x15xi32>
    %90 = arith.extui %89 : vector<8x15xi1> to vector<8x15xi32>
    %91 = arith.sitofp %90 : vector<8x15xi32> to vector<8x15xf32>
    %c1_i32_21 = arith.constant 1 : i32
    %92 = vector.broadcast %c1_i32_21 : i32 to vector<8x15xi32>
    %93 = arith.subi %92, %84 : vector<8x15xi32>
    %c7_i32_22 = arith.constant 7 : i32
    %94 = vector.broadcast %c7_i32_22 : i32 to vector<8x15xi32>
    %95 = arith.addi %93, %94 : vector<8x15xi32>
    %96 = arith.cmpi eq, %83, %95 : vector<8x15xi32>
    %97 = arith.extui %96 : vector<8x15xi1> to vector<8x15xi32>
    %98 = arith.sitofp %97 : vector<8x15xi32> to vector<8x15xf32>
    %c2_i32_23 = arith.constant 2 : i32
    %99 = vector.broadcast %c2_i32_23 : i32 to vector<8x15xi32>
    %100 = arith.subi %99, %84 : vector<8x15xi32>
    %c7_i32_24 = arith.constant 7 : i32
    %101 = vector.broadcast %c7_i32_24 : i32 to vector<8x15xi32>
    %102 = arith.addi %100, %101 : vector<8x15xi32>
    %103 = arith.cmpi eq, %83, %102 : vector<8x15xi32>
    %104 = arith.extui %103 : vector<8x15xi1> to vector<8x15xi32>
    %105 = arith.sitofp %104 : vector<8x15xi32> to vector<8x15xf32>
    %c3_i32_25 = arith.constant 3 : i32
    %106 = vector.broadcast %c3_i32_25 : i32 to vector<8x15xi32>
    %107 = arith.subi %106, %84 : vector<8x15xi32>
    %c7_i32_26 = arith.constant 7 : i32
    %108 = vector.broadcast %c7_i32_26 : i32 to vector<8x15xi32>
    %109 = arith.addi %107, %108 : vector<8x15xi32>
    %110 = arith.cmpi eq, %83, %109 : vector<8x15xi32>
    %111 = arith.extui %110 : vector<8x15xi1> to vector<8x15xi32>
    %112 = arith.sitofp %111 : vector<8x15xi32> to vector<8x15xf32>
    %c4_i32_27 = arith.constant 4 : i32
    %113 = vector.broadcast %c4_i32_27 : i32 to vector<8x15xi32>
    %114 = arith.subi %113, %84 : vector<8x15xi32>
    %c7_i32_28 = arith.constant 7 : i32
    %115 = vector.broadcast %c7_i32_28 : i32 to vector<8x15xi32>
    %116 = arith.addi %114, %115 : vector<8x15xi32>
    %117 = arith.cmpi eq, %83, %116 : vector<8x15xi32>
    %118 = arith.extui %117 : vector<8x15xi1> to vector<8x15xi32>
    %119 = arith.sitofp %118 : vector<8x15xi32> to vector<8x15xf32>
    %c5_i32_29 = arith.constant 5 : i32
    %120 = vector.broadcast %c5_i32_29 : i32 to vector<8x15xi32>
    %121 = arith.subi %120, %84 : vector<8x15xi32>
    %c7_i32_30 = arith.constant 7 : i32
    %122 = vector.broadcast %c7_i32_30 : i32 to vector<8x15xi32>
    %123 = arith.addi %121, %122 : vector<8x15xi32>
    %124 = arith.cmpi eq, %83, %123 : vector<8x15xi32>
    %125 = arith.extui %124 : vector<8x15xi1> to vector<8x15xi32>
    %126 = arith.sitofp %125 : vector<8x15xi32> to vector<8x15xf32>
    %c6_i32_31 = arith.constant 6 : i32
    %127 = vector.broadcast %c6_i32_31 : i32 to vector<8x15xi32>
    %128 = arith.subi %127, %84 : vector<8x15xi32>
    %c7_i32_32 = arith.constant 7 : i32
    %129 = vector.broadcast %c7_i32_32 : i32 to vector<8x15xi32>
    %130 = arith.addi %128, %129 : vector<8x15xi32>
    %131 = arith.cmpi eq, %83, %130 : vector<8x15xi32>
    %132 = arith.extui %131 : vector<8x15xi1> to vector<8x15xi32>
    %133 = arith.sitofp %132 : vector<8x15xi32> to vector<8x15xf32>
    %c7_i32_33 = arith.constant 7 : i32
    %134 = vector.broadcast %c7_i32_33 : i32 to vector<8x15xi32>
    %135 = arith.subi %134, %84 : vector<8x15xi32>
    %c7_i32_34 = arith.constant 7 : i32
    %136 = vector.broadcast %c7_i32_34 : i32 to vector<8x15xi32>
    %137 = arith.addi %135, %136 : vector<8x15xi32>
    %138 = arith.cmpi eq, %83, %137 : vector<8x15xi32>
    %139 = arith.extui %138 : vector<8x15xi1> to vector<8x15xi32>
    %140 = arith.sitofp %139 : vector<8x15xi32> to vector<8x15xf32>
    %cst_35 = arith.constant 0.000000e+00 : f32
    %141 = vector.broadcast %cst_35 : f32 to vector<16x32xf32>
    %142 = vector.extract_strided_slice %11 {offsets = [0, 0], sizes = [16, 8], strides = [1, 1]} : vector<16x96xf32> to vector<16x8xf32>
    %143 = vector.extract_strided_slice %11 {offsets = [0, 32], sizes = [16, 8], strides = [1, 1]} : vector<16x96xf32> to vector<16x8xf32>
    %144 = vector.extract_strided_slice %11 {offsets = [0, 64], sizes = [16, 8], strides = [1, 1]} : vector<16x96xf32> to vector<16x8xf32>
    %145 = vector.shape_cast %142 : vector<16x8xf32> to vector<2x8x8xf32>
    %146 = vector.shape_cast %143 : vector<16x8xf32> to vector<2x8x8xf32>
    %147 = vector.shape_cast %144 : vector<16x8xf32> to vector<2x8x8xf32>
    "tpu.trace_start"() <{level = 10 : i32, message = "bqd,bkd->bqk"}> : () -> ()
    %cst_36 = arith.constant dense<0.000000e+00> : vector<2x8x8xf32>
    %148 = tpu.matmul %145, %146, %cst_36 {dimension_numbers = #tpu.dot_dimension_numbers<[2], [2], [1], [1], [0, 0, 0, 1, 1, 1], [0], [0]>} : vector<2x8x8xf32>, vector<2x8x8xf32>, vector<2x8x8xf32> -> vector<2x8x8xf32>
    "tpu.trace_stop"() : () -> ()
    %cst_37 = arith.constant dense<0.000000e+00> : vector<16x15xf32>
    %149 = tpu.matmul %142, %13, %cst_37 {dimension_numbers = #tpu.dot_dimension_numbers<[1], [0], [0], [1], [0, 0, 1, 1], [], []>} : vector<16x8xf32>, vector<8x15xf32>, vector<16x15xf32> -> vector<16x15xf32>
    %150 = vector.shape_cast %149 : vector<16x15xf32> to vector<2x8x15xf32>
    %151 = vector.extract_strided_slice %150 {offsets = [0, 0, 0], sizes = [2, 8, 1], strides = [1, 1, 1]} : vector<2x8x15xf32> to vector<2x8x1xf32>
    %152 = vector.shape_cast %26 : vector<8x8xf32> to vector<1x8x8xf32>
    %153 = vector.broadcast %151 : vector<2x8x1xf32> to vector<2x8x8xf32>
    %154 = vector.broadcast %152 : vector<1x8x8xf32> to vector<2x8x8xf32>
    %155 = arith.mulf %153, %154 : vector<2x8x8xf32>
    %156 = arith.addf %148, %155 : vector<2x8x8xf32>
    %157 = vector.extract_strided_slice %150 {offsets = [0, 0, 1], sizes = [2, 8, 1], strides = [1, 1, 1]} : vector<2x8x15xf32> to vector<2x8x1xf32>
    %158 = vector.shape_cast %30 : vector<8x8xf32> to vector<1x8x8xf32>
    %159 = vector.broadcast %157 : vector<2x8x1xf32> to vector<2x8x8xf32>
    %160 = vector.broadcast %158 : vector<1x8x8xf32> to vector<2x8x8xf32>
    %161 = arith.mulf %159, %160 : vector<2x8x8xf32>
    %162 = arith.addf %156, %161 : vector<2x8x8xf32>
    %163 = vector.extract_strided_slice %150 {offsets = [0, 0, 2], sizes = [2, 8, 1], strides = [1, 1, 1]} : vector<2x8x15xf32> to vector<2x8x1xf32>
    %164 = vector.shape_cast %34 : vector<8x8xf32> to vector<1x8x8xf32>
    %165 = vector.broadcast %163 : vector<2x8x1xf32> to vector<2x8x8xf32>
    %166 = vector.broadcast %164 : vector<1x8x8xf32> to vector<2x8x8xf32>
    %167 = arith.mulf %165, %166 : vector<2x8x8xf32>
    %168 = arith.addf %162, %167 : vector<2x8x8xf32>
    %169 = vector.extract_strided_slice %150 {offsets = [0, 0, 3], sizes = [2, 8, 1], strides = [1, 1, 1]} : vector<2x8x15xf32> to vector<2x8x1xf32>
    %170 = vector.shape_cast %38 : vector<8x8xf32> to vector<1x8x8xf32>
    %171 = vector.broadcast %169 : vector<2x8x1xf32> to vector<2x8x8xf32>
    %172 = vector.broadcast %170 : vector<1x8x8xf32> to vector<2x8x8xf32>
    %173 = arith.mulf %171, %172 : vector<2x8x8xf32>
    %174 = arith.addf %168, %173 : vector<2x8x8xf32>
    %175 = vector.extract_strided_slice %150 {offsets = [0, 0, 4], sizes = [2, 8, 1], strides = [1, 1, 1]} : vector<2x8x15xf32> to vector<2x8x1xf32>
    %176 = vector.shape_cast %42 : vector<8x8xf32> to vector<1x8x8xf32>
    %177 = vector.broadcast %175 : vector<2x8x1xf32> to vector<2x8x8xf32>
    %178 = vector.broadcast %176 : vector<1x8x8xf32> to vector<2x8x8xf32>
    %179 = arith.mulf %177, %178 : vector<2x8x8xf32>
    %180 = arith.addf %174, %179 : vector<2x8x8xf32>
    %181 = vector.extract_strided_slice %150 {offsets = [0, 0, 5], sizes = [2, 8, 1], strides = [1, 1, 1]} : vector<2x8x15xf32> to vector<2x8x1xf32>
    %182 = vector.shape_cast %46 : vector<8x8xf32> to vector<1x8x8xf32>
    %183 = vector.broadcast %181 : vector<2x8x1xf32> to vector<2x8x8xf32>
    %184 = vector.broadcast %182 : vector<1x8x8xf32> to vector<2x8x8xf32>
    %185 = arith.mulf %183, %184 : vector<2x8x8xf32>
    %186 = arith.addf %180, %185 : vector<2x8x8xf32>
    %187 = vector.extract_strided_slice %150 {offsets = [0, 0, 6], sizes = [2, 8, 1], strides = [1, 1, 1]} : vector<2x8x15xf32> to vector<2x8x1xf32>
    %188 = vector.shape_cast %50 : vector<8x8xf32> to vector<1x8x8xf32>
    %189 = vector.broadcast %187 : vector<2x8x1xf32> to vector<2x8x8xf32>
    %190 = vector.broadcast %188 : vector<1x8x8xf32> to vector<2x8x8xf32>
    %191 = arith.mulf %189, %190 : vector<2x8x8xf32>
    %192 = arith.addf %186, %191 : vector<2x8x8xf32>
    %193 = vector.extract_strided_slice %150 {offsets = [0, 0, 7], sizes = [2, 8, 1], strides = [1, 1, 1]} : vector<2x8x15xf32> to vector<2x8x1xf32>
    %194 = vector.shape_cast %54 : vector<8x8xf32> to vector<1x8x8xf32>
    %195 = vector.broadcast %193 : vector<2x8x1xf32> to vector<2x8x8xf32>
    %196 = vector.broadcast %194 : vector<1x8x8xf32> to vector<2x8x8xf32>
    %197 = arith.mulf %195, %196 : vector<2x8x8xf32>
    %198 = arith.addf %192, %197 : vector<2x8x8xf32>
    %199 = vector.extract_strided_slice %150 {offsets = [0, 0, 8], sizes = [2, 8, 1], strides = [1, 1, 1]} : vector<2x8x15xf32> to vector<2x8x1xf32>
    %200 = vector.shape_cast %58 : vector<8x8xf32> to vector<1x8x8xf32>
    %201 = vector.broadcast %199 : vector<2x8x1xf32> to vector<2x8x8xf32>
    %202 = vector.broadcast %200 : vector<1x8x8xf32> to vector<2x8x8xf32>
    %203 = arith.mulf %201, %202 : vector<2x8x8xf32>
    %204 = arith.addf %198, %203 : vector<2x8x8xf32>
    %205 = vector.extract_strided_slice %150 {offsets = [0, 0, 9], sizes = [2, 8, 1], strides = [1, 1, 1]} : vector<2x8x15xf32> to vector<2x8x1xf32>
    %206 = vector.shape_cast %62 : vector<8x8xf32> to vector<1x8x8xf32>
    %207 = vector.broadcast %205 : vector<2x8x1xf32> to vector<2x8x8xf32>
    %208 = vector.broadcast %206 : vector<1x8x8xf32> to vector<2x8x8xf32>
    %209 = arith.mulf %207, %208 : vector<2x8x8xf32>
    %210 = arith.addf %204, %209 : vector<2x8x8xf32>
    %211 = vector.extract_strided_slice %150 {offsets = [0, 0, 10], sizes = [2, 8, 1], strides = [1, 1, 1]} : vector<2x8x15xf32> to vector<2x8x1xf32>
    %212 = vector.shape_cast %66 : vector<8x8xf32> to vector<1x8x8xf32>
    %213 = vector.broadcast %211 : vector<2x8x1xf32> to vector<2x8x8xf32>
    %214 = vector.broadcast %212 : vector<1x8x8xf32> to vector<2x8x8xf32>
    %215 = arith.mulf %213, %214 : vector<2x8x8xf32>
    %216 = arith.addf %210, %215 : vector<2x8x8xf32>
    %217 = vector.extract_strided_slice %150 {offsets = [0, 0, 11], sizes = [2, 8, 1], strides = [1, 1, 1]} : vector<2x8x15xf32> to vector<2x8x1xf32>
    %218 = vector.shape_cast %70 : vector<8x8xf32> to vector<1x8x8xf32>
    %219 = vector.broadcast %217 : vector<2x8x1xf32> to vector<2x8x8xf32>
    %220 = vector.broadcast %218 : vector<1x8x8xf32> to vector<2x8x8xf32>
    %221 = arith.mulf %219, %220 : vector<2x8x8xf32>
    %222 = arith.addf %216, %221 : vector<2x8x8xf32>
    %223 = vector.extract_strided_slice %150 {offsets = [0, 0, 12], sizes = [2, 8, 1], strides = [1, 1, 1]} : vector<2x8x15xf32> to vector<2x8x1xf32>
    %224 = vector.shape_cast %74 : vector<8x8xf32> to vector<1x8x8xf32>
    %225 = vector.broadcast %223 : vector<2x8x1xf32> to vector<2x8x8xf32>
    %226 = vector.broadcast %224 : vector<1x8x8xf32> to vector<2x8x8xf32>
    %227 = arith.mulf %225, %226 : vector<2x8x8xf32>
    %228 = arith.addf %222, %227 : vector<2x8x8xf32>
    %229 = vector.extract_strided_slice %150 {offsets = [0, 0, 13], sizes = [2, 8, 1], strides = [1, 1, 1]} : vector<2x8x15xf32> to vector<2x8x1xf32>
    %230 = vector.shape_cast %78 : vector<8x8xf32> to vector<1x8x8xf32>
    %231 = vector.broadcast %229 : vector<2x8x1xf32> to vector<2x8x8xf32>
    %232 = vector.broadcast %230 : vector<1x8x8xf32> to vector<2x8x8xf32>
    %233 = arith.mulf %231, %232 : vector<2x8x8xf32>
    %234 = arith.addf %228, %233 : vector<2x8x8xf32>
    %235 = vector.extract_strided_slice %150 {offsets = [0, 0, 14], sizes = [2, 8, 1], strides = [1, 1, 1]} : vector<2x8x15xf32> to vector<2x8x1xf32>
    %236 = vector.shape_cast %82 : vector<8x8xf32> to vector<1x8x8xf32>
    %237 = vector.broadcast %235 : vector<2x8x1xf32> to vector<2x8x8xf32>
    %238 = vector.broadcast %236 : vector<1x8x8xf32> to vector<2x8x8xf32>
    %239 = arith.mulf %237, %238 : vector<2x8x8xf32>
    %240 = arith.addf %234, %239 : vector<2x8x8xf32>
    %cst_38 = arith.constant dense<0xFF800000> : vector<2x8xf32>
    %241 = vector.multi_reduction <maximumf>, %240, %cst_38 [2] : vector<2x8x8xf32> to vector<2x8xf32>
    %242 = vector.shape_cast %241 : vector<2x8xf32> to vector<2x8x1xf32>
    %243 = vector.broadcast %242 : vector<2x8x1xf32> to vector<2x8x8xf32>
    %244 = arith.subf %240, %243 : vector<2x8x8xf32>
    %245 = math.exp %244 : vector<2x8x8xf32>
    %cst_39 = arith.constant dense<0.000000e+00> : vector<2x8xf32>
    %246 = vector.multi_reduction <add>, %245, %cst_39 [2] : vector<2x8x8xf32> to vector<2x8xf32>
    %247 = vector.shape_cast %246 : vector<2x8xf32> to vector<2x8x1xf32>
    %248 = tpu.reciprocal %247 {approx = true} : vector<2x8x1xf32> -> vector<2x8x1xf32>
    %249 = vector.broadcast %248 : vector<2x8x1xf32> to vector<2x8x8xf32>
    %250 = arith.mulf %245, %249 : vector<2x8x8xf32>
    "tpu.trace_start"() <{level = 10 : i32, message = "bqk,bkd->bqd"}> : () -> ()
    %cst_40 = arith.constant dense<0.000000e+00> : vector<2x8x8xf32>
    %251 = tpu.matmul %250, %147, %cst_40 {dimension_numbers = #tpu.dot_dimension_numbers<[2], [1], [1], [2], [0, 0, 0, 1, 1, 2], [0], [0]>} : vector<2x8x8xf32>, vector<2x8x8xf32>, vector<2x8x8xf32> -> vector<2x8x8xf32>
    "tpu.trace_stop"() : () -> ()
    %252 = vector.shape_cast %251 : vector<2x8x8xf32> to vector<16x8xf32>
    %cst_41 = arith.constant 0.000000e+00 : f32
    %253 = vector.broadcast %cst_41 : f32 to vector<2x8x15xf32>
    %254 = vector.extract_strided_slice %250 {offsets = [0, 0, 0], sizes = [2, 8, 1], strides = [1, 1, 1]} : vector<2x8x8xf32> to vector<2x8x1xf32>
    %255 = vector.shape_cast %91 : vector<8x15xf32> to vector<1x8x15xf32>
    %256 = vector.broadcast %254 : vector<2x8x1xf32> to vector<2x8x15xf32>
    %257 = vector.broadcast %255 : vector<1x8x15xf32> to vector<2x8x15xf32>
    %258 = arith.mulf %256, %257 : vector<2x8x15xf32>
    %259 = arith.addf %253, %258 : vector<2x8x15xf32>
    %260 = vector.extract_strided_slice %250 {offsets = [0, 0, 1], sizes = [2, 8, 1], strides = [1, 1, 1]} : vector<2x8x8xf32> to vector<2x8x1xf32>
    %261 = vector.shape_cast %98 : vector<8x15xf32> to vector<1x8x15xf32>
    %262 = vector.broadcast %260 : vector<2x8x1xf32> to vector<2x8x15xf32>
    %263 = vector.broadcast %261 : vector<1x8x15xf32> to vector<2x8x15xf32>
    %264 = arith.mulf %262, %263 : vector<2x8x15xf32>
    %265 = arith.addf %259, %264 : vector<2x8x15xf32>
    %266 = vector.extract_strided_slice %250 {offsets = [0, 0, 2], sizes = [2, 8, 1], strides = [1, 1, 1]} : vector<2x8x8xf32> to vector<2x8x1xf32>
    %267 = vector.shape_cast %105 : vector<8x15xf32> to vector<1x8x15xf32>
    %268 = vector.broadcast %266 : vector<2x8x1xf32> to vector<2x8x15xf32>
    %269 = vector.broadcast %267 : vector<1x8x15xf32> to vector<2x8x15xf32>
    %270 = arith.mulf %268, %269 : vector<2x8x15xf32>
    %271 = arith.addf %265, %270 : vector<2x8x15xf32>
    %272 = vector.extract_strided_slice %250 {offsets = [0, 0, 3], sizes = [2, 8, 1], strides = [1, 1, 1]} : vector<2x8x8xf32> to vector<2x8x1xf32>
    %273 = vector.shape_cast %112 : vector<8x15xf32> to vector<1x8x15xf32>
    %274 = vector.broadcast %272 : vector<2x8x1xf32> to vector<2x8x15xf32>
    %275 = vector.broadcast %273 : vector<1x8x15xf32> to vector<2x8x15xf32>
    %276 = arith.mulf %274, %275 : vector<2x8x15xf32>
    %277 = arith.addf %271, %276 : vector<2x8x15xf32>
    %278 = vector.extract_strided_slice %250 {offsets = [0, 0, 4], sizes = [2, 8, 1], strides = [1, 1, 1]} : vector<2x8x8xf32> to vector<2x8x1xf32>
    %279 = vector.shape_cast %119 : vector<8x15xf32> to vector<1x8x15xf32>
    %280 = vector.broadcast %278 : vector<2x8x1xf32> to vector<2x8x15xf32>
    %281 = vector.broadcast %279 : vector<1x8x15xf32> to vector<2x8x15xf32>
    %282 = arith.mulf %280, %281 : vector<2x8x15xf32>
    %283 = arith.addf %277, %282 : vector<2x8x15xf32>
    %284 = vector.extract_strided_slice %250 {offsets = [0, 0, 5], sizes = [2, 8, 1], strides = [1, 1, 1]} : vector<2x8x8xf32> to vector<2x8x1xf32>
    %285 = vector.shape_cast %126 : vector<8x15xf32> to vector<1x8x15xf32>
    %286 = vector.broadcast %284 : vector<2x8x1xf32> to vector<2x8x15xf32>
    %287 = vector.broadcast %285 : vector<1x8x15xf32> to vector<2x8x15xf32>
    %288 = arith.mulf %286, %287 : vector<2x8x15xf32>
    %289 = arith.addf %283, %288 : vector<2x8x15xf32>
    %290 = vector.extract_strided_slice %250 {offsets = [0, 0, 6], sizes = [2, 8, 1], strides = [1, 1, 1]} : vector<2x8x8xf32> to vector<2x8x1xf32>
    %291 = vector.shape_cast %133 : vector<8x15xf32> to vector<1x8x15xf32>
    %292 = vector.broadcast %290 : vector<2x8x1xf32> to vector<2x8x15xf32>
    %293 = vector.broadcast %291 : vector<1x8x15xf32> to vector<2x8x15xf32>
    %294 = arith.mulf %292, %293 : vector<2x8x15xf32>
    %295 = arith.addf %289, %294 : vector<2x8x15xf32>
    %296 = vector.extract_strided_slice %250 {offsets = [0, 0, 7], sizes = [2, 8, 1], strides = [1, 1, 1]} : vector<2x8x8xf32> to vector<2x8x1xf32>
    %297 = vector.shape_cast %140 : vector<8x15xf32> to vector<1x8x15xf32>
    %298 = vector.broadcast %296 : vector<2x8x1xf32> to vector<2x8x15xf32>
    %299 = vector.broadcast %297 : vector<1x8x15xf32> to vector<2x8x15xf32>
    %300 = arith.mulf %298, %299 : vector<2x8x15xf32>
    %301 = arith.addf %295, %300 : vector<2x8x15xf32>
    %302 = vector.shape_cast %301 : vector<2x8x15xf32> to vector<16x15xf32>
    %cst_42 = arith.constant dense<0.000000e+00> : vector<16x8xf32>
    %303 = tpu.matmul %302, %15, %cst_42 {dimension_numbers = #tpu.dot_dimension_numbers<[1], [0], [0], [1], [0, 0, 1, 1], [], []>} : vector<16x15xf32>, vector<15x8xf32>, vector<16x8xf32> -> vector<16x8xf32>
    %304 = arith.addf %252, %303 : vector<16x8xf32>
    %305 = arith.truncf %304 : vector<16x8xf32> to vector<16x8xbf16>
    %306 = vector.extract_strided_slice %17 {offsets = [0, 0], sizes = [8, 32], strides = [1, 1]} : vector<32x32xbf16> to vector<8x32xbf16>
    %cst_43 = arith.constant dense<0.000000e+00> : vector<16x32xf32>
    %307 = tpu.matmul %305, %306, %cst_43 {dimension_numbers = #tpu.dot_dimension_numbers<[1], [0], [0], [1], [0, 0, 1, 1], [], []>} : vector<16x8xbf16>, vector<8x32xbf16>, vector<16x32xf32> -> vector<16x32xf32>
    %308 = arith.addf %141, %307 : vector<16x32xf32>
    %309 = vector.extract_strided_slice %11 {offsets = [0, 8], sizes = [16, 8], strides = [1, 1]} : vector<16x96xf32> to vector<16x8xf32>
    %310 = vector.extract_strided_slice %11 {offsets = [0, 40], sizes = [16, 8], strides = [1, 1]} : vector<16x96xf32> to vector<16x8xf32>
    %311 = vector.extract_strided_slice %11 {offsets = [0, 72], sizes = [16, 8], strides = [1, 1]} : vector<16x96xf32> to vector<16x8xf32>
    %312 = vector.shape_cast %309 : vector<16x8xf32> to vector<2x8x8xf32>
    %313 = vector.shape_cast %310 : vector<16x8xf32> to vector<2x8x8xf32>
    %314 = vector.shape_cast %311 : vector<16x8xf32> to vector<2x8x8xf32>
    "tpu.trace_start"() <{level = 10 : i32, message = "bqd,bkd->bqk"}> : () -> ()
    %cst_44 = arith.constant dense<0.000000e+00> : vector<2x8x8xf32>
    %315 = tpu.matmul %312, %313, %cst_44 {dimension_numbers = #tpu.dot_dimension_numbers<[2], [2], [1], [1], [0, 0, 0, 1, 1, 1], [0], [0]>} : vector<2x8x8xf32>, vector<2x8x8xf32>, vector<2x8x8xf32> -> vector<2x8x8xf32>
    "tpu.trace_stop"() : () -> ()
    %cst_45 = arith.constant dense<0.000000e+00> : vector<16x15xf32>
    %316 = tpu.matmul %309, %13, %cst_45 {dimension_numbers = #tpu.dot_dimension_numbers<[1], [0], [0], [1], [0, 0, 1, 1], [], []>} : vector<16x8xf32>, vector<8x15xf32>, vector<16x15xf32> -> vector<16x15xf32>
    %317 = vector.shape_cast %316 : vector<16x15xf32> to vector<2x8x15xf32>
    %318 = vector.extract_strided_slice %317 {offsets = [0, 0, 0], sizes = [2, 8, 1], strides = [1, 1, 1]} : vector<2x8x15xf32> to vector<2x8x1xf32>
    %319 = vector.shape_cast %26 : vector<8x8xf32> to vector<1x8x8xf32>
    %320 = vector.broadcast %318 : vector<2x8x1xf32> to vector<2x8x8xf32>
    %321 = vector.broadcast %319 : vector<1x8x8xf32> to vector<2x8x8xf32>
    %322 = arith.mulf %320, %321 : vector<2x8x8xf32>
    %323 = arith.addf %315, %322 : vector<2x8x8xf32>
    %324 = vector.extract_strided_slice %317 {offsets = [0, 0, 1], sizes = [2, 8, 1], strides = [1, 1, 1]} : vector<2x8x15xf32> to vector<2x8x1xf32>
    %325 = vector.shape_cast %30 : vector<8x8xf32> to vector<1x8x8xf32>
    %326 = vector.broadcast %324 : vector<2x8x1xf32> to vector<2x8x8xf32>
    %327 = vector.broadcast %325 : vector<1x8x8xf32> to vector<2x8x8xf32>
    %328 = arith.mulf %326, %327 : vector<2x8x8xf32>
    %329 = arith.addf %323, %328 : vector<2x8x8xf32>
    %330 = vector.extract_strided_slice %317 {offsets = [0, 0, 2], sizes = [2, 8, 1], strides = [1, 1, 1]} : vector<2x8x15xf32> to vector<2x8x1xf32>
    %331 = vector.shape_cast %34 : vector<8x8xf32> to vector<1x8x8xf32>
    %332 = vector.broadcast %330 : vector<2x8x1xf32> to vector<2x8x8xf32>
    %333 = vector.broadcast %331 : vector<1x8x8xf32> to vector<2x8x8xf32>
    %334 = arith.mulf %332, %333 : vector<2x8x8xf32>
    %335 = arith.addf %329, %334 : vector<2x8x8xf32>
    %336 = vector.extract_strided_slice %317 {offsets = [0, 0, 3], sizes = [2, 8, 1], strides = [1, 1, 1]} : vector<2x8x15xf32> to vector<2x8x1xf32>
    %337 = vector.shape_cast %38 : vector<8x8xf32> to vector<1x8x8xf32>
    %338 = vector.broadcast %336 : vector<2x8x1xf32> to vector<2x8x8xf32>
    %339 = vector.broadcast %337 : vector<1x8x8xf32> to vector<2x8x8xf32>
    %340 = arith.mulf %338, %339 : vector<2x8x8xf32>
    %341 = arith.addf %335, %340 : vector<2x8x8xf32>
    %342 = vector.extract_strided_slice %317 {offsets = [0, 0, 4], sizes = [2, 8, 1], strides = [1, 1, 1]} : vector<2x8x15xf32> to vector<2x8x1xf32>
    %343 = vector.shape_cast %42 : vector<8x8xf32> to vector<1x8x8xf32>
    %344 = vector.broadcast %342 : vector<2x8x1xf32> to vector<2x8x8xf32>
    %345 = vector.broadcast %343 : vector<1x8x8xf32> to vector<2x8x8xf32>
    %346 = arith.mulf %344, %345 : vector<2x8x8xf32>
    %347 = arith.addf %341, %346 : vector<2x8x8xf32>
    %348 = vector.extract_strided_slice %317 {offsets = [0, 0, 5], sizes = [2, 8, 1], strides = [1, 1, 1]} : vector<2x8x15xf32> to vector<2x8x1xf32>
    %349 = vector.shape_cast %46 : vector<8x8xf32> to vector<1x8x8xf32>
    %350 = vector.broadcast %348 : vector<2x8x1xf32> to vector<2x8x8xf32>
    %351 = vector.broadcast %349 : vector<1x8x8xf32> to vector<2x8x8xf32>
    %352 = arith.mulf %350, %351 : vector<2x8x8xf32>
    %353 = arith.addf %347, %352 : vector<2x8x8xf32>
    %354 = vector.extract_strided_slice %317 {offsets = [0, 0, 6], sizes = [2, 8, 1], strides = [1, 1, 1]} : vector<2x8x15xf32> to vector<2x8x1xf32>
    %355 = vector.shape_cast %50 : vector<8x8xf32> to vector<1x8x8xf32>
    %356 = vector.broadcast %354 : vector<2x8x1xf32> to vector<2x8x8xf32>
    %357 = vector.broadcast %355 : vector<1x8x8xf32> to vector<2x8x8xf32>
    %358 = arith.mulf %356, %357 : vector<2x8x8xf32>
    %359 = arith.addf %353, %358 : vector<2x8x8xf32>
    %360 = vector.extract_strided_slice %317 {offsets = [0, 0, 7], sizes = [2, 8, 1], strides = [1, 1, 1]} : vector<2x8x15xf32> to vector<2x8x1xf32>
    %361 = vector.shape_cast %54 : vector<8x8xf32> to vector<1x8x8xf32>
    %362 = vector.broadcast %360 : vector<2x8x1xf32> to vector<2x8x8xf32>
    %363 = vector.broadcast %361 : vector<1x8x8xf32> to vector<2x8x8xf32>
    %364 = arith.mulf %362, %363 : vector<2x8x8xf32>
    %365 = arith.addf %359, %364 : vector<2x8x8xf32>
    %366 = vector.extract_strided_slice %317 {offsets = [0, 0, 8], sizes = [2, 8, 1], strides = [1, 1, 1]} : vector<2x8x15xf32> to vector<2x8x1xf32>
    %367 = vector.shape_cast %58 : vector<8x8xf32> to vector<1x8x8xf32>
    %368 = vector.broadcast %366 : vector<2x8x1xf32> to vector<2x8x8xf32>
    %369 = vector.broadcast %367 : vector<1x8x8xf32> to vector<2x8x8xf32>
    %370 = arith.mulf %368, %369 : vector<2x8x8xf32>
    %371 = arith.addf %365, %370 : vector<2x8x8xf32>
    %372 = vector.extract_strided_slice %317 {offsets = [0, 0, 9], sizes = [2, 8, 1], strides = [1, 1, 1]} : vector<2x8x15xf32> to vector<2x8x1xf32>
    %373 = vector.shape_cast %62 : vector<8x8xf32> to vector<1x8x8xf32>
    %374 = vector.broadcast %372 : vector<2x8x1xf32> to vector<2x8x8xf32>
    %375 = vector.broadcast %373 : vector<1x8x8xf32> to vector<2x8x8xf32>
    %376 = arith.mulf %374, %375 : vector<2x8x8xf32>
    %377 = arith.addf %371, %376 : vector<2x8x8xf32>
    %378 = vector.extract_strided_slice %317 {offsets = [0, 0, 10], sizes = [2, 8, 1], strides = [1, 1, 1]} : vector<2x8x15xf32> to vector<2x8x1xf32>
    %379 = vector.shape_cast %66 : vector<8x8xf32> to vector<1x8x8xf32>
    %380 = vector.broadcast %378 : vector<2x8x1xf32> to vector<2x8x8xf32>
    %381 = vector.broadcast %379 : vector<1x8x8xf32> to vector<2x8x8xf32>
    %382 = arith.mulf %380, %381 : vector<2x8x8xf32>
    %383 = arith.addf %377, %382 : vector<2x8x8xf32>
    %384 = vector.extract_strided_slice %317 {offsets = [0, 0, 11], sizes = [2, 8, 1], strides = [1, 1, 1]} : vector<2x8x15xf32> to vector<2x8x1xf32>
    %385 = vector.shape_cast %70 : vector<8x8xf32> to vector<1x8x8xf32>
    %386 = vector.broadcast %384 : vector<2x8x1xf32> to vector<2x8x8xf32>
    %387 = vector.broadcast %385 : vector<1x8x8xf32> to vector<2x8x8xf32>
    %388 = arith.mulf %386, %387 : vector<2x8x8xf32>
    %389 = arith.addf %383, %388 : vector<2x8x8xf32>
    %390 = vector.extract_strided_slice %317 {offsets = [0, 0, 12], sizes = [2, 8, 1], strides = [1, 1, 1]} : vector<2x8x15xf32> to vector<2x8x1xf32>
    %391 = vector.shape_cast %74 : vector<8x8xf32> to vector<1x8x8xf32>
    %392 = vector.broadcast %390 : vector<2x8x1xf32> to vector<2x8x8xf32>
    %393 = vector.broadcast %391 : vector<1x8x8xf32> to vector<2x8x8xf32>
    %394 = arith.mulf %392, %393 : vector<2x8x8xf32>
    %395 = arith.addf %389, %394 : vector<2x8x8xf32>
    %396 = vector.extract_strided_slice %317 {offsets = [0, 0, 13], sizes = [2, 8, 1], strides = [1, 1, 1]} : vector<2x8x15xf32> to vector<2x8x1xf32>
    %397 = vector.shape_cast %78 : vector<8x8xf32> to vector<1x8x8xf32>
    %398 = vector.broadcast %396 : vector<2x8x1xf32> to vector<2x8x8xf32>
    %399 = vector.broadcast %397 : vector<1x8x8xf32> to vector<2x8x8xf32>
    %400 = arith.mulf %398, %399 : vector<2x8x8xf32>
    %401 = arith.addf %395, %400 : vector<2x8x8xf32>
    %402 = vector.extract_strided_slice %317 {offsets = [0, 0, 14], sizes = [2, 8, 1], strides = [1, 1, 1]} : vector<2x8x15xf32> to vector<2x8x1xf32>
    %403 = vector.shape_cast %82 : vector<8x8xf32> to vector<1x8x8xf32>
    %404 = vector.broadcast %402 : vector<2x8x1xf32> to vector<2x8x8xf32>
    %405 = vector.broadcast %403 : vector<1x8x8xf32> to vector<2x8x8xf32>
    %406 = arith.mulf %404, %405 : vector<2x8x8xf32>
    %407 = arith.addf %401, %406 : vector<2x8x8xf32>
    %cst_46 = arith.constant dense<0xFF800000> : vector<2x8xf32>
    %408 = vector.multi_reduction <maximumf>, %407, %cst_46 [2] : vector<2x8x8xf32> to vector<2x8xf32>
    %409 = vector.shape_cast %408 : vector<2x8xf32> to vector<2x8x1xf32>
    %410 = vector.broadcast %409 : vector<2x8x1xf32> to vector<2x8x8xf32>
    %411 = arith.subf %407, %410 : vector<2x8x8xf32>
    %412 = math.exp %411 : vector<2x8x8xf32>
    %cst_47 = arith.constant dense<0.000000e+00> : vector<2x8xf32>
    %413 = vector.multi_reduction <add>, %412, %cst_47 [2] : vector<2x8x8xf32> to vector<2x8xf32>
    %414 = vector.shape_cast %413 : vector<2x8xf32> to vector<2x8x1xf32>
    %415 = tpu.reciprocal %414 {approx = true} : vector<2x8x1xf32> -> vector<2x8x1xf32>
    %416 = vector.broadcast %415 : vector<2x8x1xf32> to vector<2x8x8xf32>
    %417 = arith.mulf %412, %416 : vector<2x8x8xf32>
    "tpu.trace_start"() <{level = 10 : i32, message = "bqk,bkd->bqd"}> : () -> ()
    %cst_48 = arith.constant dense<0.000000e+00> : vector<2x8x8xf32>
    %418 = tpu.matmul %417, %314, %cst_48 {dimension_numbers = #tpu.dot_dimension_numbers<[2], [1], [1], [2], [0, 0, 0, 1, 1, 2], [0], [0]>} : vector<2x8x8xf32>, vector<2x8x8xf32>, vector<2x8x8xf32> -> vector<2x8x8xf32>
    "tpu.trace_stop"() : () -> ()
    %419 = vector.shape_cast %418 : vector<2x8x8xf32> to vector<16x8xf32>
    %cst_49 = arith.constant 0.000000e+00 : f32
    %420 = vector.broadcast %cst_49 : f32 to vector<2x8x15xf32>
    %421 = vector.extract_strided_slice %417 {offsets = [0, 0, 0], sizes = [2, 8, 1], strides = [1, 1, 1]} : vector<2x8x8xf32> to vector<2x8x1xf32>
    %422 = vector.shape_cast %91 : vector<8x15xf32> to vector<1x8x15xf32>
    %423 = vector.broadcast %421 : vector<2x8x1xf32> to vector<2x8x15xf32>
    %424 = vector.broadcast %422 : vector<1x8x15xf32> to vector<2x8x15xf32>
    %425 = arith.mulf %423, %424 : vector<2x8x15xf32>
    %426 = arith.addf %420, %425 : vector<2x8x15xf32>
    %427 = vector.extract_strided_slice %417 {offsets = [0, 0, 1], sizes = [2, 8, 1], strides = [1, 1, 1]} : vector<2x8x8xf32> to vector<2x8x1xf32>
    %428 = vector.shape_cast %98 : vector<8x15xf32> to vector<1x8x15xf32>
    %429 = vector.broadcast %427 : vector<2x8x1xf32> to vector<2x8x15xf32>
    %430 = vector.broadcast %428 : vector<1x8x15xf32> to vector<2x8x15xf32>
    %431 = arith.mulf %429, %430 : vector<2x8x15xf32>
    %432 = arith.addf %426, %431 : vector<2x8x15xf32>
    %433 = vector.extract_strided_slice %417 {offsets = [0, 0, 2], sizes = [2, 8, 1], strides = [1, 1, 1]} : vector<2x8x8xf32> to vector<2x8x1xf32>
    %434 = vector.shape_cast %105 : vector<8x15xf32> to vector<1x8x15xf32>
    %435 = vector.broadcast %433 : vector<2x8x1xf32> to vector<2x8x15xf32>
    %436 = vector.broadcast %434 : vector<1x8x15xf32> to vector<2x8x15xf32>
    %437 = arith.mulf %435, %436 : vector<2x8x15xf32>
    %438 = arith.addf %432, %437 : vector<2x8x15xf32>
    %439 = vector.extract_strided_slice %417 {offsets = [0, 0, 3], sizes = [2, 8, 1], strides = [1, 1, 1]} : vector<2x8x8xf32> to vector<2x8x1xf32>
    %440 = vector.shape_cast %112 : vector<8x15xf32> to vector<1x8x15xf32>
    %441 = vector.broadcast %439 : vector<2x8x1xf32> to vector<2x8x15xf32>
    %442 = vector.broadcast %440 : vector<1x8x15xf32> to vector<2x8x15xf32>
    %443 = arith.mulf %441, %442 : vector<2x8x15xf32>
    %444 = arith.addf %438, %443 : vector<2x8x15xf32>
    %445 = vector.extract_strided_slice %417 {offsets = [0, 0, 4], sizes = [2, 8, 1], strides = [1, 1, 1]} : vector<2x8x8xf32> to vector<2x8x1xf32>
    %446 = vector.shape_cast %119 : vector<8x15xf32> to vector<1x8x15xf32>
    %447 = vector.broadcast %445 : vector<2x8x1xf32> to vector<2x8x15xf32>
    %448 = vector.broadcast %446 : vector<1x8x15xf32> to vector<2x8x15xf32>
    %449 = arith.mulf %447, %448 : vector<2x8x15xf32>
    %450 = arith.addf %444, %449 : vector<2x8x15xf32>
    %451 = vector.extract_strided_slice %417 {offsets = [0, 0, 5], sizes = [2, 8, 1], strides = [1, 1, 1]} : vector<2x8x8xf32> to vector<2x8x1xf32>
    %452 = vector.shape_cast %126 : vector<8x15xf32> to vector<1x8x15xf32>
    %453 = vector.broadcast %451 : vector<2x8x1xf32> to vector<2x8x15xf32>
    %454 = vector.broadcast %452 : vector<1x8x15xf32> to vector<2x8x15xf32>
    %455 = arith.mulf %453, %454 : vector<2x8x15xf32>
    %456 = arith.addf %450, %455 : vector<2x8x15xf32>
    %457 = vector.extract_strided_slice %417 {offsets = [0, 0, 6], sizes = [2, 8, 1], strides = [1, 1, 1]} : vector<2x8x8xf32> to vector<2x8x1xf32>
    %458 = vector.shape_cast %133 : vector<8x15xf32> to vector<1x8x15xf32>
    %459 = vector.broadcast %457 : vector<2x8x1xf32> to vector<2x8x15xf32>
    %460 = vector.broadcast %458 : vector<1x8x15xf32> to vector<2x8x15xf32>
    %461 = arith.mulf %459, %460 : vector<2x8x15xf32>
    %462 = arith.addf %456, %461 : vector<2x8x15xf32>
    %463 = vector.extract_strided_slice %417 {offsets = [0, 0, 7], sizes = [2, 8, 1], strides = [1, 1, 1]} : vector<2x8x8xf32> to vector<2x8x1xf32>
    %464 = vector.shape_cast %140 : vector<8x15xf32> to vector<1x8x15xf32>
    %465 = vector.broadcast %463 : vector<2x8x1xf32> to vector<2x8x15xf32>
    %466 = vector.broadcast %464 : vector<1x8x15xf32> to vector<2x8x15xf32>
    %467 = arith.mulf %465, %466 : vector<2x8x15xf32>
    %468 = arith.addf %462, %467 : vector<2x8x15xf32>
    %469 = vector.shape_cast %468 : vector<2x8x15xf32> to vector<16x15xf32>
    %cst_50 = arith.constant dense<0.000000e+00> : vector<16x8xf32>
    %470 = tpu.matmul %469, %15, %cst_50 {dimension_numbers = #tpu.dot_dimension_numbers<[1], [0], [0], [1], [0, 0, 1, 1], [], []>} : vector<16x15xf32>, vector<15x8xf32>, vector<16x8xf32> -> vector<16x8xf32>
    %471 = arith.addf %419, %470 : vector<16x8xf32>
    %472 = arith.truncf %471 : vector<16x8xf32> to vector<16x8xbf16>
    %473 = vector.extract_strided_slice %17 {offsets = [8, 0], sizes = [8, 32], strides = [1, 1]} : vector<32x32xbf16> to vector<8x32xbf16>
    %cst_51 = arith.constant dense<0.000000e+00> : vector<16x32xf32>
    %474 = tpu.matmul %472, %473, %cst_51 {dimension_numbers = #tpu.dot_dimension_numbers<[1], [0], [0], [1], [0, 0, 1, 1], [], []>} : vector<16x8xbf16>, vector<8x32xbf16>, vector<16x32xf32> -> vector<16x32xf32>
    %475 = arith.addf %308, %474 : vector<16x32xf32>
    %476 = vector.extract_strided_slice %11 {offsets = [0, 16], sizes = [16, 8], strides = [1, 1]} : vector<16x96xf32> to vector<16x8xf32>
    %477 = vector.extract_strided_slice %11 {offsets = [0, 48], sizes = [16, 8], strides = [1, 1]} : vector<16x96xf32> to vector<16x8xf32>
    %478 = vector.extract_strided_slice %11 {offsets = [0, 80], sizes = [16, 8], strides = [1, 1]} : vector<16x96xf32> to vector<16x8xf32>
    %479 = vector.shape_cast %476 : vector<16x8xf32> to vector<2x8x8xf32>
    %480 = vector.shape_cast %477 : vector<16x8xf32> to vector<2x8x8xf32>
    %481 = vector.shape_cast %478 : vector<16x8xf32> to vector<2x8x8xf32>
    "tpu.trace_start"() <{level = 10 : i32, message = "bqd,bkd->bqk"}> : () -> ()
    %cst_52 = arith.constant dense<0.000000e+00> : vector<2x8x8xf32>
    %482 = tpu.matmul %479, %480, %cst_52 {dimension_numbers = #tpu.dot_dimension_numbers<[2], [2], [1], [1], [0, 0, 0, 1, 1, 1], [0], [0]>} : vector<2x8x8xf32>, vector<2x8x8xf32>, vector<2x8x8xf32> -> vector<2x8x8xf32>
    "tpu.trace_stop"() : () -> ()
    %cst_53 = arith.constant dense<0.000000e+00> : vector<16x15xf32>
    %483 = tpu.matmul %476, %13, %cst_53 {dimension_numbers = #tpu.dot_dimension_numbers<[1], [0], [0], [1], [0, 0, 1, 1], [], []>} : vector<16x8xf32>, vector<8x15xf32>, vector<16x15xf32> -> vector<16x15xf32>
    %484 = vector.shape_cast %483 : vector<16x15xf32> to vector<2x8x15xf32>
    %485 = vector.extract_strided_slice %484 {offsets = [0, 0, 0], sizes = [2, 8, 1], strides = [1, 1, 1]} : vector<2x8x15xf32> to vector<2x8x1xf32>
    %486 = vector.shape_cast %26 : vector<8x8xf32> to vector<1x8x8xf32>
    %487 = vector.broadcast %485 : vector<2x8x1xf32> to vector<2x8x8xf32>
    %488 = vector.broadcast %486 : vector<1x8x8xf32> to vector<2x8x8xf32>
    %489 = arith.mulf %487, %488 : vector<2x8x8xf32>
    %490 = arith.addf %482, %489 : vector<2x8x8xf32>
    %491 = vector.extract_strided_slice %484 {offsets = [0, 0, 1], sizes = [2, 8, 1], strides = [1, 1, 1]} : vector<2x8x15xf32> to vector<2x8x1xf32>
    %492 = vector.shape_cast %30 : vector<8x8xf32> to vector<1x8x8xf32>
    %493 = vector.broadcast %491 : vector<2x8x1xf32> to vector<2x8x8xf32>
    %494 = vector.broadcast %492 : vector<1x8x8xf32> to vector<2x8x8xf32>
    %495 = arith.mulf %493, %494 : vector<2x8x8xf32>
    %496 = arith.addf %490, %495 : vector<2x8x8xf32>
    %497 = vector.extract_strided_slice %484 {offsets = [0, 0, 2], sizes = [2, 8, 1], strides = [1, 1, 1]} : vector<2x8x15xf32> to vector<2x8x1xf32>
    %498 = vector.shape_cast %34 : vector<8x8xf32> to vector<1x8x8xf32>
    %499 = vector.broadcast %497 : vector<2x8x1xf32> to vector<2x8x8xf32>
    %500 = vector.broadcast %498 : vector<1x8x8xf32> to vector<2x8x8xf32>
    %501 = arith.mulf %499, %500 : vector<2x8x8xf32>
    %502 = arith.addf %496, %501 : vector<2x8x8xf32>
    %503 = vector.extract_strided_slice %484 {offsets = [0, 0, 3], sizes = [2, 8, 1], strides = [1, 1, 1]} : vector<2x8x15xf32> to vector<2x8x1xf32>
    %504 = vector.shape_cast %38 : vector<8x8xf32> to vector<1x8x8xf32>
    %505 = vector.broadcast %503 : vector<2x8x1xf32> to vector<2x8x8xf32>
    %506 = vector.broadcast %504 : vector<1x8x8xf32> to vector<2x8x8xf32>
    %507 = arith.mulf %505, %506 : vector<2x8x8xf32>
    %508 = arith.addf %502, %507 : vector<2x8x8xf32>
    %509 = vector.extract_strided_slice %484 {offsets = [0, 0, 4], sizes = [2, 8, 1], strides = [1, 1, 1]} : vector<2x8x15xf32> to vector<2x8x1xf32>
    %510 = vector.shape_cast %42 : vector<8x8xf32> to vector<1x8x8xf32>
    %511 = vector.broadcast %509 : vector<2x8x1xf32> to vector<2x8x8xf32>
    %512 = vector.broadcast %510 : vector<1x8x8xf32> to vector<2x8x8xf32>
    %513 = arith.mulf %511, %512 : vector<2x8x8xf32>
    %514 = arith.addf %508, %513 : vector<2x8x8xf32>
    %515 = vector.extract_strided_slice %484 {offsets = [0, 0, 5], sizes = [2, 8, 1], strides = [1, 1, 1]} : vector<2x8x15xf32> to vector<2x8x1xf32>
    %516 = vector.shape_cast %46 : vector<8x8xf32> to vector<1x8x8xf32>
    %517 = vector.broadcast %515 : vector<2x8x1xf32> to vector<2x8x8xf32>
    %518 = vector.broadcast %516 : vector<1x8x8xf32> to vector<2x8x8xf32>
    %519 = arith.mulf %517, %518 : vector<2x8x8xf32>
    %520 = arith.addf %514, %519 : vector<2x8x8xf32>
    %521 = vector.extract_strided_slice %484 {offsets = [0, 0, 6], sizes = [2, 8, 1], strides = [1, 1, 1]} : vector<2x8x15xf32> to vector<2x8x1xf32>
    %522 = vector.shape_cast %50 : vector<8x8xf32> to vector<1x8x8xf32>
    %523 = vector.broadcast %521 : vector<2x8x1xf32> to vector<2x8x8xf32>
    %524 = vector.broadcast %522 : vector<1x8x8xf32> to vector<2x8x8xf32>
    %525 = arith.mulf %523, %524 : vector<2x8x8xf32>
    %526 = arith.addf %520, %525 : vector<2x8x8xf32>
    %527 = vector.extract_strided_slice %484 {offsets = [0, 0, 7], sizes = [2, 8, 1], strides = [1, 1, 1]} : vector<2x8x15xf32> to vector<2x8x1xf32>
    %528 = vector.shape_cast %54 : vector<8x8xf32> to vector<1x8x8xf32>
    %529 = vector.broadcast %527 : vector<2x8x1xf32> to vector<2x8x8xf32>
    %530 = vector.broadcast %528 : vector<1x8x8xf32> to vector<2x8x8xf32>
    %531 = arith.mulf %529, %530 : vector<2x8x8xf32>
    %532 = arith.addf %526, %531 : vector<2x8x8xf32>
    %533 = vector.extract_strided_slice %484 {offsets = [0, 0, 8], sizes = [2, 8, 1], strides = [1, 1, 1]} : vector<2x8x15xf32> to vector<2x8x1xf32>
    %534 = vector.shape_cast %58 : vector<8x8xf32> to vector<1x8x8xf32>
    %535 = vector.broadcast %533 : vector<2x8x1xf32> to vector<2x8x8xf32>
    %536 = vector.broadcast %534 : vector<1x8x8xf32> to vector<2x8x8xf32>
    %537 = arith.mulf %535, %536 : vector<2x8x8xf32>
    %538 = arith.addf %532, %537 : vector<2x8x8xf32>
    %539 = vector.extract_strided_slice %484 {offsets = [0, 0, 9], sizes = [2, 8, 1], strides = [1, 1, 1]} : vector<2x8x15xf32> to vector<2x8x1xf32>
    %540 = vector.shape_cast %62 : vector<8x8xf32> to vector<1x8x8xf32>
    %541 = vector.broadcast %539 : vector<2x8x1xf32> to vector<2x8x8xf32>
    %542 = vector.broadcast %540 : vector<1x8x8xf32> to vector<2x8x8xf32>
    %543 = arith.mulf %541, %542 : vector<2x8x8xf32>
    %544 = arith.addf %538, %543 : vector<2x8x8xf32>
    %545 = vector.extract_strided_slice %484 {offsets = [0, 0, 10], sizes = [2, 8, 1], strides = [1, 1, 1]} : vector<2x8x15xf32> to vector<2x8x1xf32>
    %546 = vector.shape_cast %66 : vector<8x8xf32> to vector<1x8x8xf32>
    %547 = vector.broadcast %545 : vector<2x8x1xf32> to vector<2x8x8xf32>
    %548 = vector.broadcast %546 : vector<1x8x8xf32> to vector<2x8x8xf32>
    %549 = arith.mulf %547, %548 : vector<2x8x8xf32>
    %550 = arith.addf %544, %549 : vector<2x8x8xf32>
    %551 = vector.extract_strided_slice %484 {offsets = [0, 0, 11], sizes = [2, 8, 1], strides = [1, 1, 1]} : vector<2x8x15xf32> to vector<2x8x1xf32>
    %552 = vector.shape_cast %70 : vector<8x8xf32> to vector<1x8x8xf32>
    %553 = vector.broadcast %551 : vector<2x8x1xf32> to vector<2x8x8xf32>
    %554 = vector.broadcast %552 : vector<1x8x8xf32> to vector<2x8x8xf32>
    %555 = arith.mulf %553, %554 : vector<2x8x8xf32>
    %556 = arith.addf %550, %555 : vector<2x8x8xf32>
    %557 = vector.extract_strided_slice %484 {offsets = [0, 0, 12], sizes = [2, 8, 1], strides = [1, 1, 1]} : vector<2x8x15xf32> to vector<2x8x1xf32>
    %558 = vector.shape_cast %74 : vector<8x8xf32> to vector<1x8x8xf32>
    %559 = vector.broadcast %557 : vector<2x8x1xf32> to vector<2x8x8xf32>
    %560 = vector.broadcast %558 : vector<1x8x8xf32> to vector<2x8x8xf32>
    %561 = arith.mulf %559, %560 : vector<2x8x8xf32>
    %562 = arith.addf %556, %561 : vector<2x8x8xf32>
    %563 = vector.extract_strided_slice %484 {offsets = [0, 0, 13], sizes = [2, 8, 1], strides = [1, 1, 1]} : vector<2x8x15xf32> to vector<2x8x1xf32>
    %564 = vector.shape_cast %78 : vector<8x8xf32> to vector<1x8x8xf32>
    %565 = vector.broadcast %563 : vector<2x8x1xf32> to vector<2x8x8xf32>
    %566 = vector.broadcast %564 : vector<1x8x8xf32> to vector<2x8x8xf32>
    %567 = arith.mulf %565, %566 : vector<2x8x8xf32>
    %568 = arith.addf %562, %567 : vector<2x8x8xf32>
    %569 = vector.extract_strided_slice %484 {offsets = [0, 0, 14], sizes = [2, 8, 1], strides = [1, 1, 1]} : vector<2x8x15xf32> to vector<2x8x1xf32>
    %570 = vector.shape_cast %82 : vector<8x8xf32> to vector<1x8x8xf32>
    %571 = vector.broadcast %569 : vector<2x8x1xf32> to vector<2x8x8xf32>
    %572 = vector.broadcast %570 : vector<1x8x8xf32> to vector<2x8x8xf32>
    %573 = arith.mulf %571, %572 : vector<2x8x8xf32>
    %574 = arith.addf %568, %573 : vector<2x8x8xf32>
    %cst_54 = arith.constant dense<0xFF800000> : vector<2x8xf32>
    %575 = vector.multi_reduction <maximumf>, %574, %cst_54 [2] : vector<2x8x8xf32> to vector<2x8xf32>
    %576 = vector.shape_cast %575 : vector<2x8xf32> to vector<2x8x1xf32>
    %577 = vector.broadcast %576 : vector<2x8x1xf32> to vector<2x8x8xf32>
    %578 = arith.subf %574, %577 : vector<2x8x8xf32>
    %579 = math.exp %578 : vector<2x8x8xf32>
    %cst_55 = arith.constant dense<0.000000e+00> : vector<2x8xf32>
    %580 = vector.multi_reduction <add>, %579, %cst_55 [2] : vector<2x8x8xf32> to vector<2x8xf32>
    %581 = vector.shape_cast %580 : vector<2x8xf32> to vector<2x8x1xf32>
    %582 = tpu.reciprocal %581 {approx = true} : vector<2x8x1xf32> -> vector<2x8x1xf32>
    %583 = vector.broadcast %582 : vector<2x8x1xf32> to vector<2x8x8xf32>
    %584 = arith.mulf %579, %583 : vector<2x8x8xf32>
    "tpu.trace_start"() <{level = 10 : i32, message = "bqk,bkd->bqd"}> : () -> ()
    %cst_56 = arith.constant dense<0.000000e+00> : vector<2x8x8xf32>
    %585 = tpu.matmul %584, %481, %cst_56 {dimension_numbers = #tpu.dot_dimension_numbers<[2], [1], [1], [2], [0, 0, 0, 1, 1, 2], [0], [0]>} : vector<2x8x8xf32>, vector<2x8x8xf32>, vector<2x8x8xf32> -> vector<2x8x8xf32>
    "tpu.trace_stop"() : () -> ()
    %586 = vector.shape_cast %585 : vector<2x8x8xf32> to vector<16x8xf32>
    %cst_57 = arith.constant 0.000000e+00 : f32
    %587 = vector.broadcast %cst_57 : f32 to vector<2x8x15xf32>
    %588 = vector.extract_strided_slice %584 {offsets = [0, 0, 0], sizes = [2, 8, 1], strides = [1, 1, 1]} : vector<2x8x8xf32> to vector<2x8x1xf32>
    %589 = vector.shape_cast %91 : vector<8x15xf32> to vector<1x8x15xf32>
    %590 = vector.broadcast %588 : vector<2x8x1xf32> to vector<2x8x15xf32>
    %591 = vector.broadcast %589 : vector<1x8x15xf32> to vector<2x8x15xf32>
    %592 = arith.mulf %590, %591 : vector<2x8x15xf32>
    %593 = arith.addf %587, %592 : vector<2x8x15xf32>
    %594 = vector.extract_strided_slice %584 {offsets = [0, 0, 1], sizes = [2, 8, 1], strides = [1, 1, 1]} : vector<2x8x8xf32> to vector<2x8x1xf32>
    %595 = vector.shape_cast %98 : vector<8x15xf32> to vector<1x8x15xf32>
    %596 = vector.broadcast %594 : vector<2x8x1xf32> to vector<2x8x15xf32>
    %597 = vector.broadcast %595 : vector<1x8x15xf32> to vector<2x8x15xf32>
    %598 = arith.mulf %596, %597 : vector<2x8x15xf32>
    %599 = arith.addf %593, %598 : vector<2x8x15xf32>
    %600 = vector.extract_strided_slice %584 {offsets = [0, 0, 2], sizes = [2, 8, 1], strides = [1, 1, 1]} : vector<2x8x8xf32> to vector<2x8x1xf32>
    %601 = vector.shape_cast %105 : vector<8x15xf32> to vector<1x8x15xf32>
    %602 = vector.broadcast %600 : vector<2x8x1xf32> to vector<2x8x15xf32>
    %603 = vector.broadcast %601 : vector<1x8x15xf32> to vector<2x8x15xf32>
    %604 = arith.mulf %602, %603 : vector<2x8x15xf32>
    %605 = arith.addf %599, %604 : vector<2x8x15xf32>
    %606 = vector.extract_strided_slice %584 {offsets = [0, 0, 3], sizes = [2, 8, 1], strides = [1, 1, 1]} : vector<2x8x8xf32> to vector<2x8x1xf32>
    %607 = vector.shape_cast %112 : vector<8x15xf32> to vector<1x8x15xf32>
    %608 = vector.broadcast %606 : vector<2x8x1xf32> to vector<2x8x15xf32>
    %609 = vector.broadcast %607 : vector<1x8x15xf32> to vector<2x8x15xf32>
    %610 = arith.mulf %608, %609 : vector<2x8x15xf32>
    %611 = arith.addf %605, %610 : vector<2x8x15xf32>
    %612 = vector.extract_strided_slice %584 {offsets = [0, 0, 4], sizes = [2, 8, 1], strides = [1, 1, 1]} : vector<2x8x8xf32> to vector<2x8x1xf32>
    %613 = vector.shape_cast %119 : vector<8x15xf32> to vector<1x8x15xf32>
    %614 = vector.broadcast %612 : vector<2x8x1xf32> to vector<2x8x15xf32>
    %615 = vector.broadcast %613 : vector<1x8x15xf32> to vector<2x8x15xf32>
    %616 = arith.mulf %614, %615 : vector<2x8x15xf32>
    %617 = arith.addf %611, %616 : vector<2x8x15xf32>
    %618 = vector.extract_strided_slice %584 {offsets = [0, 0, 5], sizes = [2, 8, 1], strides = [1, 1, 1]} : vector<2x8x8xf32> to vector<2x8x1xf32>
    %619 = vector.shape_cast %126 : vector<8x15xf32> to vector<1x8x15xf32>
    %620 = vector.broadcast %618 : vector<2x8x1xf32> to vector<2x8x15xf32>
    %621 = vector.broadcast %619 : vector<1x8x15xf32> to vector<2x8x15xf32>
    %622 = arith.mulf %620, %621 : vector<2x8x15xf32>
    %623 = arith.addf %617, %622 : vector<2x8x15xf32>
    %624 = vector.extract_strided_slice %584 {offsets = [0, 0, 6], sizes = [2, 8, 1], strides = [1, 1, 1]} : vector<2x8x8xf32> to vector<2x8x1xf32>
    %625 = vector.shape_cast %133 : vector<8x15xf32> to vector<1x8x15xf32>
    %626 = vector.broadcast %624 : vector<2x8x1xf32> to vector<2x8x15xf32>
    %627 = vector.broadcast %625 : vector<1x8x15xf32> to vector<2x8x15xf32>
    %628 = arith.mulf %626, %627 : vector<2x8x15xf32>
    %629 = arith.addf %623, %628 : vector<2x8x15xf32>
    %630 = vector.extract_strided_slice %584 {offsets = [0, 0, 7], sizes = [2, 8, 1], strides = [1, 1, 1]} : vector<2x8x8xf32> to vector<2x8x1xf32>
    %631 = vector.shape_cast %140 : vector<8x15xf32> to vector<1x8x15xf32>
    %632 = vector.broadcast %630 : vector<2x8x1xf32> to vector<2x8x15xf32>
    %633 = vector.broadcast %631 : vector<1x8x15xf32> to vector<2x8x15xf32>
    %634 = arith.mulf %632, %633 : vector<2x8x15xf32>
    %635 = arith.addf %629, %634 : vector<2x8x15xf32>
    %636 = vector.shape_cast %635 : vector<2x8x15xf32> to vector<16x15xf32>
    %cst_58 = arith.constant dense<0.000000e+00> : vector<16x8xf32>
    %637 = tpu.matmul %636, %15, %cst_58 {dimension_numbers = #tpu.dot_dimension_numbers<[1], [0], [0], [1], [0, 0, 1, 1], [], []>} : vector<16x15xf32>, vector<15x8xf32>, vector<16x8xf32> -> vector<16x8xf32>
    %638 = arith.addf %586, %637 : vector<16x8xf32>
    %639 = arith.truncf %638 : vector<16x8xf32> to vector<16x8xbf16>
    %640 = vector.extract_strided_slice %17 {offsets = [16, 0], sizes = [8, 32], strides = [1, 1]} : vector<32x32xbf16> to vector<8x32xbf16>
    %cst_59 = arith.constant dense<0.000000e+00> : vector<16x32xf32>
    %641 = tpu.matmul %639, %640, %cst_59 {dimension_numbers = #tpu.dot_dimension_numbers<[1], [0], [0], [1], [0, 0, 1, 1], [], []>} : vector<16x8xbf16>, vector<8x32xbf16>, vector<16x32xf32> -> vector<16x32xf32>
    %642 = arith.addf %475, %641 : vector<16x32xf32>
    %643 = vector.extract_strided_slice %11 {offsets = [0, 24], sizes = [16, 8], strides = [1, 1]} : vector<16x96xf32> to vector<16x8xf32>
    %644 = vector.extract_strided_slice %11 {offsets = [0, 56], sizes = [16, 8], strides = [1, 1]} : vector<16x96xf32> to vector<16x8xf32>
    %645 = vector.extract_strided_slice %11 {offsets = [0, 88], sizes = [16, 8], strides = [1, 1]} : vector<16x96xf32> to vector<16x8xf32>
    %646 = vector.shape_cast %643 : vector<16x8xf32> to vector<2x8x8xf32>
    %647 = vector.shape_cast %644 : vector<16x8xf32> to vector<2x8x8xf32>
    %648 = vector.shape_cast %645 : vector<16x8xf32> to vector<2x8x8xf32>
    "tpu.trace_start"() <{level = 10 : i32, message = "bqd,bkd->bqk"}> : () -> ()
    %cst_60 = arith.constant dense<0.000000e+00> : vector<2x8x8xf32>
    %649 = tpu.matmul %646, %647, %cst_60 {dimension_numbers = #tpu.dot_dimension_numbers<[2], [2], [1], [1], [0, 0, 0, 1, 1, 1], [0], [0]>} : vector<2x8x8xf32>, vector<2x8x8xf32>, vector<2x8x8xf32> -> vector<2x8x8xf32>
    "tpu.trace_stop"() : () -> ()
    %cst_61 = arith.constant dense<0.000000e+00> : vector<16x15xf32>
    %650 = tpu.matmul %643, %13, %cst_61 {dimension_numbers = #tpu.dot_dimension_numbers<[1], [0], [0], [1], [0, 0, 1, 1], [], []>} : vector<16x8xf32>, vector<8x15xf32>, vector<16x15xf32> -> vector<16x15xf32>
    %651 = vector.shape_cast %650 : vector<16x15xf32> to vector<2x8x15xf32>
    %652 = vector.extract_strided_slice %651 {offsets = [0, 0, 0], sizes = [2, 8, 1], strides = [1, 1, 1]} : vector<2x8x15xf32> to vector<2x8x1xf32>
    %653 = vector.shape_cast %26 : vector<8x8xf32> to vector<1x8x8xf32>
    %654 = vector.broadcast %652 : vector<2x8x1xf32> to vector<2x8x8xf32>
    %655 = vector.broadcast %653 : vector<1x8x8xf32> to vector<2x8x8xf32>
    %656 = arith.mulf %654, %655 : vector<2x8x8xf32>
    %657 = arith.addf %649, %656 : vector<2x8x8xf32>
    %658 = vector.extract_strided_slice %651 {offsets = [0, 0, 1], sizes = [2, 8, 1], strides = [1, 1, 1]} : vector<2x8x15xf32> to vector<2x8x1xf32>
    %659 = vector.shape_cast %30 : vector<8x8xf32> to vector<1x8x8xf32>
    %660 = vector.broadcast %658 : vector<2x8x1xf32> to vector<2x8x8xf32>
    %661 = vector.broadcast %659 : vector<1x8x8xf32> to vector<2x8x8xf32>
    %662 = arith.mulf %660, %661 : vector<2x8x8xf32>
    %663 = arith.addf %657, %662 : vector<2x8x8xf32>
    %664 = vector.extract_strided_slice %651 {offsets = [0, 0, 2], sizes = [2, 8, 1], strides = [1, 1, 1]} : vector<2x8x15xf32> to vector<2x8x1xf32>
    %665 = vector.shape_cast %34 : vector<8x8xf32> to vector<1x8x8xf32>
    %666 = vector.broadcast %664 : vector<2x8x1xf32> to vector<2x8x8xf32>
    %667 = vector.broadcast %665 : vector<1x8x8xf32> to vector<2x8x8xf32>
    %668 = arith.mulf %666, %667 : vector<2x8x8xf32>
    %669 = arith.addf %663, %668 : vector<2x8x8xf32>
    %670 = vector.extract_strided_slice %651 {offsets = [0, 0, 3], sizes = [2, 8, 1], strides = [1, 1, 1]} : vector<2x8x15xf32> to vector<2x8x1xf32>
    %671 = vector.shape_cast %38 : vector<8x8xf32> to vector<1x8x8xf32>
    %672 = vector.broadcast %670 : vector<2x8x1xf32> to vector<2x8x8xf32>
    %673 = vector.broadcast %671 : vector<1x8x8xf32> to vector<2x8x8xf32>
    %674 = arith.mulf %672, %673 : vector<2x8x8xf32>
    %675 = arith.addf %669, %674 : vector<2x8x8xf32>
    %676 = vector.extract_strided_slice %651 {offsets = [0, 0, 4], sizes = [2, 8, 1], strides = [1, 1, 1]} : vector<2x8x15xf32> to vector<2x8x1xf32>
    %677 = vector.shape_cast %42 : vector<8x8xf32> to vector<1x8x8xf32>
    %678 = vector.broadcast %676 : vector<2x8x1xf32> to vector<2x8x8xf32>
    %679 = vector.broadcast %677 : vector<1x8x8xf32> to vector<2x8x8xf32>
    %680 = arith.mulf %678, %679 : vector<2x8x8xf32>
    %681 = arith.addf %675, %680 : vector<2x8x8xf32>
    %682 = vector.extract_strided_slice %651 {offsets = [0, 0, 5], sizes = [2, 8, 1], strides = [1, 1, 1]} : vector<2x8x15xf32> to vector<2x8x1xf32>
    %683 = vector.shape_cast %46 : vector<8x8xf32> to vector<1x8x8xf32>
    %684 = vector.broadcast %682 : vector<2x8x1xf32> to vector<2x8x8xf32>
    %685 = vector.broadcast %683 : vector<1x8x8xf32> to vector<2x8x8xf32>
    %686 = arith.mulf %684, %685 : vector<2x8x8xf32>
    %687 = arith.addf %681, %686 : vector<2x8x8xf32>
    %688 = vector.extract_strided_slice %651 {offsets = [0, 0, 6], sizes = [2, 8, 1], strides = [1, 1, 1]} : vector<2x8x15xf32> to vector<2x8x1xf32>
    %689 = vector.shape_cast %50 : vector<8x8xf32> to vector<1x8x8xf32>
    %690 = vector.broadcast %688 : vector<2x8x1xf32> to vector<2x8x8xf32>
    %691 = vector.broadcast %689 : vector<1x8x8xf32> to vector<2x8x8xf32>
    %692 = arith.mulf %690, %691 : vector<2x8x8xf32>
    %693 = arith.addf %687, %692 : vector<2x8x8xf32>
    %694 = vector.extract_strided_slice %651 {offsets = [0, 0, 7], sizes = [2, 8, 1], strides = [1, 1, 1]} : vector<2x8x15xf32> to vector<2x8x1xf32>
    %695 = vector.shape_cast %54 : vector<8x8xf32> to vector<1x8x8xf32>
    %696 = vector.broadcast %694 : vector<2x8x1xf32> to vector<2x8x8xf32>
    %697 = vector.broadcast %695 : vector<1x8x8xf32> to vector<2x8x8xf32>
    %698 = arith.mulf %696, %697 : vector<2x8x8xf32>
    %699 = arith.addf %693, %698 : vector<2x8x8xf32>
    %700 = vector.extract_strided_slice %651 {offsets = [0, 0, 8], sizes = [2, 8, 1], strides = [1, 1, 1]} : vector<2x8x15xf32> to vector<2x8x1xf32>
    %701 = vector.shape_cast %58 : vector<8x8xf32> to vector<1x8x8xf32>
    %702 = vector.broadcast %700 : vector<2x8x1xf32> to vector<2x8x8xf32>
    %703 = vector.broadcast %701 : vector<1x8x8xf32> to vector<2x8x8xf32>
    %704 = arith.mulf %702, %703 : vector<2x8x8xf32>
    %705 = arith.addf %699, %704 : vector<2x8x8xf32>
    %706 = vector.extract_strided_slice %651 {offsets = [0, 0, 9], sizes = [2, 8, 1], strides = [1, 1, 1]} : vector<2x8x15xf32> to vector<2x8x1xf32>
    %707 = vector.shape_cast %62 : vector<8x8xf32> to vector<1x8x8xf32>
    %708 = vector.broadcast %706 : vector<2x8x1xf32> to vector<2x8x8xf32>
    %709 = vector.broadcast %707 : vector<1x8x8xf32> to vector<2x8x8xf32>
    %710 = arith.mulf %708, %709 : vector<2x8x8xf32>
    %711 = arith.addf %705, %710 : vector<2x8x8xf32>
    %712 = vector.extract_strided_slice %651 {offsets = [0, 0, 10], sizes = [2, 8, 1], strides = [1, 1, 1]} : vector<2x8x15xf32> to vector<2x8x1xf32>
    %713 = vector.shape_cast %66 : vector<8x8xf32> to vector<1x8x8xf32>
    %714 = vector.broadcast %712 : vector<2x8x1xf32> to vector<2x8x8xf32>
    %715 = vector.broadcast %713 : vector<1x8x8xf32> to vector<2x8x8xf32>
    %716 = arith.mulf %714, %715 : vector<2x8x8xf32>
    %717 = arith.addf %711, %716 : vector<2x8x8xf32>
    %718 = vector.extract_strided_slice %651 {offsets = [0, 0, 11], sizes = [2, 8, 1], strides = [1, 1, 1]} : vector<2x8x15xf32> to vector<2x8x1xf32>
    %719 = vector.shape_cast %70 : vector<8x8xf32> to vector<1x8x8xf32>
    %720 = vector.broadcast %718 : vector<2x8x1xf32> to vector<2x8x8xf32>
    %721 = vector.broadcast %719 : vector<1x8x8xf32> to vector<2x8x8xf32>
    %722 = arith.mulf %720, %721 : vector<2x8x8xf32>
    %723 = arith.addf %717, %722 : vector<2x8x8xf32>
    %724 = vector.extract_strided_slice %651 {offsets = [0, 0, 12], sizes = [2, 8, 1], strides = [1, 1, 1]} : vector<2x8x15xf32> to vector<2x8x1xf32>
    %725 = vector.shape_cast %74 : vector<8x8xf32> to vector<1x8x8xf32>
    %726 = vector.broadcast %724 : vector<2x8x1xf32> to vector<2x8x8xf32>
    %727 = vector.broadcast %725 : vector<1x8x8xf32> to vector<2x8x8xf32>
    %728 = arith.mulf %726, %727 : vector<2x8x8xf32>
    %729 = arith.addf %723, %728 : vector<2x8x8xf32>
    %730 = vector.extract_strided_slice %651 {offsets = [0, 0, 13], sizes = [2, 8, 1], strides = [1, 1, 1]} : vector<2x8x15xf32> to vector<2x8x1xf32>
    %731 = vector.shape_cast %78 : vector<8x8xf32> to vector<1x8x8xf32>
    %732 = vector.broadcast %730 : vector<2x8x1xf32> to vector<2x8x8xf32>
    %733 = vector.broadcast %731 : vector<1x8x8xf32> to vector<2x8x8xf32>
    %734 = arith.mulf %732, %733 : vector<2x8x8xf32>
    %735 = arith.addf %729, %734 : vector<2x8x8xf32>
    %736 = vector.extract_strided_slice %651 {offsets = [0, 0, 14], sizes = [2, 8, 1], strides = [1, 1, 1]} : vector<2x8x15xf32> to vector<2x8x1xf32>
    %737 = vector.shape_cast %82 : vector<8x8xf32> to vector<1x8x8xf32>
    %738 = vector.broadcast %736 : vector<2x8x1xf32> to vector<2x8x8xf32>
    %739 = vector.broadcast %737 : vector<1x8x8xf32> to vector<2x8x8xf32>
    %740 = arith.mulf %738, %739 : vector<2x8x8xf32>
    %741 = arith.addf %735, %740 : vector<2x8x8xf32>
    %cst_62 = arith.constant dense<0xFF800000> : vector<2x8xf32>
    %742 = vector.multi_reduction <maximumf>, %741, %cst_62 [2] : vector<2x8x8xf32> to vector<2x8xf32>
    %743 = vector.shape_cast %742 : vector<2x8xf32> to vector<2x8x1xf32>
    %744 = vector.broadcast %743 : vector<2x8x1xf32> to vector<2x8x8xf32>
    %745 = arith.subf %741, %744 : vector<2x8x8xf32>
    %746 = math.exp %745 : vector<2x8x8xf32>
    %cst_63 = arith.constant dense<0.000000e+00> : vector<2x8xf32>
    %747 = vector.multi_reduction <add>, %746, %cst_63 [2] : vector<2x8x8xf32> to vector<2x8xf32>
    %748 = vector.shape_cast %747 : vector<2x8xf32> to vector<2x8x1xf32>
    %749 = tpu.reciprocal %748 {approx = true} : vector<2x8x1xf32> -> vector<2x8x1xf32>
    %750 = vector.broadcast %749 : vector<2x8x1xf32> to vector<2x8x8xf32>
    %751 = arith.mulf %746, %750 : vector<2x8x8xf32>
    "tpu.trace_start"() <{level = 10 : i32, message = "bqk,bkd->bqd"}> : () -> ()
    %cst_64 = arith.constant dense<0.000000e+00> : vector<2x8x8xf32>
    %752 = tpu.matmul %751, %648, %cst_64 {dimension_numbers = #tpu.dot_dimension_numbers<[2], [1], [1], [2], [0, 0, 0, 1, 1, 2], [0], [0]>} : vector<2x8x8xf32>, vector<2x8x8xf32>, vector<2x8x8xf32> -> vector<2x8x8xf32>
    "tpu.trace_stop"() : () -> ()
    %753 = vector.shape_cast %752 : vector<2x8x8xf32> to vector<16x8xf32>
    %cst_65 = arith.constant 0.000000e+00 : f32
    %754 = vector.broadcast %cst_65 : f32 to vector<2x8x15xf32>
    %755 = vector.extract_strided_slice %751 {offsets = [0, 0, 0], sizes = [2, 8, 1], strides = [1, 1, 1]} : vector<2x8x8xf32> to vector<2x8x1xf32>
    %756 = vector.shape_cast %91 : vector<8x15xf32> to vector<1x8x15xf32>
    %757 = vector.broadcast %755 : vector<2x8x1xf32> to vector<2x8x15xf32>
    %758 = vector.broadcast %756 : vector<1x8x15xf32> to vector<2x8x15xf32>
    %759 = arith.mulf %757, %758 : vector<2x8x15xf32>
    %760 = arith.addf %754, %759 : vector<2x8x15xf32>
    %761 = vector.extract_strided_slice %751 {offsets = [0, 0, 1], sizes = [2, 8, 1], strides = [1, 1, 1]} : vector<2x8x8xf32> to vector<2x8x1xf32>
    %762 = vector.shape_cast %98 : vector<8x15xf32> to vector<1x8x15xf32>
    %763 = vector.broadcast %761 : vector<2x8x1xf32> to vector<2x8x15xf32>
    %764 = vector.broadcast %762 : vector<1x8x15xf32> to vector<2x8x15xf32>
    %765 = arith.mulf %763, %764 : vector<2x8x15xf32>
    %766 = arith.addf %760, %765 : vector<2x8x15xf32>
    %767 = vector.extract_strided_slice %751 {offsets = [0, 0, 2], sizes = [2, 8, 1], strides = [1, 1, 1]} : vector<2x8x8xf32> to vector<2x8x1xf32>
    %768 = vector.shape_cast %105 : vector<8x15xf32> to vector<1x8x15xf32>
    %769 = vector.broadcast %767 : vector<2x8x1xf32> to vector<2x8x15xf32>
    %770 = vector.broadcast %768 : vector<1x8x15xf32> to vector<2x8x15xf32>
    %771 = arith.mulf %769, %770 : vector<2x8x15xf32>
    %772 = arith.addf %766, %771 : vector<2x8x15xf32>
    %773 = vector.extract_strided_slice %751 {offsets = [0, 0, 3], sizes = [2, 8, 1], strides = [1, 1, 1]} : vector<2x8x8xf32> to vector<2x8x1xf32>
    %774 = vector.shape_cast %112 : vector<8x15xf32> to vector<1x8x15xf32>
    %775 = vector.broadcast %773 : vector<2x8x1xf32> to vector<2x8x15xf32>
    %776 = vector.broadcast %774 : vector<1x8x15xf32> to vector<2x8x15xf32>
    %777 = arith.mulf %775, %776 : vector<2x8x15xf32>
    %778 = arith.addf %772, %777 : vector<2x8x15xf32>
    %779 = vector.extract_strided_slice %751 {offsets = [0, 0, 4], sizes = [2, 8, 1], strides = [1, 1, 1]} : vector<2x8x8xf32> to vector<2x8x1xf32>
    %780 = vector.shape_cast %119 : vector<8x15xf32> to vector<1x8x15xf32>
    %781 = vector.broadcast %779 : vector<2x8x1xf32> to vector<2x8x15xf32>
    %782 = vector.broadcast %780 : vector<1x8x15xf32> to vector<2x8x15xf32>
    %783 = arith.mulf %781, %782 : vector<2x8x15xf32>
    %784 = arith.addf %778, %783 : vector<2x8x15xf32>
    %785 = vector.extract_strided_slice %751 {offsets = [0, 0, 5], sizes = [2, 8, 1], strides = [1, 1, 1]} : vector<2x8x8xf32> to vector<2x8x1xf32>
    %786 = vector.shape_cast %126 : vector<8x15xf32> to vector<1x8x15xf32>
    %787 = vector.broadcast %785 : vector<2x8x1xf32> to vector<2x8x15xf32>
    %788 = vector.broadcast %786 : vector<1x8x15xf32> to vector<2x8x15xf32>
    %789 = arith.mulf %787, %788 : vector<2x8x15xf32>
    %790 = arith.addf %784, %789 : vector<2x8x15xf32>
    %791 = vector.extract_strided_slice %751 {offsets = [0, 0, 6], sizes = [2, 8, 1], strides = [1, 1, 1]} : vector<2x8x8xf32> to vector<2x8x1xf32>
    %792 = vector.shape_cast %133 : vector<8x15xf32> to vector<1x8x15xf32>
    %793 = vector.broadcast %791 : vector<2x8x1xf32> to vector<2x8x15xf32>
    %794 = vector.broadcast %792 : vector<1x8x15xf32> to vector<2x8x15xf32>
    %795 = arith.mulf %793, %794 : vector<2x8x15xf32>
    %796 = arith.addf %790, %795 : vector<2x8x15xf32>
    %797 = vector.extract_strided_slice %751 {offsets = [0, 0, 7], sizes = [2, 8, 1], strides = [1, 1, 1]} : vector<2x8x8xf32> to vector<2x8x1xf32>
    %798 = vector.shape_cast %140 : vector<8x15xf32> to vector<1x8x15xf32>
    %799 = vector.broadcast %797 : vector<2x8x1xf32> to vector<2x8x15xf32>
    %800 = vector.broadcast %798 : vector<1x8x15xf32> to vector<2x8x15xf32>
    %801 = arith.mulf %799, %800 : vector<2x8x15xf32>
    %802 = arith.addf %796, %801 : vector<2x8x15xf32>
    %803 = vector.shape_cast %802 : vector<2x8x15xf32> to vector<16x15xf32>
    %cst_66 = arith.constant dense<0.000000e+00> : vector<16x8xf32>
    %804 = tpu.matmul %803, %15, %cst_66 {dimension_numbers = #tpu.dot_dimension_numbers<[1], [0], [0], [1], [0, 0, 1, 1], [], []>} : vector<16x15xf32>, vector<15x8xf32>, vector<16x8xf32> -> vector<16x8xf32>
    %805 = arith.addf %753, %804 : vector<16x8xf32>
    %806 = arith.truncf %805 : vector<16x8xf32> to vector<16x8xbf16>
    %807 = vector.extract_strided_slice %17 {offsets = [24, 0], sizes = [8, 32], strides = [1, 1]} : vector<32x32xbf16> to vector<8x32xbf16>
    %cst_67 = arith.constant dense<0.000000e+00> : vector<16x32xf32>
    %808 = tpu.matmul %806, %807, %cst_67 {dimension_numbers = #tpu.dot_dimension_numbers<[1], [0], [0], [1], [0, 0, 1, 1], [], []>} : vector<16x8xbf16>, vector<8x32xbf16>, vector<16x32xf32> -> vector<16x32xf32>
    %809 = arith.addf %642, %808 : vector<16x32xf32>
    %c0_68 = arith.constant 0 : index
    %c0_69 = arith.constant 0 : index
    %c0_70 = arith.constant 0 : index
    %810 = vector.load %arg5[%c0_68, %c0_69, %c0_70] : memref<1x1x32xf32, #tpu.memory_space<vmem>>, vector<1x1x32xf32>
    %811 = vector.shape_cast %810 : vector<1x1x32xf32> to vector<1x32xf32>
    %812 = vector.broadcast %811 : vector<1x32xf32> to vector<16x32xf32>
    %813 = arith.addf %809, %812 : vector<16x32xf32>
    %814 = arith.addf %3, %813 : vector<16x32xf32>
    %c0_71 = arith.constant 0 : index
    %c0_72 = arith.constant 0 : index
    %c0_73 = arith.constant 0 : index
    %815 = vector.load %arg6[%c0_71, %c0_72, %c0_73] : memref<1x1x32xf32, #tpu.memory_space<vmem>>, vector<1x1x32xf32>
    %816 = vector.shape_cast %815 : vector<1x1x32xf32> to vector<1x32xf32>
    %c0_74 = arith.constant 0 : index
    %c0_75 = arith.constant 0 : index
    %c0_76 = arith.constant 0 : index
    %817 = vector.load %arg7[%c0_74, %c0_75, %c0_76] : memref<1x1x32xf32, #tpu.memory_space<vmem>>, vector<1x1x32xf32>
    %818 = vector.shape_cast %817 : vector<1x1x32xf32> to vector<1x32xf32>
    %cst_77 = arith.constant dense<0.000000e+00> : vector<16xf32>
    %819 = vector.multi_reduction <add>, %814, %cst_77 [1] : vector<16x32xf32> to vector<16xf32>
    %820 = vector.shape_cast %819 : vector<16xf32> to vector<16x1xf32>
    %cst_78 = arith.constant 3.200000e+01 : f32
    %821 = vector.broadcast %cst_78 : f32 to vector<16x1xf32>
    %822 = arith.divf %820, %821 : vector<16x1xf32>
    %823 = vector.broadcast %822 : vector<16x1xf32> to vector<16x32xf32>
    %824 = arith.subf %814, %823 : vector<16x32xf32>
    %825 = arith.mulf %824, %824 : vector<16x32xf32>
    %cst_79 = arith.constant dense<0.000000e+00> : vector<16xf32>
    %826 = vector.multi_reduction <add>, %825, %cst_79 [1] : vector<16x32xf32> to vector<16xf32>
    %827 = vector.shape_cast %826 : vector<16xf32> to vector<16x1xf32>
    %cst_80 = arith.constant 3.200000e+01 : f32
    %828 = vector.broadcast %cst_80 : f32 to vector<16x1xf32>
    %829 = arith.divf %827, %828 : vector<16x1xf32>
    %cst_81 = arith.constant 9.99999974E-6 : f32
    %830 = vector.broadcast %cst_81 : f32 to vector<16x1xf32>
    %831 = arith.addf %829, %830 : vector<16x1xf32>
    %832 = math.rsqrt %831 : vector<16x1xf32>
    %833 = vector.broadcast %832 : vector<16x1xf32> to vector<16x32xf32>
    %834 = arith.mulf %824, %833 : vector<16x32xf32>
    %835 = vector.broadcast %816 : vector<1x32xf32> to vector<16x32xf32>
    %836 = arith.mulf %834, %835 : vector<16x32xf32>
    %837 = vector.broadcast %818 : vector<1x32xf32> to vector<16x32xf32>
    %838 = arith.addf %836, %837 : vector<16x32xf32>
    %839 = arith.truncf %838 : vector<16x32xf32> to vector<16x32xbf16>
    %c0_82 = arith.constant 0 : index
    %c0_83 = arith.constant 0 : index
    %c0_84 = arith.constant 0 : index
    %840 = vector.load %arg8[%c0_82, %c0_83, %c0_84] : memref<1x32x64xbf16, #tpu.memory_space<vmem>>, vector<1x32x64xbf16>
    %841 = vector.shape_cast %840 : vector<1x32x64xbf16> to vector<32x64xbf16>
    %cst_85 = arith.constant dense<0.000000e+00> : vector<16x64xf32>
    %842 = tpu.matmul %839, %841, %cst_85 {dimension_numbers = #tpu.dot_dimension_numbers<[1], [0], [0], [1], [0, 0, 1, 1], [], []>} : vector<16x32xbf16>, vector<32x64xbf16>, vector<16x64xf32> -> vector<16x64xf32>
    %c0_86 = arith.constant 0 : index
    %c0_87 = arith.constant 0 : index
    %c0_88 = arith.constant 0 : index
    %843 = vector.load %arg9[%c0_86, %c0_87, %c0_88] : memref<1x1x64xf32, #tpu.memory_space<vmem>>, vector<1x1x64xf32>
    %844 = vector.shape_cast %843 : vector<1x1x64xf32> to vector<1x64xf32>
    %845 = vector.broadcast %844 : vector<1x64xf32> to vector<16x64xf32>
    %846 = arith.addf %842, %845 : vector<16x64xf32>
    %cst_89 = arith.constant 0.000000e+00 : f32
    %847 = vector.broadcast %cst_89 : f32 to vector<16x64xf32>
    %848 = arith.maximumf %846, %847 : vector<16x64xf32>
    %849 = arith.truncf %848 : vector<16x64xf32> to vector<16x64xbf16>
    %c0_90 = arith.constant 0 : index
    %c0_91 = arith.constant 0 : index
    %c0_92 = arith.constant 0 : index
    %850 = vector.load %arg10[%c0_90, %c0_91, %c0_92] : memref<1x64x32xbf16, #tpu.memory_space<vmem>>, vector<1x64x32xbf16>
    %851 = vector.shape_cast %850 : vector<1x64x32xbf16> to vector<64x32xbf16>
    %cst_93 = arith.constant dense<0.000000e+00> : vector<16x32xf32>
    %852 = tpu.matmul %849, %851, %cst_93 {dimension_numbers = #tpu.dot_dimension_numbers<[1], [0], [0], [1], [0, 0, 1, 1], [], []>} : vector<16x64xbf16>, vector<64x32xbf16>, vector<16x32xf32> -> vector<16x32xf32>
    %c0_94 = arith.constant 0 : index
    %c0_95 = arith.constant 0 : index
    %c0_96 = arith.constant 0 : index
    %853 = vector.load %arg11[%c0_94, %c0_95, %c0_96] : memref<1x1x32xf32, #tpu.memory_space<vmem>>, vector<1x1x32xf32>
    %854 = vector.shape_cast %853 : vector<1x1x32xf32> to vector<1x32xf32>
    %855 = vector.broadcast %854 : vector<1x32xf32> to vector<16x32xf32>
    %856 = arith.addf %852, %855 : vector<16x32xf32>
    %857 = arith.addf %838, %856 : vector<16x32xf32>
    %c0_97 = arith.constant 0 : index
    %c0_98 = arith.constant 0 : index
    %c0_99 = arith.constant 0 : index
    %858 = vector.load %arg12[%c0_97, %c0_98, %c0_99] : memref<1x1x32xf32, #tpu.memory_space<vmem>>, vector<1x1x32xf32>
    %859 = vector.shape_cast %858 : vector<1x1x32xf32> to vector<1x32xf32>
    %c0_100 = arith.constant 0 : index
    %c0_101 = arith.constant 0 : index
    %c0_102 = arith.constant 0 : index
    %860 = vector.load %arg13[%c0_100, %c0_101, %c0_102] : memref<1x1x32xf32, #tpu.memory_space<vmem>>, vector<1x1x32xf32>
    %861 = vector.shape_cast %860 : vector<1x1x32xf32> to vector<1x32xf32>
    %cst_103 = arith.constant dense<0.000000e+00> : vector<16xf32>
    %862 = vector.multi_reduction <add>, %857, %cst_103 [1] : vector<16x32xf32> to vector<16xf32>
    %863 = vector.shape_cast %862 : vector<16xf32> to vector<16x1xf32>
    %cst_104 = arith.constant 3.200000e+01 : f32
    %864 = vector.broadcast %cst_104 : f32 to vector<16x1xf32>
    %865 = arith.divf %863, %864 : vector<16x1xf32>
    %866 = vector.broadcast %865 : vector<16x1xf32> to vector<16x32xf32>
    %867 = arith.subf %857, %866 : vector<16x32xf32>
    %868 = arith.mulf %867, %867 : vector<16x32xf32>
    %cst_105 = arith.constant dense<0.000000e+00> : vector<16xf32>
    %869 = vector.multi_reduction <add>, %868, %cst_105 [1] : vector<16x32xf32> to vector<16xf32>
    %870 = vector.shape_cast %869 : vector<16xf32> to vector<16x1xf32>
    %cst_106 = arith.constant 3.200000e+01 : f32
    %871 = vector.broadcast %cst_106 : f32 to vector<16x1xf32>
    %872 = arith.divf %870, %871 : vector<16x1xf32>
    %cst_107 = arith.constant 9.99999974E-6 : f32
    %873 = vector.broadcast %cst_107 : f32 to vector<16x1xf32>
    %874 = arith.addf %872, %873 : vector<16x1xf32>
    %875 = math.rsqrt %874 : vector<16x1xf32>
    %876 = vector.broadcast %875 : vector<16x1xf32> to vector<16x32xf32>
    %877 = arith.mulf %867, %876 : vector<16x32xf32>
    %878 = vector.broadcast %859 : vector<1x32xf32> to vector<16x32xf32>
    %879 = arith.mulf %877, %878 : vector<16x32xf32>
    %880 = vector.broadcast %861 : vector<1x32xf32> to vector<16x32xf32>
    %881 = arith.addf %879, %880 : vector<16x32xf32>
    %c0_108 = arith.constant 0 : index
    %c0_109 = arith.constant 0 : index
    %882 = vector.load %arg24[%c0_108, %c0_109] : memref<16x32xf32, #tpu.memory_space<vmem>>, vector<16x32xf32>
    tpu.vector_store %arg24[%c0_108, %c0_109], %881 {strides = array<i32>} : memref<16x32xf32, #tpu.memory_space<vmem>>, vector<16x32xf32>,
    %c1_i32_110 = arith.constant 1 : i32
    %883 = arith.cmpi eq, %arg0, %c1_i32_110 : i32
    %884 = arith.extui %883 : i1 to i32
    %c0_i32_111 = arith.constant 0 : i32
    %885 = arith.cmpi ne, %884, %c0_i32_111 : i32
    scf.if %885 {
      %c0_112 = arith.constant 0 : index
      %c0_113 = arith.constant 0 : index
      %886 = vector.load %arg23[%c0_112, %c0_113] : memref<16x32xf32, #tpu.memory_space<vmem>>, vector<16x32xf32>
      tpu.vector_store %arg23[%c0_112, %c0_113], %881 {strides = array<i32>} : memref<16x32xf32, #tpu.memory_space<vmem>>, vector<16x32xf32>,
      %887 = arith.truncf %881 : vector<16x32xf32> to vector<16x32xbf16>
      %c0_114 = arith.constant 0 : index
      %c0_115 = arith.constant 0 : index
      %888 = vector.load %arg16[%c0_114, %c0_115] : memref<32x64xbf16, #tpu.memory_space<vmem>>, vector<32x64xbf16>
      %cst_116 = arith.constant dense<0.000000e+00> : vector<16x64xf32>
      %889 = tpu.matmul %887, %888, %cst_116 {dimension_numbers = #tpu.dot_dimension_numbers<[1], [0], [0], [1], [0, 0, 1, 1], [], []>} : vector<16x32xbf16>, vector<32x64xbf16>, vector<16x64xf32> -> vector<16x64xf32>
      %c0_117 = arith.constant 0 : index
      %c0_118 = arith.constant 0 : index
      %890 = vector.load %arg17[%c0_117, %c0_118] : memref<1x64xf32, #tpu.memory_space<vmem>>, vector<1x64xf32>
      %891 = vector.broadcast %890 : vector<1x64xf32> to vector<16x64xf32>
      %892 = arith.addf %889, %891 : vector<16x64xf32>
      %cst_119 = arith.constant dense<0.000000e+00> : vector<64xf32>
      %893 = vector.multi_reduction <add>, %892, %cst_119 [0] : vector<16x64xf32> to vector<64xf32>
      %894 = vector.shape_cast %893 : vector<64xf32> to vector<1x64xf32>
      %cst_120 = arith.constant 1.600000e+01 : f32
      %895 = vector.broadcast %cst_120 : f32 to vector<1x64xf32>
      %896 = arith.divf %894, %895 : vector<1x64xf32>
      %897 = vector.broadcast %896 : vector<1x64xf32> to vector<16x64xf32>
      %898 = arith.subf %892, %897 : vector<16x64xf32>
      %899 = arith.mulf %898, %898 : vector<16x64xf32>
      %cst_121 = arith.constant dense<0.000000e+00> : vector<64xf32>
      %900 = vector.multi_reduction <add>, %899, %cst_121 [0] : vector<16x64xf32> to vector<64xf32>
      %901 = vector.shape_cast %900 : vector<64xf32> to vector<1x64xf32>
      %cst_122 = arith.constant 1.600000e+01 : f32
      %902 = vector.broadcast %cst_122 : f32 to vector<1x64xf32>
      %903 = arith.divf %901, %902 : vector<1x64xf32>
      %cst_123 = arith.constant 9.99999974E-6 : f32
      %904 = vector.broadcast %cst_123 : f32 to vector<1x64xf32>
      %905 = arith.addf %903, %904 : vector<1x64xf32>
      %906 = math.rsqrt %905 : vector<1x64xf32>
      %907 = vector.broadcast %906 : vector<1x64xf32> to vector<16x64xf32>
      %908 = arith.mulf %898, %907 : vector<16x64xf32>
      %c0_124 = arith.constant 0 : index
      %c0_125 = arith.constant 0 : index
      %909 = vector.load %arg18[%c0_124, %c0_125] : memref<1x64xf32, #tpu.memory_space<vmem>>, vector<1x64xf32>
      %910 = vector.broadcast %909 : vector<1x64xf32> to vector<16x64xf32>
      %911 = arith.mulf %908, %910 : vector<16x64xf32>
      %c0_126 = arith.constant 0 : index
      %c0_127 = arith.constant 0 : index
      %912 = vector.load %arg19[%c0_126, %c0_127] : memref<1x64xf32, #tpu.memory_space<vmem>>, vector<1x64xf32>
      %913 = vector.broadcast %912 : vector<1x64xf32> to vector<16x64xf32>
      %914 = arith.addf %911, %913 : vector<16x64xf32>
      %915 = vector.shape_cast %914 : vector<16x64xf32> to vector<2x8x64xf32>
      %c0_128 = arith.constant 0 : index
      %c0_129 = arith.constant 0 : index
      %916 = vector.load %arg20[%c0_128, %c0_129] : memref<8x64xf32, #tpu.memory_space<vmem>>, vector<8x64xf32>
      %917 = vector.shape_cast %916 : vector<8x64xf32> to vector<1x8x64xf32>
      %918 = vector.broadcast %917 : vector<1x8x64xf32> to vector<2x8x64xf32>
      %919 = arith.mulf %915, %918 : vector<2x8x64xf32>
      %cst_130 = arith.constant dense<0.000000e+00> : vector<2x64xf32>
      %920 = vector.multi_reduction <add>, %919, %cst_130 [1] : vector<2x8x64xf32> to vector<2x64xf32>
      %cst_131 = arith.constant dense<0.000000e+00> : vector<2xf32>
      %921 = vector.multi_reduction <add>, %920, %cst_131 [1] : vector<2x64xf32> to vector<2xf32>
      %922 = vector.shape_cast %921 : vector<2xf32> to vector<2x1xf32>
      %c0_132 = arith.constant 0 : index
      %c0_133 = arith.constant 0 : index
      %923 = vector.load %arg21[%c0_132, %c0_133] : memref<1x1xf32, #tpu.memory_space<vmem>>, vector<1x1xf32>
      %924 = vector.broadcast %923 : vector<1x1xf32> to vector<2x1xf32>
      %925 = arith.addf %922, %924 : vector<2x1xf32>
      %926 = arith.negf %925 : vector<2x1xf32>
      %927 = math.exp %926 : vector<2x1xf32>
      %cst_134 = arith.constant 1.000000e+00 : f32
      %928 = vector.broadcast %cst_134 : f32 to vector<2x1xf32>
      %929 = arith.addf %928, %927 : vector<2x1xf32>
      %930 = arith.divf %928, %929 : vector<2x1xf32>
      %c0_135 = arith.constant 0 : index
      %c0_136 = arith.constant 0 : index
      %931 = vector.load %arg22[%c0_135, %c0_136] : memref<2x1xf32, #tpu.memory_space<vmem>>, vector<2x1xf32>
      tpu.vector_store %arg22[%c0_135, %c0_136], %930 {strides = array<i32>} : memref<2x1xf32, #tpu.memory_space<vmem>>, vector<2x1xf32>,
    } else {
    }
    return
  }
  func.func @transform_0(%arg0: i32) -> (i32, i32) {
    %c0_i32 = arith.constant 0 : i32
    %c0_i32_0 = arith.constant 0 : i32
    %c0_i32_1 = arith.constant 0 : i32
    return %c0_i32, %c0_i32_0 : i32, i32
  }
  func.func @transform_1(%arg0: i32) -> (i32, i32, i32) {
    %c0_i32 = arith.constant 0 : i32
    %c0_i32_0 = arith.constant 0 : i32
    %c0_i32_1 = arith.constant 0 : i32
    return %arg0, %c0_i32, %c0_i32_0 : i32, i32, i32
  }
  func.func @transform_2(%arg0: i32) -> (i32, i32, i32) {
    %c0_i32 = arith.constant 0 : i32
    %c0_i32_0 = arith.constant 0 : i32
    %c0_i32_1 = arith.constant 0 : i32
    return %arg0, %c0_i32, %c0_i32_0 : i32, i32, i32
  }
  func.func @transform_3(%arg0: i32) -> (i32, i32, i32) {
    %c0_i32 = arith.constant 0 : i32
    %c0_i32_0 = arith.constant 0 : i32
    %c0_i32_1 = arith.constant 0 : i32
    return %arg0, %c0_i32, %c0_i32_0 : i32, i32, i32
  }
  func.func @transform_4(%arg0: i32) -> (i32, i32, i32) {
    %c0_i32 = arith.constant 0 : i32
    %c0_i32_0 = arith.constant 0 : i32
    %c0_i32_1 = arith.constant 0 : i32
    return %arg0, %c0_i32, %c0_i32_0 : i32, i32, i32
  }
  func.func @transform_5(%arg0: i32) -> (i32, i32, i32) {
    %c0_i32 = arith.constant 0 : i32
    %c0_i32_0 = arith.constant 0 : i32
    %c0_i32_1 = arith.constant 0 : i32
    return %arg0, %c0_i32, %c0_i32_0 : i32, i32, i32
  }
  func.func @transform_6(%arg0: i32) -> (i32, i32, i32) {
    %c0_i32 = arith.constant 0 : i32
    %c0_i32_0 = arith.constant 0 : i32
    %c0_i32_1 = arith.constant 0 : i32
    return %arg0, %c0_i32, %c0_i32_0 : i32, i32, i32
  }
  func.func @transform_7(%arg0: i32) -> (i32, i32, i32) {
    %c0_i32 = arith.constant 0 : i32
    %c0_i32_0 = arith.constant 0 : i32
    %c0_i32_1 = arith.constant 0 : i32
    return %arg0, %c0_i32, %c0_i32_0 : i32, i32, i32
  }
  func.func @transform_8(%arg0: i32) -> (i32, i32, i32) {
    %c0_i32 = arith.constant 0 : i32
    %c0_i32_0 = arith.constant 0 : i32
    %c0_i32_1 = arith.constant 0 : i32
    return %arg0, %c0_i32, %c0_i32_0 : i32, i32, i32
  }
  func.func @transform_9(%arg0: i32) -> (i32, i32, i32) {
    %c0_i32 = arith.constant 0 : i32
    %c0_i32_0 = arith.constant 0 : i32
    %c0_i32_1 = arith.constant 0 : i32
    return %arg0, %c0_i32, %c0_i32_0 : i32, i32, i32
  }
  func.func @transform_10(%arg0: i32) -> (i32, i32, i32) {
    %c0_i32 = arith.constant 0 : i32
    %c0_i32_0 = arith.constant 0 : i32
    %c0_i32_1 = arith.constant 0 : i32
    return %arg0, %c0_i32, %c0_i32_0 : i32, i32, i32
  }
  func.func @transform_11(%arg0: i32) -> (i32, i32, i32) {
    %c0_i32 = arith.constant 0 : i32
    %c0_i32_0 = arith.constant 0 : i32
    %c0_i32_1 = arith.constant 0 : i32
    return %arg0, %c0_i32, %c0_i32_0 : i32, i32, i32
  }
  func.func @transform_12(%arg0: i32) -> (i32, i32, i32) {
    %c0_i32 = arith.constant 0 : i32
    %c0_i32_0 = arith.constant 0 : i32
    %c0_i32_1 = arith.constant 0 : i32
    return %arg0, %c0_i32, %c0_i32_0 : i32, i32, i32
  }
  func.func @transform_13(%arg0: i32) -> (i32, i32, i32) {
    %c0_i32 = arith.constant 0 : i32
    %c0_i32_0 = arith.constant 0 : i32
    %c0_i32_1 = arith.constant 0 : i32
    return %arg0, %c0_i32, %c0_i32_0 : i32, i32, i32
  }
  func.func @transform_14(%arg0: i32) -> (i32, i32, i32) {
    %c0_i32 = arith.constant 0 : i32
    %c0_i32_0 = arith.constant 0 : i32
    %c0_i32_1 = arith.constant 0 : i32
    return %arg0, %c0_i32, %c0_i32_0 : i32, i32, i32
  }
  func.func @transform_15(%arg0: i32) -> (i32, i32) {
    %c0_i32 = arith.constant 0 : i32
    %c0_i32_0 = arith.constant 0 : i32
    %c0_i32_1 = arith.constant 0 : i32
    return %c0_i32, %c0_i32_0 : i32, i32
  }
  func.func @transform_16(%arg0: i32) -> (i32, i32) {
    %c0_i32 = arith.constant 0 : i32
    %c0_i32_0 = arith.constant 0 : i32
    %c0_i32_1 = arith.constant 0 : i32
    return %c0_i32, %c0_i32_0 : i32, i32
  }
  func.func @transform_17(%arg0: i32) -> (i32, i32) {
    %c0_i32 = arith.constant 0 : i32
    %c0_i32_0 = arith.constant 0 : i32
    %c0_i32_1 = arith.constant 0 : i32
    return %c0_i32, %c0_i32_0 : i32, i32
  }
  func.func @transform_18(%arg0: i32) -> (i32, i32) {
    %c0_i32 = arith.constant 0 : i32
    %c0_i32_0 = arith.constant 0 : i32
    %c0_i32_1 = arith.constant 0 : i32
    return %c0_i32, %c0_i32_0 : i32, i32
  }
  func.func @transform_19(%arg0: i32) -> (i32, i32) {
    %c0_i32 = arith.constant 0 : i32
    %c0_i32_0 = arith.constant 0 : i32
    %c0_i32_1 = arith.constant 0 : i32
    return %c0_i32, %c0_i32_0 : i32, i32
  }
  func.func @transform_20(%arg0: i32) -> (i32, i32) {
    %c0_i32 = arith.constant 0 : i32
    %c0_i32_0 = arith.constant 0 : i32
    %c0_i32_1 = arith.constant 0 : i32
    return %c0_i32, %c0_i32_0 : i32, i32
  }
  func.func @transform_21(%arg0: i32) -> (i32, i32) {
    %c0_i32 = arith.constant 0 : i32
    %c0_i32_0 = arith.constant 0 : i32
    %c0_i32_1 = arith.constant 0 : i32
    return %c0_i32, %c0_i32_0 : i32, i32
  }
  func.func @transform_22(%arg0: i32) -> (i32, i32) {
    %c0_i32 = arith.constant 0 : i32
    %c0_i32_0 = arith.constant 0 : i32
    %c0_i32_1 = arith.constant 0 : i32
    return %c0_i32, %c0_i32_0 : i32, i32
  }
}

</mosaic_0001>

<bundles_post_ra>
// kernel: tpu_custom_call.1
= control target key start
LH: loop header
LB: loop body
LE: loop exit
PB: predicated region body
PF: predicated region fallthrough
CT: control target
= control target key end

     0   :  { %s7777_s0 = inlined_call_operand.vmem [shape: f32[16,32], index: 0, kind: input, shape index: {}]   ;;  %s7778_s1 = inlined_call_operand.vmem [shape: bf16[2,32,96], index: 1, kind: input, shape index: {}]   ;;  %s7779_s2 = inlined_call_operand.hbm [shape: f32[2,1,96], index: 2, kind: input, shape index: {}]   ;;  %s7780_s3 = inlined_call_operand.vmem [shape: bf16[2,32,32], index: 3, kind: input, shape index: {}]   ;;  %s7781_s4 = inlined_call_operand.hbm [shape: f32[2,1,32], index: 4, kind: input, shape index: {}]   ;;  %s7782_s5 = inlined_call_operand.hbm [shape: f32[2,1,32], index: 5, kind: input, shape index: {}]   ;;  %s7783_s6 = inlined_call_operand.hbm [shape: f32[2,1,32], index: 6, kind: input, shape index: {}]   ;;  %s7784_s7 = inlined_call_operand.vmem [shape: bf16[2,32,64], index: 7, kind: input, shape index: {}]   ;;  %s7785_s8 = inlined_call_operand.hbm [shape: f32[2,1,64], index: 8, kind: input, shape index: {}]   ;;  %s7786_s9 = inlined_call_operand.vmem [shape: bf16[2,64,32], index: 9, kind: input, shape index: {}]   ;;  %s7787_s10 = inlined_call_operand.hbm [shape: f32[2,1,32], index: 10, kind: input, shape index: {}]   ;;  %s7788_s11 = inlined_call_operand.hbm [shape: f32[2,1,32], index: 11, kind: input, shape index: {}]   ;;  %s7789_s12 = inlined_call_operand.hbm [shape: f32[2,1,32], index: 12, kind: input, shape index: {}]   ;;  %s7790_s13 = inlined_call_operand.vmem [shape: f32[2,8,15], index: 13, kind: input, shape index: {}]   ;;  %s7791_s14 = inlined_call_operand.vmem [shape: f32[2,15,8], index: 14, kind: input, shape index: {}]   ;;  %s7792_s15 = inlined_call_operand.vmem [shape: bf16[32,64], index: 15, kind: input, shape index: {}]   ;;  %s7793_s16 = inlined_call_operand.vmem [shape: f32[1,64], index: 16, kind: input, shape index: {}]   ;;  %s7794_s17 = inlined_call_operand.vmem [shape: f32[1,64], index: 17, kind: input, shape index: {}]   ;;  %s7795_s18 = inlined_call_operand.vmem [shape: f32[1,64], index: 18, kind: input, shape index: {}]   ;;  %s7796_s19 = inlined_call_operand.vmem [shape: f32[8,64], index: 19, kind: input, shape index: {}]   ;;  %s7797_s20 = inlined_call_operand.<no memory space> [shape: f32[1,1], index: 20, kind: input, shape index: {}]   ;;  %s7798_s21 = inlined_call_operand.vmem [shape: f32[2,1], index: 21, kind: output, shape index: {0}]   ;;  %s7799_s22 = inlined_call_operand.hbm [shape: f32[16,32], index: 22, kind: output, shape index: {1}]  }
   0x1   :  { %7868 = sst [smem:[#allocation36_spill]] %s7777_s0  ;;  %v28_v0 = vstv %s7797_s20 }
   0x2   :  { %7869 = sst [smem:[#allocation37_spill]] %s7778_s1  ;;  %29 = vst [vmem:[#allocation3] sm:$0x1] %v28_v0 }
   0x3   :  { %7870 = sst [smem:[#allocation38_spill]] %s7779_s2 }
   0x4   :  { %7871 = sst [smem:[#allocation39_spill]] %s7780_s3 }
   0x5   :  { %7872 = sst [smem:[#allocation40_spill]] %s7781_s4 }
   0x6   :  { %7873 = sst [smem:[#allocation41_spill]] %s7782_s5 }
   0x7   :  { %7874 = sst [smem:[#allocation42_spill]] %s7783_s6 }
   0x8   :  { %7875 = sst [smem:[#allocation43_spill]] %s7785_s8 }
   0x9   :  { %7876 = sst [smem:[#allocation44_spill]] %s7787_s10 }
   0xa   :  { %7877 = sst [smem:[#allocation45_spill]] %s7788_s11 }
   0xb   :  { %7878 = sst [smem:[#allocation46_spill]] %s7794_s17 }
   0xc   :  { %7879 = sst [smem:[#allocation47_spill]] %s7795_s18 }
   0xd   :  { %7880 = sst [smem:[#allocation48_spill]] %s7796_s19 }
   0xe   :  { %7881 = sst [smem:[#allocation49_spill]] %s7798_s21 }
   0xf   :  { %7882 = sst [smem:[#allocation50_spill]] %s7799_s22 }
  0x10   :  { %30 = vsyncpa [#allocation5], 0 }
  0x11   :  { %32 = vsyncpa [#allocation5 + $0x1], 0 }
  0x12   :  { %33 = vsyncpa [#allocation8], 0 }
  0x13   :  { %35 = vsyncpa [#allocation8 + $0x1], 0 }
  0x14   :  { %36 = vsyncpa [#allocation11], 0 }
  0x15   :  { %38 = vsyncpa [#allocation11 + $0x1], 0 }
  0x16   :  { %39 = vsyncpa [#allocation14], 0 }
  0x17   :  { %41 = vsyncpa [#allocation14 + $0x1], 0 }
  0x18   :  { %42 = vsyncpa [#allocation17], 0 }
  0x19   :  { %44 = vsyncpa [#allocation17 + $0x1], 0 }
  0x1a   :  { %45 = vsyncpa [#allocation6], 0  ;;  %s6411_s29 = smov 0   ;;  %s6413_s30 = smov 0  }
  0x1b   :  { %s6415_s4 = smov 0   ;;  %s6417_s0 = smov 0  }
  0x1c LB: > { %7883 = sst [smem:[#allocation25_spill]] %s6245_s4  ;;  %s6430_s20 = sadd.s32 4294967295, %s6249_s0   ;;  %s6249_s0 = sphi %s6417_s0, %s7977_s0   ;;  %s6245_s4 = sphi %s6415_s4, %s7979_s4   ;;  %s6241_s30 = sphi %s6413_s30, %s7981_s30   ;;  %s6237_s29 = sphi %s6411_s29, %s7980_s29  }
  0x1d   : > { %s6433_s23 = sadd.s32 1, %s6249_s0   ;;  %s105_s5 = sadd.s32 1, %s6245_s4 }
  0x1e   : > { %7884 = sst [smem:[#allocation26_spill]] %s6433_s23  ;;  %s102_s1 = ssub.s32 %s6249_s0, %s6433_s23 }
  0x1f   : > { %p103_p0 = scmp.eq.s32.totalorder %s102_s1, 0  ;;  %p112_p1 = scmp.ne.s32.totalorder %s6245_s4, %s6241_s30 }
  0x20   : > { %p113_p2 = scmp.eq.s32.totalorder %s6249_s0, 0  ;;  %p118_p3 = scmp.ne.s32.totalorder %s6241_s30, %s6237_s29 }
  0x21   : > { %s6443_s24 = scalar_select %p103_p0, %s6245_s4, %s105_s5  }
  0x22   : > { %p114_p4 = por %p113_p2, %p112_p1  ;;  %p119_p5 = scmp.eq.s32.totalorder %s6430_s20, 0 }
  0x23   : > { %7885 = sst [smem:[#allocation27_spill]] %s6443_s24  ;;  %p5624_p6 = scmp.lt.s32.totalorder %s6249_s0, 2 }
  0x24   : > { %p6447_p7 = por %p119_p5, %p118_p3  ;;  %s6452_s25 = sand.u32 1, %s6245_s4  }
  0x25   : > { %s6455_s26 = sshll.u32 %s6249_s0, 4  ;;  %p6457_p8 = pnand %p5624_p6, %p114_p4 }
  0x26   : > { %s7886_s6 = scalar_select %p6447_p7, 1, 0 }
  0x27   : > { %s7887_s2 = scalar_select %p6457_p8, 1, 0 }
  0x28   : > { %s6462_s27 = sand.u32 1, %s6249_s0   ;;  %s7888_s29 = sld [smem:[#allocation40_spill]] }
  0x29   : > { %s679_s24 = scalar_lea.vmem [#allocation7], %s6452_s25  ;;  %p6479_p11 = pneg %p6457_p8 }
  0x2a   : > { %s686_s4 = sshll.u32 %s679_s24, 4  ;;  %s6471_s4 = int_to_ptr.vmem [resolvable:$true] %s686_s4 }
  0x2e   : > { %s7889_s1 = smov %s7888_s29  ;;  %s6468_s5 = scalar_lea.hbm %s7888_s29, %s6455_s26 }
  0x2f   : > { %s5929_s22 = scalar_lea.hbm %s6468_s5, 16  ;;  %s5934_s29 = scalar_lea.hbm %s7889_s1, 32 }
  0x30   : > { %p5930_p10 = scmp.ne.s32.totalorder %s6468_s5, %s5929_s22  ;;  %p5935_p0 = scmp.lt.u32.totalorder %s6468_s5, %s7889_s1 }
  0x31   : > { %p5936_p1 = scmp.lt.u32.totalorder %s5934_s29, %s5929_s22  ;;  %p5938_p3 = scmp.lt.u32.totalorder %s5929_s22, %s6468_s5 }
  0x32   : > { %p5932_p12 = pnand %p6479_p11, %p5930_p10 }
  0x33   : > { %p5937_p2 = por %p5936_p1, %p5935_p0 }
  0x34   : > { %p5933_p13 = pneg %p5932_p12 }
  0x35   : > { %p5939_p4 = por %p5938_p3, %p5937_p2 }
  0x37   : > { %p5940_p5 = pnand %p5939_p4, %p5933_p13 }
  0x39   : > { %5943 = shalt.err (!%p5940_p5)
}
  0x3a   : > { %s5944_s23 = scalar_lea.vmem %s6471_s4, 16  ;;  %s6251_s3 = smov [#allocation7]  }
  0x3b   : > { %p5945_p6 = scmp.ne.s32.totalorder %s6471_s4, %s5944_s23  ;;  %s5949_s28 = sshll.u32 %s6251_s3, 4  ;;  %s5950_s28 = int_to_ptr.vmem [resolvable:$false] %s5949_s28 }
  0x3c   : > { %s5951_s19 = scalar_lea.vmem %s5950_s28, 32  ;;  %p5952_p9 = scmp.lt.s32.totalorder %s6471_s4, %s5950_s28 }
  0x3d   : > { %p5947_p10 = pnand %p5945_p6, %p6479_p11  ;;  %p5953_p7 = scmp.lt.s32.totalorder %s5951_s19, %s5944_s23 }
  0x3f   : > { %p5948_p12 = pneg %p5947_p10  ;;  %p5954_p0 = por %p5953_p7, %p5952_p9 }
  0x41   : > { %p5955_p1 = pnand %p5954_p0, %p5948_p12 }
  0x43   : > { %5958 = shalt.err (!%p5955_p1)
}
  0x44   : > { %s7891_s22 = scalar_lea.sflag [#allocation8], %s6462_s27  ;;  %p824_p13 = scmp.lt.s32.totalorder %s6249_s0, 3 }
  0x45   : > { %5605 = dma.hbm_to_vmem [thread:$0]  (!%p6457_p8), %s6468_s5, 16, %s6471_s4, %s7891_s22  }
  0x46   : > { %s7892_s23 = sld [smem:[#allocation42_spill]]  ;;  %p7893_p7 = scmp.ge.s32.totalorder %s6249_s0, 1 }
  0x47   : > { %s713_s19 = scalar_lea.vmem [#allocation10], %s6452_s25 }
  0x48   : > { %p6513_p9 = pnand %p7893_p7, %p824_p13  ;;  %s720_s1 = sshll.u32 %s713_s19, 4  ;;  %s721_s1 = int_to_ptr.vmem [resolvable:$true] %s720_s1 }
  0x4a   : > { %s7894_s28 = scalar_select %p6513_p9, 1, 0 }
  0x4c   : > { %s6509_s3 = scalar_lea.hbm %s7892_s23, %s6455_s26  ;;  %s5964_s0 = scalar_lea.hbm %s7892_s23, 32 }
  0x4d   : > { %s5959_s4 = scalar_lea.hbm %s6509_s3, 16  ;;  %p5965_p5 = scmp.lt.u32.totalorder %s6509_s3, %s7892_s23 }
  0x4e   : > { %p5960_p2 = scmp.ne.s32.totalorder %s6509_s3, %s5959_s4  ;;  %p5966_p6 = scmp.lt.u32.totalorder %s5964_s0, %s5959_s4 }
  0x4f   : > { %p5968_p12 = scmp.lt.u32.totalorder %s5959_s4, %s6509_s3 }
  0x50   : > { %p5962_p3 = pnand %p5960_p2, %p6479_p11  ;;  %p5967_p10 = por %p5966_p6, %p5965_p5 }
  0x52   : > { %p5963_p4 = pneg %p5962_p3  ;;  %p5969_p0 = por %p5968_p12, %p5967_p10 }
  0x54   : > { %p5970_p1 = pnand %p5969_p0, %p5963_p4 }
  0x56   : > { %5973 = shalt.err (!%p5970_p1)
}
  0x57   : > { %s5974_s19 = scalar_lea.vmem %s721_s1, 16  ;;  %s6252_s18 = smov [#allocation10]  }
  0x58   : > { %p5975_p13 = scmp.ne.s32.totalorder %s721_s1, %s5974_s19  ;;  %s5979_s17 = sshll.u32 %s6252_s18, 4  ;;  %s5980_s17 = int_to_ptr.vmem [resolvable:$false] %s5979_s17 }
  0x59   : > { %s5981_s5 = scalar_lea.vmem %s5980_s17, 32  ;;  %p5982_p3 = scmp.lt.s32.totalorder %s721_s1, %s5980_s17 }
  0x5a   : > { %p5977_p7 = pnand %p5975_p13, %p6479_p11  ;;  %p5983_p9 = scmp.lt.s32.totalorder %s5981_s5, %s5974_s19 }
  0x5c   : > { %p5978_p2 = pneg %p5977_p7  ;;  %p5984_p8 = por %p5983_p9, %p5982_p3 }
  0x5e   : > { %p5985_p5 = pnand %p5984_p8, %p5978_p2 }
  0x60   : > { %5988 = shalt.err (!%p5985_p5)
}
  0x61   : > { %p7895_p6 = scmp.ne.s32.totalorder %s7887_s2, 0  ;;  %s7896_s4 = scalar_lea.sflag [#allocation11], %s6462_s27 }
  0x62   : > { %s7897_s10 = sld [smem:[#allocation44_spill]]  ;;  %s763_s17 = scalar_lea.vmem [#allocation13], %s6452_s25 }
  0x63   : > { %5611 = dma.hbm_to_vmem [thread:$0]  (!%p7895_p6), %s6509_s3, 16, %s721_s1, %s7896_s4  }
  0x64   : > { %s770_s29 = sshll.u32 %s763_s17, 4  ;;  %s771_s29 = int_to_ptr.vmem [resolvable:$true] %s770_s29 }
  0x68   : > { %s6542_s18 = scalar_lea.hbm %s7897_s10, %s6455_s26  ;;  %s5994_s3 = scalar_lea.hbm %s7897_s10, 32 }
  0x69   : > { %s5989_s19 = scalar_lea.hbm %s6542_s18, 16  ;;  %p5995_p10 = scmp.lt.u32.totalorder %s6542_s18, %s7897_s10 }
  0x6a   : > { %p5990_p8 = scmp.ne.s32.totalorder %s6542_s18, %s5989_s19  ;;  %p5996_p12 = scmp.lt.u32.totalorder %s5994_s3, %s5989_s19 }
  0x6b   : > { %p5998_p1 = scmp.lt.u32.totalorder %s5989_s19, %s6542_s18 }
  0x6c   : > { %p5992_p9 = pnand %p5990_p8, %p6479_p11  ;;  %p5997_p0 = por %p5996_p12, %p5995_p10 }
  0x6e   : > { %p5993_p4 = pneg %p5992_p9  ;;  %p5999_p13 = por %p5998_p1, %p5997_p0 }
  0x70   : > { %p6000_p7 = pnand %p5999_p13, %p5993_p4 }
  0x72   : > { %6003 = shalt.err (!%p6000_p7)
}
  0x73   : > { %s6004_s0 = scalar_lea.vmem %s771_s29, 16  ;;  %s6253_s17 = smov [#allocation13]  }
  0x74   : > { %p6005_p2 = scmp.ne.s32.totalorder %s771_s29, %s6004_s0  ;;  %s6009_s24 = sshll.u32 %s6253_s17, 4  ;;  %s6010_s24 = int_to_ptr.vmem [resolvable:$false] %s6009_s24 }
  0x75   : > { %s6011_s5 = scalar_lea.vmem %s6010_s24, 32  ;;  %p6012_p8 = scmp.lt.s32.totalorder %s771_s29, %s6010_s24 }
  0x76   : > { %p6007_p3 = pnand %p6005_p2, %p6479_p11  ;;  %p6013_p9 = scmp.lt.s32.totalorder %s6011_s5, %s6004_s0 }
  0x78   : > { %p6008_p5 = pneg %p6007_p3  ;;  %p6014_p6 = por %p6013_p9, %p6012_p8 }
  0x7a   : > { %p6015_p10 = pnand %p6014_p6, %p6008_p5 }
  0x7c   : > { %6018 = shalt.err (!%p6015_p10)
}
  0x7d   : > { %p7898_p12 = scmp.ne.s32.totalorder %s7887_s2, 0  ;;  %s7899_s19 = scalar_lea.sflag [#allocation14], %s6462_s27 }
  0x7e   : > { %s7900_s4 = sld [smem:[#allocation38_spill]]  ;;  %s654_s24 = scalar_lea.vmem [#allocation4], %s6452_s25 }
  0x7f   : > { %5617 = dma.hbm_to_vmem [thread:$0]  (!%p7898_p12), %s6542_s18, 16, %s771_s29, %s7899_s19  }
  0x80   : > { %s661_s0 = sshll.u32 %s654_s24, 4  ;;  %s652_s5 = scalar_lea.sflag [#allocation5], %s6452_s25  ;;  %s662_s0 = int_to_ptr.vmem [resolvable:$true] %s661_s0 }
  0x84   : > { %s7901_s22 = smov %s7900_s4  ;;  %s6569_s17 = scalar_lea.hbm %s7900_s4, %s6455_s26 }
  0x85   : > { %s6019_s10 = scalar_lea.hbm %s6569_s17, 16  ;;  %s6024_s29 = scalar_lea.hbm %s7901_s22, 32 }
  0x86   : > { %p6020_p6 = scmp.ne.s32.totalorder %s6569_s17, %s6019_s10  ;;  %p6025_p1 = scmp.lt.u32.totalorder %s6569_s17, %s7901_s22 }
  0x87   : > { %p6026_p13 = scmp.lt.u32.totalorder %s6024_s29, %s6019_s10  ;;  %p6028_p2 = scmp.lt.u32.totalorder %s6019_s10, %s6569_s17 }
  0x88   : > { %p6022_p4 = pnand %p6020_p6, %p6479_p11 }
  0x89   : > { %p6027_p7 = por %p6026_p13, %p6025_p1 }
  0x8a   : > { %p6023_p0 = pneg %p6022_p4 }
  0x8b   : > { %p6029_p3 = por %p6028_p2, %p6027_p7 }
  0x8d   : > { %p6030_p5 = pnand %p6029_p3, %p6023_p0 }
  0x8f   : > { %6033 = shalt.err (!%p6030_p5)
}
  0x90   : > { %s6034_s3 = scalar_lea.vmem %s662_s0, 16  ;;  %s6254_s4 = smov [#allocation4]  }
  0x91   : > { %p6035_p8 = scmp.ne.s32.totalorder %s662_s0, %s6034_s3  ;;  %s6039_s24 = sshll.u32 %s6254_s4, 4  ;;  %s6040_s24 = int_to_ptr.vmem [resolvable:$false] %s6039_s24 }
  0x92   : > { %s6041_s23 = scalar_lea.vmem %s6040_s24, 32  ;;  %p6042_p6 = scmp.lt.s32.totalorder %s662_s0, %s6040_s24 }
  0x93   : > { %p6037_p9 = pnand %p6035_p8, %p6479_p11  ;;  %p6043_p4 = scmp.lt.s32.totalorder %s6041_s23, %s6034_s3 }
  0x95   : > { %p6038_p10 = pneg %p6037_p9  ;;  %p6044_p12 = por %p6043_p4, %p6042_p6 }
  0x97   : > { %p6045_p1 = pnand %p6044_p12, %p6038_p10 }
  0x99   : > { %6048 = shalt.err (!%p6045_p1)
}
  0x9a   : > { %p7902_p13 = scmp.ne.s32.totalorder %s7887_s2, 0  ;;  %s7903_s29 = sld [smem:[#allocation41_spill]] }
  0x9b   : > { %s696_s3 = scalar_lea.vmem [#allocation9], %s6452_s25 }
  0x9c   : > { %5602 = dma.hbm_to_vmem [thread:$0]  (!%p7902_p13), %s6569_s17, 16, %s662_s0, %s652_s5  }
  0x9d   : > { %s703_s4 = sshll.u32 %s696_s3, 4  ;;  %s704_s4 = int_to_ptr.vmem [resolvable:$true] %s703_s4 }
  0xa0   : > { %s7904_s19 = smov %s7903_s29  ;;  %s6594_s1 = scalar_lea.hbm %s7903_s29, %s6455_s26 }
  0xa1   : > { %s6049_s24 = scalar_lea.hbm %s6594_s1, 16  ;;  %s6054_s17 = scalar_lea.hbm %s7904_s19, 32 }
  0xa2   : > { %p6050_p12 = scmp.ne.s32.totalorder %s6594_s1, %s6049_s24  ;;  %p6055_p2 = scmp.lt.u32.totalorder %s6594_s1, %s7904_s19 }
  0xa3   : > { %p6056_p3 = scmp.lt.u32.totalorder %s6054_s17, %s6049_s24  ;;  %p6058_p8 = scmp.lt.u32.totalorder %s6049_s24, %s6594_s1 }
  0xa4   : > { %p6052_p0 = pnand %p6050_p12, %p6479_p11 }
  0xa5   : > { %p6057_p5 = por %p6056_p3, %p6055_p2 }
  0xa6   : > { %p6053_p7 = pneg %p6052_p0 }
  0xa7   : > { %p6059_p9 = por %p6058_p8, %p6057_p5 }
  0xa9   : > { %p6060_p10 = pnand %p6059_p9, %p6053_p7 }
  0xab   : > { %6063 = shalt.err (!%p6060_p10)
}
  0xac   : > { %s6064_s10 = scalar_lea.vmem %s704_s4, 16  ;;  %s6255_s18 = smov [#allocation9]  }
  0xad   : > { %p6065_p6 = scmp.ne.s32.totalorder %s704_s4, %s6064_s10  ;;  %s6069_s29 = sshll.u32 %s6255_s18, 4  ;;  %s6070_s29 = int_to_ptr.vmem [resolvable:$false] %s6069_s29 }
  0xae   : > { %s6071_s22 = scalar_lea.vmem %s6070_s29, 32  ;;  %p6072_p12 = scmp.lt.s32.totalorder %s704_s4, %s6070_s29 }
  0xaf   : > { %p6067_p4 = pnand %p6065_p6, %p6479_p11  ;;  %p6073_p0 = scmp.lt.s32.totalorder %s6071_s22, %s6064_s10 }
  0xb1   : > { %p6068_p1 = pneg %p6067_p4  ;;  %p6074_p13 = por %p6073_p0, %p6072_p12 }
  0xb3   : > { %p6075_p2 = pnand %p6074_p13, %p6068_p1 }
  0xb5   : > { %6078 = shalt.err (!%p6075_p2)
}
  0xb6   : > { %p7905_p3 = scmp.ne.s32.totalorder %s7887_s2, 0  ;;  %s7906_s3 = scalar_lea.sflag [#allocation8], %s6462_s27 }
  0xb7   : > { %s7907_s8 = sld [smem:[#allocation43_spill]]  ;;  %s738_s0 = scalar_lea.vmem [#allocation12], %s6452_s25 }
  0xb8   : > { %5608 = dma.hbm_to_vmem [thread:$0]  (!%p7905_p3), %s6594_s1, 16, %s704_s4, %s7906_s3  }
  0xb9   : > { %s745_s5 = sshll.u32 %s738_s0, 4  ;;  %s746_s5 = int_to_ptr.vmem [resolvable:$true] %s745_s5 }
  0xbd   : > { %s6620_s17 = scalar_lea.hbm %s7907_s8, %s6455_s26  ;;  %s6084_s1 = scalar_lea.hbm %s7907_s8, 32 }
  0xbe   : > { %s6079_s10 = scalar_lea.hbm %s6620_s17, 16  ;;  %p6085_p8 = scmp.lt.u32.totalorder %s6620_s17, %s7907_s8 }
  0xbf   : > { %p6080_p13 = scmp.ne.s32.totalorder %s6620_s17, %s6079_s10  ;;  %p6086_p9 = scmp.lt.u32.totalorder %s6084_s1, %s6079_s10 }
  0xc0   : > { %p6088_p6 = scmp.lt.u32.totalorder %s6079_s10, %s6620_s17 }
  0xc1   : > { %p6082_p7 = pnand %p6080_p13, %p6479_p11  ;;  %p6087_p10 = por %p6086_p9, %p6085_p8 }
  0xc3   : > { %p6083_p5 = pneg %p6082_p7  ;;  %p6089_p4 = por %p6088_p6, %p6087_p10 }
  0xc5   : > { %p6090_p1 = pnand %p6089_p4, %p6083_p5 }
  0xc7   : > { %6093 = shalt.err (!%p6090_p1)
}
  0xc8   : > { %s6094_s3 = scalar_lea.vmem %s746_s5, 16  ;;  %s6256_s24 = smov [#allocation12]  }
  0xc9   : > { %p6095_p12 = scmp.ne.s32.totalorder %s746_s5, %s6094_s3  ;;  %s6099_s23 = sshll.u32 %s6256_s24, 4  ;;  %s6100_s23 = int_to_ptr.vmem [resolvable:$false] %s6099_s23 }
  0xca   : > { %s6101_s0 = scalar_lea.vmem %s6100_s23, 32  ;;  %p6102_p13 = scmp.lt.s32.totalorder %s746_s5, %s6100_s23 }
  0xcb   : > { %p6097_p0 = pnand %p6095_p12, %p6479_p11  ;;  %p6103_p7 = scmp.lt.s32.totalorder %s6101_s0, %s6094_s3 }
  0xcd   : > { %p6098_p2 = pneg %p6097_p0  ;;  %p6104_p3 = por %p6103_p7, %p6102_p13 }
  0xcf   : > { %p6105_p8 = pnand %p6104_p3, %p6098_p2 }
  0xd1   : > { %6108 = shalt.err (!%p6105_p8)
}
  0xd2   : > { %p7908_p9 = scmp.ne.s32.totalorder %s7887_s2, 0  ;;  %s7909_s10 = scalar_lea.sflag [#allocation11], %s6462_s27 }
  0xd3   : > { %s7910_s11 = sld [smem:[#allocation45_spill]]  ;;  %s780_s4 = scalar_lea.vmem [#allocation15], %s6452_s25 }
  0xd4   : > { %5614 = dma.hbm_to_vmem [thread:$0]  (!%p7908_p9), %s6620_s17, 16, %s746_s5, %s7909_s10  }
  0xd5   : > { %s787_s22 = sshll.u32 %s780_s4, 4  ;;  %s788_s22 = int_to_ptr.vmem [resolvable:$true] %s787_s22 }
  0xd9   : > { %s6646_s1 = scalar_lea.hbm %s7910_s11, %s6455_s26  ;;  %s6114_s17 = scalar_lea.hbm %s7910_s11, 32 }
  0xda   : > { %s6109_s3 = scalar_lea.hbm %s6646_s1, 16  ;;  %p6115_p6 = scmp.lt.u32.totalorder %s6646_s1, %s7910_s11 }
  0xdb   : > { %p6110_p3 = scmp.ne.s32.totalorder %s6646_s1, %s6109_s3  ;;  %p6116_p4 = scmp.lt.u32.totalorder %s6114_s17, %s6109_s3 }
  0xdc   : > { %p6118_p12 = scmp.lt.u32.totalorder %s6109_s3, %s6646_s1 }
  0xdd   : > { %p6112_p5 = pnand %p6110_p3, %p6479_p11  ;;  %p6117_p1 = por %p6116_p4, %p6115_p6 }
  0xdf   : > { %p6113_p10 = pneg %p6112_p5  ;;  %p6119_p0 = por %p6118_p12, %p6117_p1 }
  0xe1   : > { %p6120_p2 = pnand %p6119_p0, %p6113_p10 }
  0xe3   : > { %6123 = shalt.err (!%p6120_p2)
}
  0xe4   : > { %s6124_s10 = scalar_lea.vmem %s788_s22, 16  ;;  %s6257_s18 = smov [#allocation15]  }
  0xe5   : > { %p6125_p13 = scmp.ne.s32.totalorder %s788_s22, %s6124_s10  ;;  %s6129_s29 = sshll.u32 %s6257_s18, 4  ;;  %s6130_s29 = int_to_ptr.vmem [resolvable:$false] %s6129_s29 }
  0xe6   : > { %s6131_s4 = scalar_lea.vmem %s6130_s29, 32  ;;  %p6132_p3 = scmp.lt.s32.totalorder %s788_s22, %s6130_s29 }
  0xe7   : > { %p6127_p7 = pnand %p6125_p13, %p6479_p11  ;;  %p6133_p5 = scmp.lt.s32.totalorder %s6131_s4, %s6124_s10 }
  0xe9   : > { %p6128_p8 = pneg %p6127_p7  ;;  %p6134_p9 = por %p6133_p5, %p6132_p3 }
  0xeb   : > { %p6135_p4 = pnand %p6134_p9, %p6128_p8 }
  0xed   : > { %6138 = shalt.err (!%p6135_p4)
}
  0xee   : > { %p7911_p6 = scmp.ne.s32.totalorder %s7887_s2, 0  ;;  %s7912_s3 = scalar_lea.sflag [#allocation14], %s6462_s27 }
  0xef   : > { %s6672_s17 = scalar_lea.hbm %s7789_s12, %s6455_s26  ;;  %s797_s5 = scalar_lea.vmem [#allocation16], %s6452_s25 }
  0xf0   : > { %5620 = dma.hbm_to_vmem [thread:$0]  (!%p7911_p6), %s6646_s1, 16, %s788_s22, %s7912_s3  }
  0xf1   : > { %s804_s0 = sshll.u32 %s797_s5, 4  ;;  %s795_s10 = scalar_lea.sflag [#allocation17], %s6452_s25  ;;  %s805_s0 = int_to_ptr.vmem [resolvable:$true] %s804_s0 }
  0xf2   : > { %s6139_s27 = scalar_lea.hbm %s6672_s17, 16  ;;  %s6144_s22 = scalar_lea.hbm %s7789_s12, 32 }
  0xf3   : > { %p6140_p9 = scmp.ne.s32.totalorder %s6672_s17, %s6139_s27  ;;  %p6145_p12 = scmp.lt.u32.totalorder %s6672_s17, %s7789_s12 }
  0xf4   : > { %p6146_p0 = scmp.lt.u32.totalorder %s6144_s22, %s6139_s27  ;;  %p6148_p13 = scmp.lt.u32.totalorder %s6139_s27, %s6672_s17 }
  0xf5   : > { %p6142_p10 = pnand %p6140_p9, %p6479_p11 }
  0xf6   : > { %p6147_p2 = por %p6146_p0, %p6145_p12 }
  0xf7   : > { %p6143_p1 = pneg %p6142_p10 }
  0xf8   : > { %p6149_p7 = por %p6148_p13, %p6147_p2 }
  0xfa   : > { %p6150_p8 = pnand %p6149_p7, %p6143_p1 }
  0xfc   : > { %6153 = shalt.err (!%p6150_p8)
}
  0xfd   : > { %s6154_s25 = scalar_lea.vmem %s805_s0, 16  ;;  %s6258_s4 = smov [#allocation16]  }
  0xfe   : > { %p6155_p3 = scmp.ne.s32.totalorder %s805_s0, %s6154_s25  ;;  %s6159_s3 = sshll.u32 %s6258_s4, 4  ;;  %s6160_s3 = int_to_ptr.vmem [resolvable:$false] %s6159_s3 }
  0xff   : > { %s6161_s24 = scalar_lea.vmem %s6160_s3, 32  ;;  %p6162_p9 = scmp.lt.s32.totalorder %s805_s0, %s6160_s3 }
 0x100   : > { %p6157_p5 = pnand %p6155_p3, %p6479_p11  ;;  %p6163_p10 = scmp.lt.s32.totalorder %s6161_s24, %s6154_s25 }
 0x102   : > { %p6158_p4 = pneg %p6157_p5  ;;  %p6164_p6 = por %p6163_p10, %p6162_p9 }
 0x104   : > { %p6165_p0 = pnand %p6164_p6, %p6158_p4 }
 0x106   : > { %6168 = shalt.err (!%p6165_p0)
}
 0x107   : > { %p7913_p12 = scmp.ne.s32.totalorder %s7887_s2, 0  ;;  %p7914_p1 = scmp.ne.s32.totalorder %s7894_s28, 0 }
 0x109   : > { %5623 = dma.hbm_to_vmem [thread:$0]  (!%p7913_p12), %s6672_s17, 16, %s805_s0, %s795_s10  }
 0x10a   : > { %828 = sbr.rel (%p7914_p1) target bundleno = 6326 (0x18b6), region = 104 }
 0x111   : > { %s6696_s21 = sand.u32 1, %s6241_s30   ;;  %p7915_p11 = scmp.ne.s32.totalorder %s7886_s6, 0 }
 0x112   : > { %s831_s23 = scalar_lea.sflag [#allocation5], %s6696_s21 }
 0x113   : > { %6212 = dma.done.wait (%p7915_p11), %s831_s23, 16  }
 0x114   : > { %6214 = vsyncadd (%p7915_p11), %s831_s23, 4294967280  ;;  %s838_s2 = sand.u32 1, %s6430_s20  }
 0x115   : > { %s839_s17 = scalar_lea.sflag [#allocation8], %s838_s2 }
 0x116   : > { %6216 = dma.done.wait (%p7915_p11), %s839_s17, 32  }
 0x117   : > { %6218 = vsyncadd (%p7915_p11), %s839_s17, 4294967264  ;;  %s855_s10 = scalar_lea.sflag [#allocation11], %s838_s2 }
 0x118   : > { %6220 = dma.done.wait (%p7915_p11), %s855_s10, 32  }
 0x119   : > { %6222 = vsyncadd (%p7915_p11), %s855_s10, 4294967264  ;;  %s871_s1 = scalar_lea.sflag [#allocation14], %s838_s2 }
 0x11a   : > { %6224 = dma.done.wait (%p7915_p11), %s871_s1, 32  }
 0x11b   : > { %6226 = vsyncadd (%p7915_p11), %s871_s1, 4294967264  ;;  %s887_s26 = scalar_lea.sflag [#allocation17], %s6696_s21 }
 0x11c   : > { %6228 = dma.done.wait (%p7915_p11), %s887_s26, 16  }
 0x11d   : > { %6230 = vsyncadd (%p7915_p11), %s887_s26, 4294967280  ;;  %p1001_p6 = scmp.lt.s32.totalorder %s6430_s20, 1  ;;  %s7916_s17 = sld [smem:[#allocation37_spill]] }
 0x11e   : > { %s7917_s29 = sld [smem:[#allocation39_spill]]  ;;  %p5176_p2 = scmp.ne.s32.totalorder %s6430_s20, 0 }
 0x11f   : > { %s1002_s4 = scalar_select %p1001_p6, %s6430_s20, 1 }
 0x120   : > { %1034 = sbr.rel (%p5176_p2) target bundleno = 301 (0x12d), region = 140  ;;  %vm1037_vm0 = vcmask (!%p5176_p2), 261120  }
 0x121   : > { %s5280_s3 = sshll.u32 %s1002_s4, 4  ;;  %s5283_s24 = sshll.u32 %s1002_s4, 5 }
 0x122   : > { %s6742_s6 = scalar_lea.vmem %s7784_s7, %s5280_s3  ;;  %s6747_s28 = scalar_lea.vmem %s7786_s9, %s5283_s24 }
 0x123   : > { %s1005_s10 = scalar_lea.vmem %s7916_s17, %s5280_s3  ;;  %s5173_s5 = sshll.u32 %s1002_s4, 3 }
 0x124   : > { %s6737_s18 = scalar_lea.vmem %s7917_s29, %s5280_s3  ;;  %s6752_s23 = scalar_lea.vmem %s7791_s14, %s5280_s3 }
 0x125   : > { %s6757_s29 = scalar_lea.vmem %s7790_s13, %s5173_s5  ;;  %s7918_s17 = sld [smem:[#allocation36_spill]] (!%p5176_p2) }
 0x12b   : > { %v1035_v1 = vld [vmem:[%s7918_s17] sm:$0xff]  ;;  %v1036_v2 = vld [vmem:[%s7918_s17 + $0x8] sm:$0xff] }
 0x12c   : > { %1038 = vst.msk [vmem:[#allocation2] sm:$0xff] %vm1037_vm0, %v1035_v1  ;;  %1039 = vst.msk [vmem:[#allocation2 + $0x8] sm:$0xff] %vm1037_vm0, %v1036_v2 }
 0x12d PF: > { %v5870_v3 = vld [vmem:[%s1005_s10] sm:$0xff]   ;;  %v7831_v4 = vmov 0.0   ;;  %v5871_v5 = vld [vmem:[%s1005_s10 + $0x8] sm:$0xff]   ;;  %vm6260_vm1 = vmmov 0   ;;  %vm1066_vm2 = vcmask 261120   ;;  %s7919_s8 = scalar_lea.vmem [#allocation4], %s6696_s21  ;;  %v1118_v36 = vlaneseq }
 0x12e   : > { %5367 = vmatprep.subr.bf16.mxu0 %v7831_v4  ;;  %5371 = vmatprep.mubr.msk.bf16.mxu0 %vm6260_vm1, %v7831_v4  ;;  %v1111_v9 = vld [vmem:[%s6757_s29] sm:$0xff]  ;;  %v7843_v11 = vmov 2   ;;  %v7815_v12 = vmov 0   ;;  %vm1209_vm3 = vcmask 64512   ;;  %s6263_s11 = smov 96   ;;  %v7835_v23 = vmov 5  }
 0x12f   : > { %5368 = vmatpush3.bf16.msra.mxu0 %v5870_v3  ;;  %5375 = vmatprep.subr.mxu1 %v1111_v9  ;;  %v5177_v10 = vld [vmem:[%s7919_s8] ss:$0 sm:$0xff]  ;;  %v7845_v24 = vmov 1   ;;  %v7829_v25 = vmov 8   ;;  %v7839_v26 = vmov 3   ;;  %v7825_v27 = vmov 11  }
 0x130   : > { %5369 = vmatprep.subr.bf16.mxu0 %v7831_v4  ;;  %5376 = vmatpush3.msra.mxu1 %v1111_v9  ;;  %v7833_v28 = vmov 4   ;;  %v7841_v29 = vmov 6   ;;  %v7837_v30 = vmov 7   ;;  %v7827_v31 = vmov 9   ;;  %s6277_s5 = smov 120   ;;  %s6278_s3 = smov 64  }
 0x131   : > { %5380 = vmatprep.subr.mxu1 %v7831_v4  ;;  %5695 = vset.pattern.permute.xlu0 %v7843_v11  ;;  %v7819_v32 = vmov 10   ;;  %v7823_v33 = vmov 12   ;;  %v7817_v34 = vmov 13   ;;  %v7821_v35 = vmov 14   ;;  %s6279_s24 = smov 88   ;;  %s6281_s10 = smov 112  }
 0x132   : > { %5693 = vset.pattern.permute.xlu1 %v7815_v12  ;;  %v6849_v37 = vand.u32 127, %v1118_v36  ;;  %v6851_v38 = vshrl.u32 %v1118_v36, 7  ;;  %s6282_s1 = smov 80   ;;  %s6283_s26 = smov 56  }
 0x133   : > { %v1040_v6 = vld [vmem:[#allocation2] sm:$0xff]  ;;  %v1041_v7 = vld [vmem:[#allocation2 + $0x8] sm:$0xff]  ;;  %5370 = vmatpush3.bf16.msra.mxu0 %v5871_v5  ;;  %s6285_s2 = smov 72   ;;  %s6286_s22 = smov 48  }
 0x134   : > { %v1042_v8 = vpack.c.bf16 %v1041_v7, %v1040_v6  ;;  %5407 = vmatprep.subr.mxu0 %v1111_v9  ;;  %v1122_v40 = vsub.s32 %v6849_v37, %v6851_v38  ;;  %s7967_s27 = scalar_lea.vmem [#allocation10], %s6696_s21  ;;  %s7968_s25 = scalar_lea.vmem [#allocation12], %s6696_s21 }
 0x135   : > { %s7969_s0 = scalar_lea.vmem [#allocation13], %s6696_s21  ;;  %s7971_s4 = scalar_lea.vmem [#allocation16], %s6696_s21 }
 0x136   : > { %5372 = vmatmul.mubr.msk.bf16.vlgmr.msra.gmra.mrb[0].mxu0 %vm1066_vm2, %v1042_v8  ;;  %v6857_v43 = vadd.s32 7, %v1122_v40  ;;  %p5267_p13 = scmp.ne.s32.totalorder %s6430_s20, 1 }
 0x137   : > { %5408 = vmatpush3.msra.mxu0 %v1111_v9 }
 0x138   : > { %5417 = vmatprep.subr.mxu0 %v7831_v4  ;;  %vm1124_vm4 = vcmp.eq.s32.totalorder %v6857_v43, 0  ;;  %vm1127_vm5 = vcmp.eq.s32.totalorder %v6857_v43, 1  ;;  %vm1130_vm6 = vcmp.eq.s32.totalorder %v6857_v43, 2  ;;  %vm1133_vm7 = vcmp.eq.s32.totalorder %v6857_v43, 3 }
 0x139   : > { %v6861_v45 = vsel %vm1124_vm4, 1.0, %v7831_v4  ;;  %v6866_v49 = vsel %vm1127_vm5, 1.0, %v7831_v4  ;;  %v6872_v54 = vsel %vm1130_vm6, 1.0, %v7831_v4  ;;  %v6875_v56 = vsel %vm1133_vm7, 1.0, %v7831_v4 }
 0x13a   : > { %vm1136_vm8 = vcmp.eq.s32.totalorder %v6857_v43, 4  ;;  %vm1139_vm9 = vcmp.eq.s32.totalorder %v6857_v43, 5  ;;  %vm1142_vm10 = vcmp.eq.s32.totalorder %v6857_v43, 6  ;;  %vm1145_vm11 = vcmp.eq.s32.totalorder %v6857_v43, 7 }
 0x13b   : > { %v6881_v62 = vsel %vm1136_vm8, 1.0, %v7831_v4  ;;  %v6887_v3 = vsel %vm1139_vm9, 1.0, %v7831_v4  ;;  %v6890_v6 = vsel %vm1142_vm10, 1.0, %v7831_v4  ;;  %vm1148_vm12 = vcmp.eq.s32.totalorder %v6857_v43, 8 }
 0x13c   : > { %vm1151_vm13 = vcmp.eq.s32.totalorder %v6857_v43, 9  ;;  %vm1154_vm14 = vcmp.eq.s32.totalorder %v6857_v43, 10  ;;  %vm1157_vm15 = vcmp.eq.s32.totalorder %v6857_v43, 11  ;;  %vm1160_vm0 = vcmp.eq.s32.totalorder %v6857_v43, 12 }
 0x13d   : > { %v6905_v36 = vsel %vm1151_vm13, 1.0, %v7831_v4  ;;  %vm1163_vm4 = vcmp.eq.s32.totalorder %v6857_v43, 13  ;;  %vm1166_vm5 = vcmp.eq.s32.totalorder %v6857_v43, 14  ;;  %vm1896_vm6 = vcmask 1046528  }
 0x13e   : > { %vm6280_vm7 = vmmov 1  }
 0x13f   : > { %vm7016_vm8 = vmpackc.low %vm1896_vm6, %vm6280_vm7  ;;  %vm4868_vm6 = vcmask (!%p5267_p13), 517120   ;;  %vm4886_vm7 = vcmask (!%p5267_p13), 1024  }
 0x209   : > { %v1104_v13 = vpop.f32.mrb[0].mxu0 }
 0x20a   : > { %v6778_v14 = vadd.f32 %v5177_v10, %v1104_v13  ;;  %v5373_v15 = vpop.f32.mrb[1].mxu0 }
 0x20b   : > { %v1107_v16 = vpop.f32.mrb[2].mxu0  ;;  %v6896_v15 = vsel %vm1145_vm11, 1.0, %v7831_v4 }
 0x20c   : > { %v6780_v17 = vadd.f32 %v5177_v10, %v1107_v16  ;;  %1303 = vrot.lane.b32.xlu0 %v6778_v14, %s6263_s11  ;;  %v5374_v18 = vpop.f32.mrb[3].mxu0  ;;  %5377 = vmatprep.mubr.msk.f32.mxu1 %vm1209_vm3, %v6778_v14 }
 0x20e   : > { %7920 = vst [vmem:[#allocation28_spill] sm:$0xff] %v6780_v17  ;;  %5378 = vmatmul.mubr.msk.f32.vlgmr.msra.gmra.mrb[0].mxu1 %vm1209_vm3, %v6780_v17 }
 0x20f   : > { %5382 = vmatprep.mubr.msk.f32.mxu1 %vm6260_vm1, %v7831_v4 }
 0x210   : > { %1377 = vrot.lane.b32.xlu0 %v6780_v17, %s6263_s11 }
 0x27e   : > { %v1304_v19 = vpop.permute.xlu0 %1303 }
 0x27f   : > { %5381 = vmatpush3.xpose.msk.msra.mxu1 %vm1209_vm3, %v1304_v19 }
 0x280   : > { %5385 = vmatprep.subr.mxu1 %v7831_v4 }
 0x282   : > { %v1378_v20 = vpop.permute.xlu0 %1377  ;;  %5383 = vmatmul.mubr.msk.f32.vlgmr.msra.gmra.mrb[2].mxu1 %vm1209_vm3, %v6778_v14 }
 0x283   : > { %5386 = vmatpush3.xpose.msk.msra.mxu1 %vm1209_vm3, %v1378_v20  ;;  %5387 = vmatprep.mubr.msk.f32.mxu1 %vm6260_vm1, %v7831_v4 }
 0x284   : > { %5390 = vmatprep.subr.mxu1 %v7831_v4 }
 0x286   : > { %5388 = vmatmul.mubr.msk.f32.vlgmr.msra.gmra.mrb[4].mxu1 %vm1209_vm3, %v6780_v17 }
 0x287   : > { %5392 = vmatprep.mubr.msk.f32.mxu1 %vm6260_vm1, %v7831_v4 }
 0x2e1   : > { %v5379_v21 = vpop.f32.mrb[0].mxu1 }
 0x2e2   : > { %1468 = vperm.xlu0 %5695, %v5379_v21   ;;  %1298 = vperm.xlu1 %5693, %v5379_v21   ;;  %v6802_v22 = vpop.f32.mrb[1].mxu1 }
 0x2e6   : > { %5698 = vset.pattern.permute.xlu0 %v7835_v23  ;;  %5694 = vset.pattern.permute.xlu1 %v7845_v24 }
 0x2e7   : > { %1504 = vperm.xlu0 %5698, %v5379_v21   ;;  %1456 = vperm.xlu1 %5694, %v5379_v21  }
 0x2eb   : > { %5701 = vset.pattern.permute.xlu0 %v7829_v25  ;;  %5696 = vset.pattern.permute.xlu1 %v7839_v26 }
 0x2ec   : > { %1540 = vperm.xlu0 %5701, %v5379_v21   ;;  %1480 = vperm.xlu1 %5696, %v5379_v21  }
 0x2f0   : > { %5704 = vset.pattern.permute.xlu0 %v7825_v27  ;;  %5697 = vset.pattern.permute.xlu1 %v7833_v28 }
 0x2f1   : > { %1576 = vperm.xlu0 %5704, %v5379_v21   ;;  %1492 = vperm.xlu1 %5697, %v5379_v21  }
 0x2f5   : > { %5708 = vset.pattern.permute.xlu0 %v7845_v24  ;;  %5699 = vset.pattern.permute.xlu1 %v7841_v29 }
 0x2f6   : > { %1516 = vperm.xlu1 %5699, %v5379_v21   ;;  %1452 = vperm.xlu0 %5708, %v6802_v22  }
 0x2fa   : > { %5700 = vset.pattern.permute.xlu1 %v7837_v30  ;;  %5711 = vset.pattern.permute.xlu0 %v7833_v28 }
 0x2fb   : > { %1528 = vperm.xlu1 %5700, %v5379_v21   ;;  %1488 = vperm.xlu0 %5711, %v6802_v22  }
 0x2ff   : > { %5702 = vset.pattern.permute.xlu1 %v7827_v31  ;;  %5714 = vset.pattern.permute.xlu0 %v7837_v30 }
 0x300   : > { %1552 = vperm.xlu1 %5702, %v5379_v21   ;;  %1524 = vperm.xlu0 %5714, %v6802_v22  }
 0x304   : > { %5703 = vset.pattern.permute.xlu1 %v7819_v32  ;;  %5717 = vset.pattern.permute.xlu0 %v7819_v32 }
 0x305   : > { %1564 = vperm.xlu1 %5703, %v5379_v21   ;;  %1560 = vperm.xlu0 %5717, %v6802_v22  }
 0x309   : > { %5705 = vset.pattern.permute.xlu1 %v7823_v33  ;;  %5720 = vset.pattern.permute.xlu0 %v7817_v34 }
 0x30a   : > { %1588 = vperm.xlu1 %5705, %v5379_v21   ;;  %1596 = vperm.xlu0 %5720, %v6802_v22  }
 0x30e   : > { %5706 = vset.pattern.permute.xlu1 %v7817_v34  ;;  %5722 = vset.pattern.permute.xlu0 %v7821_v35 }
 0x30f   : > { %1600 = vperm.xlu1 %5706, %v5379_v21   ;;  %1612 = vperm.xlu0 %5722, %v5379_v21   ;;  %v6902_v21 = vsel %vm1148_vm12, 1.0, %v7831_v4 }
 0x313   : > { %5707 = vset.pattern.permute.xlu1 %v7815_v12  ;;  %5723 = vset.pattern.permute.xlu0 %v7815_v12 }
 0x314   : > { %1293 = vperm.xlu1 %5707, %v6802_v22  }
 0x318   : > { %5709 = vset.pattern.permute.xlu1 %v7843_v11 }
 0x319   : > { %1464 = vperm.xlu1 %5709, %v6802_v22  }
 0x31d   : > { %5710 = vset.pattern.permute.xlu1 %v7839_v26 }
 0x31e   : > { %1476 = vperm.xlu1 %5710, %v6802_v22  }
 0x322   : > { %5712 = vset.pattern.permute.xlu1 %v7835_v23 }
 0x323   : > { %1500 = vperm.xlu1 %5712, %v6802_v22  }
 0x327   : > { %5713 = vset.pattern.permute.xlu1 %v7841_v29 }
 0x328   : > { %1512 = vperm.xlu1 %5713, %v6802_v22  }
 0x32c   : > { %5715 = vset.pattern.permute.xlu1 %v7829_v25 }
 0x32d   : > { %1536 = vperm.xlu1 %5715, %v6802_v22  }
 0x331   : > { %5716 = vset.pattern.permute.xlu1 %v7827_v31 }
 0x332   : > { %1548 = vperm.xlu1 %5716, %v6802_v22  }
 0x336   : > { %5718 = vset.pattern.permute.xlu1 %v7825_v27 }
 0x337   : > { %1572 = vperm.xlu1 %5718, %v6802_v22  }
 0x33b   : > { %5719 = vset.pattern.permute.xlu1 %v7823_v33 }
 0x33c   : > { %1584 = vperm.xlu1 %5719, %v6802_v22  }
 0x340   : > { %5721 = vset.pattern.permute.xlu1 %v7821_v35 }
 0x341   : > { %1608 = vperm.xlu1 %5721, %v6802_v22  }
 0x345   : > { %5724 = vset.pattern.permute.xlu1 %v7845_v24 }
 0x355   : > { %v6853_v39 = vpop.f32.mrb[2].mxu1 }
 0x356   : > { %v5384_v41 = vpop.f32.mrb[3].mxu1 }
 0x359   : > { %v1447_v42 = vpop.f32.mrb[4].mxu1 }
 0x35a   : > { %v5389_v44 = vpop.f32.mrb[5].mxu1 }
 0x361   : > { %v1469_v46 = vpop.permute.xlu0 %1468  ;;  %v1299_v47 = vpop.permute.xlu1 %1298 }
 0x362   : > { %v1302_v48 = vmul.f32 %v6861_v45, %v1299_v47  ;;  %v1472_v57 = vmul.f32 %v6872_v54, %v1469_v46  ;;  %v6911_v47 = vsel %vm1154_vm14, 1.0, %v7831_v4 }
 0x364   : > { %v1448_v52 = vadd.f32 %v1447_v42, %v1302_v48 }
 0x366   : > { %v1505_v50 = vpop.permute.xlu0 %1504  ;;  %v1457_v51 = vpop.permute.xlu1 %1456 }
 0x367   : > { %v1460_v53 = vmul.f32 %v6866_v49, %v1457_v51  ;;  %v1508_v7 = vmul.f32 %v6887_v3, %v1505_v50 }
 0x369   : > { %v1462_v55 = vadd.f32 %v1460_v53, %v1448_v52  ;;  %v6917_v53 = vsel %vm1157_vm15, 1.0, %v7831_v4 }
 0x36b   : > { %v1541_v58 = vpop.permute.xlu0 %1540  ;;  %v1481_v59 = vpop.permute.xlu1 %1480  ;;  %v1474_v60 = vadd.f32 %v1472_v57, %v1462_v55  ;;  %v6920_v57 = vsel %vm1160_vm0, 1.0, %v7831_v4 }
 0x36c   : > { %v1484_v61 = vmul.f32 %v6875_v56, %v1481_v59  ;;  %v1544_v40 = vmul.f32 %v6902_v21, %v1541_v58 }
 0x36e   : > { %v1486_v1 = vadd.f32 %v1484_v61, %v1474_v60 }
 0x370   : > { %v1577_v63 = vpop.permute.xlu0 %1576  ;;  %v1493_v0 = vpop.permute.xlu1 %1492 }
 0x371   : > { %v1496_v2 = vmul.f32 %v6881_v62, %v1493_v0  ;;  %v1580_v58 = vmul.f32 %v6917_v53, %v1577_v63 }
 0x373   : > { %v1498_v5 = vadd.f32 %v1496_v2, %v1486_v1  ;;  %v6927_v1 = vsel %vm1163_vm4, 1.0, %v7831_v4  ;;  %vm1889_vm4 = vcmask 121856  }
 0x375   : > { %v1517_v8 = vpop.permute.xlu1 %1516  ;;  %v1453_v9 = vpop.permute.xlu0 %1452  ;;  %v1510_v10 = vadd.f32 %v1508_v7, %v1498_v5  ;;  %v6930_v5 = vsel %vm1166_vm5, 1.0, %v7831_v4  ;;  %vm2746_vm5 = vcmask 1043456  }
 0x376   : > { %v1520_v13 = vmul.f32 %v6890_v6, %v1517_v8 }
 0x378   : > { %v1522_v19 = vadd.f32 %v1520_v13, %v1510_v10 }
 0x37a   : > { %v1529_v16 = vpop.permute.xlu1 %1528  ;;  %v1489_v18 = vpop.permute.xlu0 %1488 }
 0x37b   : > { %v1532_v20 = vmul.f32 %v6896_v15, %v1529_v16 }
 0x37d   : > { %v1534_v22 = vadd.f32 %v1532_v20, %v1522_v19 }
 0x37f   : > { %v1553_v41 = vpop.permute.xlu1 %1552  ;;  %v1525_v42 = vpop.permute.xlu0 %1524  ;;  %v1546_v44 = vadd.f32 %v1544_v40, %v1534_v22  ;;  %v1459_v40 = vmul.f32 %v6866_v49, %v1453_v9 }
 0x380   : > { %v1556_v46 = vmul.f32 %v6905_v36, %v1553_v41 }
 0x382   : > { %v1558_v51 = vadd.f32 %v1556_v46, %v1546_v44 }
 0x384   : > { %v1565_v48 = vpop.permute.xlu1 %1564  ;;  %v1561_v50 = vpop.permute.xlu0 %1560 }
 0x385   : > { %v1568_v52 = vmul.f32 %v6911_v47, %v1565_v48 }
 0x387   : > { %v1570_v55 = vadd.f32 %v1568_v52, %v1558_v51 }
 0x389   : > { %v1589_v59 = vpop.permute.xlu1 %1588  ;;  %v1597_v60 = vpop.permute.xlu0 %1596  ;;  %v1582_v61 = vadd.f32 %v1580_v58, %v1570_v55  ;;  %v1495_v58 = vmul.f32 %v6881_v62, %v1489_v18 }
 0x38a   : > { %v1592_v0 = vmul.f32 %v6920_v57, %v1589_v59 }
 0x38c   : > { %v1594_v8 = vadd.f32 %v1592_v0, %v1582_v61 }
 0x38e   : > { %v1601_v2 = vpop.permute.xlu1 %1600  ;;  %v1613_v7 = vpop.permute.xlu0 %1612 }
 0x38f   : > { %v1604_v63 = vmul.f32 %v6927_v1, %v1601_v2  ;;  %v1616_v13 = vmul.f32 %v6930_v5, %v1613_v7 }
 0x391   : > { %v1606_v10 = vadd.f32 %v1604_v63, %v1594_v8  ;;  %v1531_v8 = vmul.f32 %v6896_v15, %v1525_v42  ;;  %v1603_v42 = vmul.f32 %v6927_v1, %v1597_v60 }
 0x393   : > { %v1294_v16 = vpop.permute.xlu1 %1293  ;;  %v1618_v19 = vadd.f32 %v1616_v13, %v1606_v10 }
 0x394   : > { %v1301_v20 = vmul.f32 %v6861_v45, %v1294_v16 }
 0x395   : > { %v1622_v43 = vsel %vm1209_vm3, %v1618_v19, -inf }
 0x396   : > { %v1374_v22 = vadd.f32 %v6853_v39, %v1301_v20  ;;  %1623 = vmax.xlane.f32.xlu0 %v1622_v43 }
 0x398   : > { %v1465_v41 = vpop.permute.xlu1 %1464  ;;  %v1461_v44 = vadd.f32 %v1459_v40, %v1374_v22  ;;  %v1567_v22 = vmul.f32 %v6911_v47, %v1561_v50 }
 0x399   : > { %v1471_v46 = vmul.f32 %v6872_v54, %v1465_v41 }
 0x39b   : > { %v1473_v51 = vadd.f32 %v1471_v46, %v1461_v44 }
 0x39d   : > { %v1477_v48 = vpop.permute.xlu1 %1476 }
 0x39e   : > { %v1483_v52 = vmul.f32 %v6875_v56, %v1477_v48 }
 0x3a0   : > { %v1485_v55 = vadd.f32 %v1483_v52, %v1473_v51 }
 0x3a2   : > { %v1501_v59 = vpop.permute.xlu1 %1500  ;;  %v1497_v61 = vadd.f32 %v1495_v58, %v1485_v55 }
 0x3a3   : > { %v1507_v0 = vmul.f32 %v6887_v3, %v1501_v59 }
 0x3a5   : > { %v1509_v39 = vadd.f32 %v1507_v0, %v1497_v61 }
 0x3a7   : > { %v1513_v2 = vpop.permute.xlu1 %1512 }
 0x3a8   : > { %v1519_v7 = vmul.f32 %v6890_v6, %v1513_v2 }
 0x3aa   : > { %v1521_v9 = vadd.f32 %v1519_v7, %v1509_v39 }
 0x3ac   : > { %v1537_v63 = vpop.permute.xlu1 %1536  ;;  %v1533_v10 = vadd.f32 %v1531_v8, %v1521_v9 }
 0x3ad   : > { %v1543_v13 = vmul.f32 %v6902_v21, %v1537_v63 }
 0x3af   : > { %v1545_v20 = vadd.f32 %v1543_v13, %v1533_v10 }
 0x3b1   : > { %v1549_v16 = vpop.permute.xlu1 %1548 }
 0x3b2   : > { %v1555_v43 = vmul.f32 %v6905_v36, %v1549_v16 }
 0x3b4   : > { %v1557_v18 = vadd.f32 %v1555_v43, %v1545_v20 }
 0x3b6   : > { %v1573_v40 = vpop.permute.xlu1 %1572  ;;  %v1569_v41 = vadd.f32 %v1567_v22, %v1557_v18 }
 0x3b7   : > { %v1579_v44 = vmul.f32 %v6917_v53, %v1573_v40 }
 0x3b9   : > { %v1581_v48 = vadd.f32 %v1579_v44, %v1569_v41 }
 0x3bb   : > { %v1585_v46 = vpop.permute.xlu1 %1584 }
 0x3bc   : > { %v1591_v51 = vmul.f32 %v6920_v57, %v1585_v46 }
 0x3be   : > { %v1593_v52 = vadd.f32 %v1591_v51, %v1581_v48 }
 0x3c0   : > { %v1609_v55 = vpop.permute.xlu1 %1608  ;;  %v1605_v58 = vadd.f32 %v1603_v42, %v1593_v52 }
 0x3c1   : > { %v1615_v59 = vmul.f32 %v6930_v5, %v1609_v55 }
 0x3c3   : > { %v1617_v61 = vadd.f32 %v1615_v59, %v1605_v58  ;;  %v1174_v59 = vsub.s32 1, %v6851_v38 }
 0x3c5   : > { %v1619_v0 = vsel %vm1209_vm3, %v1617_v61, -inf }
 0x3c6   : > { %1620 = vmax.xlane.f32.xlu1 %v1619_v0 }
 0x423   : > { %v1624_v50 = vpop.xlane.xlu0 %1623 }
 0x424   : > { %v1626_v2 = vsub.f32 %v1618_v19, %v1624_v50  ;;  %v1112_v50 = vld [vmem:[%s6752_s23] sm:$0xff] }
 0x426   : > { %v1629_v39 = vmul.f32 1.442695, %v1626_v2  ;;  %v1113_v2 = vld [vmem:[%s6752_s23 + $0x8] sm:$0x7f]  ;;  %s6284_s23 = smov 104  }
 0x428   : > { %5878 = vpow2.f32 %v1629_v39  ;;  %v1179_v39 = vsub.s32 2, %v6851_v38 }
 0x432   : > { %v5879_v7 = vpop.eup %5878 }
 0x433   : > { %v1634_v9 = vsel %vm1209_vm3, %v5879_v7, 0.0 }
 0x434   : > { %1635 = vadd.xlane.f32.xlu0 %v1634_v9  ;;  %v1175_v9 = vadd.s32 7, %v1174_v59 }
 0x436   : > { %vm1176_vm9 = vcmp.eq.s32.totalorder %v6849_v37, %v1175_v9 }
 0x44a   : > { %1980 = vrot.lane.b32.xlu0 %v6780_v17, %s6277_s5 }
 0x453   : > { %v1621_v60 = vpop.xlane.xlu1 %1620 }
 0x454   : > { %v1625_v8 = vsub.f32 %v1617_v61, %v1621_v60  ;;  %v1169_v61 = vsub.s32 0, %v6851_v38 }
 0x456   : > { %v1627_v63 = vmul.f32 1.442695, %v1625_v8  ;;  %v1170_v60 = vadd.s32 7, %v1169_v61  ;;  %v7014_v8 = vpack.c.bf16 %v1113_v2, %v1112_v50  ;;  %v1194_v2 = vsub.s32 5, %v6851_v38 }
 0x458   : > { %5880 = vpow2.f32 %v1627_v63  ;;  %7921 = vst [vmem:[#allocation29_spill] sm:$0xff] %v7014_v8  ;;  %v7922_v63 = vmov 0  ;;  %vm1171_vm10 = vcmp.eq.s32.totalorder %v6849_v37, %v1170_v60 }
 0x459   : > { %v7923_v63 = vsel %vm7016_vm8, 4294967295, %v7922_v63 }
 0x45a   : > { %7924 = vst [vmem:[#allocation30_spill] sm:$0xff] %v7923_v63 }
 0x462   : > { %v5881_v10 = vpop.eup %5880 }
 0x463   : > { %v1631_v13 = vsel %vm1209_vm3, %v5881_v10, 0.0 }
 0x464   : > { %1632 = vadd.xlane.f32.xlu1 %v1631_v13  ;;  %v1180_v13 = vadd.s32 7, %v1179_v39 }
 0x466   : > { %vm1181_vm11 = vcmp.eq.s32.totalorder %v6849_v37, %v1180_v13  ;;  %v1199_v13 = vsub.s32 6, %v6851_v38 }
 0x467   : > { %v7043_v61 = vsel %vm1181_vm11, 1.0, %v7831_v4 }
 0x468   : > { %v1200_v34 = vadd.s32 7, %v1199_v13 }
 0x46a   : > { %vm1201_vm15 = vcmp.eq.s32.totalorder %v6849_v37, %v1200_v34 }
 0x475   : > { %1978 = vrot.lane.b32.xlu1 %v6778_v14, %s6277_s5 }
 0x479   : > { %1641 = vrot.lane.b32.xlu1 %v6778_v14, %s6278_s3 }
 0x4c1   : > { %v1636_v19 = vpop.xlane.xlu0 %1635 }
 0x4c2   : > { %5882 = vrcp.f32 %v1636_v19 }
 0x4c5   : > { %v6976_v22 = vpop.permute.xlu0 %1980 }
 0x4cc   : > { %v5883_v16 = vpop.eup %5882 }
 0x4cd   : > { %v6958_v20 = vmul.f32 %v5883_v16, %v5879_v7 }
 0x4cf   : > { %1810 = vperm.xlu1 %5724, %v6958_v20   ;;  %1798 = vperm.xlu0 %5723, %v6958_v20  }
 0x4d3   : > { %5726 = vset.pattern.permute.xlu1 %v7839_v26  ;;  %5725 = vset.pattern.permute.xlu0 %v7843_v11 }
 0x4d4   : > { %1834 = vperm.xlu1 %5726, %v6958_v20   ;;  %1822 = vperm.xlu0 %5725, %v6958_v20  }
 0x4d8   : > { %5727 = vset.pattern.permute.xlu1 %v7833_v28  ;;  %5728 = vset.pattern.permute.xlu0 %v7835_v23 }
 0x4d9   : > { %1846 = vperm.xlu1 %5727, %v6958_v20   ;;  %1858 = vperm.xlu0 %5728, %v6958_v20  }
 0x4dd   : > { %5729 = vset.pattern.permute.xlu0 %v7841_v29  ;;  %5730 = vset.pattern.permute.xlu1 %v7815_v12 }
 0x4de   : > { %1870 = vperm.xlu0 %5729, %v6958_v20  }
 0x4e2   : > { %5734 = vset.pattern.permute.xlu0 %v7833_v28 }
 0x4f1   : > { %v1633_v43 = vpop.xlane.xlu1 %1632 }
 0x4f2   : > { %5884 = vrcp.f32 %v1633_v43  ;;  %v1189_v43 = vsub.s32 4, %v6851_v38 }
 0x4f4   : > { %v1190_v50 = vadd.s32 7, %v1189_v43 }
 0x4f5   : > { %v6974_v18 = vpop.permute.xlu1 %1978 }
 0x4f6   : > { %5409 = vmatprep.mubr.msk.f32.mxu0 %vm1209_vm3, %v6974_v18  ;;  %vm1191_vm13 = vcmp.eq.s32.totalorder %v6849_v37, %v1190_v50 }
 0x4f7   : > { %5410 = vmatmul.mubr.msk.f32.vlgmr.msra.gmra.mrb[4].mxu0 %vm1209_vm3, %v6976_v22 }
 0x4f8   : > { %5419 = vmatprep.mubr.msk.f32.mxu0 %vm6260_vm1, %v7831_v4 }
 0x4f9   : > { %v1642_v40 = vpop.permute.xlu1 %1641 }
 0x4fa   : > { %5391 = vmatpush3.msra.mxu1 %v1642_v40 }
 0x4fb   : > { %5395 = vmatprep.subr.mxu1 %v7831_v4 }
 0x4fc   : > { %v5885_v41 = vpop.eup %5884 }
 0x4fd   : > { %v1639_v44 = vmul.f32 %v5885_v41, %v5881_v10  ;;  %v1184_v10 = vsub.s32 3, %v6851_v38 }
 0x4ff   : > { %5393 = vmatmul.mubr.msk.f32.vlgmr.msra.gmra.mrb[6].mxu1 %vm1209_vm3, %v1639_v44  ;;  %1794 = vperm.xlu1 %5730, %v1639_v44   ;;  %v1185_v40 = vadd.s32 7, %v1184_v10 }
 0x500   : > { %1842 = vperm.xlu0 %5734, %v1639_v44   ;;  %5397 = vmatprep.mubr.msk.f32.mxu1 %vm6260_vm1, %v7831_v4 }
 0x501   : > { %vm1186_vm12 = vcmp.eq.s32.totalorder %v6849_v37, %v1185_v40 }
 0x503   : > { %5731 = vset.pattern.permute.xlu1 %v7845_v24 }
 0x504   : > { %1717 = vrot.lane.b32.xlu0 %v6780_v17, %s6278_s3  ;;  %1806 = vperm.xlu1 %5731, %v1639_v44  }
 0x505   : > { %5739 = vset.pattern.permute.xlu0 %v7815_v12 }
 0x508   : > { %2147 = vrot.lane.b32.xlu0 %v6780_v17, %s6279_s24  ;;  %5732 = vset.pattern.permute.xlu1 %v7843_v11 }
 0x509   : > { %1818 = vperm.xlu1 %5732, %v1639_v44  }
 0x50d   : > { %5733 = vset.pattern.permute.xlu1 %v7839_v26 }
 0x50e   : > { %1830 = vperm.xlu1 %5733, %v1639_v44  }
 0x512   : > { %5735 = vset.pattern.permute.xlu1 %v7835_v23 }
 0x513   : > { %1854 = vperm.xlu1 %5735, %v1639_v44  }
 0x517   : > { %5736 = vset.pattern.permute.xlu1 %v7841_v29 }
 0x518   : > { %1866 = vperm.xlu1 %5736, %v1639_v44  }
 0x51c   : > { %5737 = vset.pattern.permute.xlu1 %v7837_v30 }
 0x51d   : > { %1878 = vperm.xlu1 %5737, %v1639_v44   ;;  %v7035_v44 = vsel %vm1176_vm9, 1.0, %v7831_v4 }
 0x51e   : > { %7925 = vst [vmem:[#allocation31_spill] sm:$0xff] %v7035_v44 }
 0x521   : > { %1882 = vperm.xlu1 %5737, %v6958_v20  }
 0x525   : > { %2073 = vrot.lane.b32.xlu1 %v6778_v14, %s6279_s24 }
 0x526   : > { %5738 = vset.pattern.permute.xlu1 %v7815_v12  ;;  %v1204_v12 = vsub.s32 7, %v6851_v38 }
 0x54e   : > { %v1799_v46 = vpop.permute.xlu0 %1798  ;;  %v1811_v48 = vpop.permute.xlu1 %1810 }
 0x54f   : > { %v1814_v39 = vmul.f32 %v7035_v44, %v1811_v48 }
 0x553   : > { %v1823_v51 = vpop.permute.xlu0 %1822  ;;  %v7001_v42 = vpop.permute.xlu1 %1834 }
 0x554   : > { %v1826_v10 = vmul.f32 %v7043_v61, %v1823_v51 }
 0x558   : > { %v7003_v52 = vpop.permute.xlu0 %1858  ;;  %v7005_v55 = vpop.permute.xlu1 %1846 }
 0x55d   : > { %v7007_v58 = vpop.permute.xlu0 %1870 }
 0x57e   : > { %v1795_v0 = vpop.permute.xlu1 %1794 }
 0x57f   : > { %v1843_v7 = vpop.permute.xlu0 %1842 }
 0x583   : > { %v1718_v19 = vpop.permute.xlu0 %1717  ;;  %v1807_v16 = vpop.permute.xlu1 %1806 }
 0x584   : > { %5396 = vmatpush3.msra.mxu1 %v1718_v19  ;;  %v1813_v60 = vmul.f32 %v7035_v44, %v1807_v16  ;;  %v1195_v16 = vadd.s32 7, %v1194_v2  ;;  %v1205_v2 = vadd.s32 7, %v1204_v12 }
 0x585   : > { %5398 = vmatmul.mubr.msk.f32.vlgmr.msra.gmra.mrb[8].mxu1 %vm1209_vm3, %v6958_v20  ;;  %5557 = vmatprep.subr.msk.bf16.mxu1 %vm7016_vm8, %v7014_v8  ;;  %v7038_v20 = vsel %vm1171_vm10, 1.0, %v7831_v4 }
 0x586   : > { %5560 = vmatpush3.bf16.msk.msra.mxu1 %vm7016_vm8, %v7014_v8  ;;  %7926 = vst [vmem:[#allocation32_spill] sm:$0xff] %v7038_v20  ;;  %v1802_v9 = vmul.f32 %v7038_v20, %v1799_v46  ;;  %v1801_v19 = vmul.f32 %v7038_v20, %v1795_v0  ;;  %v7059_v46 = vsel %vm1186_vm12, 1.0, %v7831_v4  ;;  %v7065_v0 = vsel %vm1191_vm13, 1.0, %v7831_v4 }
 0x587   : > { %v2148_v41 = vpop.permute.xlu0 %2147  ;;  %5412 = vmatprep.subr.mxu1 %v7831_v4  ;;  %v1838_v35 = vmul.f32 %v7059_v46, %v7001_v42  ;;  %vm1196_vm14 = vcmp.eq.s32.totalorder %v6849_v37, %v1195_v16  ;;  %v1849_v38 = vmul.f32 %v7065_v0, %v1843_v7  ;;  %vm1206_vm0 = vcmp.eq.s32.totalorder %v6849_v37, %v1205_v2 }
 0x588   : > { %5418 = vmatpush3.xpose.msk.msra.mxu0 %vm1209_vm3, %v2148_v41  ;;  %v1819_v59 = vpop.permute.xlu1 %1818  ;;  %v1816_v40 = vadd.f32 %v1814_v39, %v1802_v9  ;;  %v1850_v9 = vmul.f32 %v7065_v0, %v7005_v55  ;;  %v7084_v42 = vsel %vm1206_vm0, 1.0, %v7831_v4 }
 0x589   : > { %5427 = vmatprep.subr.mxu0 %v7831_v4  ;;  %v1825_v48 = vmul.f32 %v7043_v61, %v1819_v59  ;;  %7927 = vst [vmem:[#allocation33_spill] sm:$0xff] %v7084_v42 }
 0x58a   : > { %v1828_v51 = vadd.f32 %v1826_v10, %v1816_v40 }
 0x58b   : > { %5420 = vmatmul.mubr.msk.f32.vlgmr.msra.gmra.mrb[6].mxu0 %vm1209_vm3, %v6976_v22  ;;  %v1815_v22 = vadd.f32 %v1813_v60, %v1801_v19  ;;  %v7075_v60 = vsel %vm1196_vm14, 1.0, %v7831_v4 }
 0x58c   : > { %5429 = vmatprep.mubr.msk.f32.mxu0 %vm6260_vm1, %v7831_v4  ;;  %v1840_v39 = vadd.f32 %v1838_v35, %v1828_v51  ;;  %v1862_v34 = vmul.f32 %v7075_v60, %v7003_v52 }
 0x58d   : > { %v1831_v43 = vpop.permute.xlu1 %1830  ;;  %v1827_v32 = vadd.f32 %v1825_v48, %v1815_v22 }
 0x58e   : > { %v1837_v41 = vmul.f32 %v7059_v46, %v1831_v43  ;;  %v1852_v12 = vadd.f32 %v1850_v9, %v1840_v39  ;;  %v7929_v9 = vmov 10  }
 0x590   : > { %v1839_v50 = vadd.f32 %v1837_v41, %v1827_v32  ;;  %v7080_v32 = vsel %vm1201_vm15, 1.0, %v7831_v4  ;;  %v1864_v48 = vadd.f32 %v1862_v34, %v1852_v12 }
 0x591   : > { %v1874_v43 = vmul.f32 %v7080_v32, %v7007_v58 }
 0x592   : > { %v1855_v59 = vpop.permute.xlu1 %1854  ;;  %v1851_v10 = vadd.f32 %v1849_v38, %v1839_v50  ;;  %v7930_v38 = vmov 13  }
 0x593   : > { %v1861_v13 = vmul.f32 %v7075_v60, %v1855_v59  ;;  %v1876_v41 = vadd.f32 %v1874_v43, %v1864_v48 }
 0x595   : > { %v1863_v55 = vadd.f32 %v1861_v13, %v1851_v10  ;;  %v7931_v10 = vmov 0  }
 0x597   : > { %v1867_v19 = vpop.permute.xlu1 %1866 }
 0x598   : > { %v1873_v35 = vmul.f32 %v7080_v32, %v1867_v19 }
 0x59a   : > { %v1875_v16 = vadd.f32 %v1873_v35, %v1863_v55 }
 0x59c   : > { %v1879_v7 = vpop.permute.xlu1 %1878 }
 0x59d   : > { %v1885_v37 = vmul.f32 %v7084_v42, %v1879_v7 }
 0x59f   : > { %v1887_v40 = vadd.f32 %v1885_v37, %v1875_v16 }
 0x5a0   : > { %v1883_v22 = vpop.permute.xlu1 %1882 }
 0x5a1   : > { %v1886_v51 = vmul.f32 %v7084_v42, %v1883_v22  ;;  %5404 = vmatprep.mubr.msk.f32.mxu1 %vm1889_vm4, %v1887_v40 }
 0x5a3   : > { %v1888_v59 = vadd.f32 %v1886_v51, %v1876_v41 }
 0x5a4   : > { %v2074_v50 = vpop.permute.xlu1 %2073 }
 0x5a5   : > { %5405 = vmatmul.mubr.msk.f32.vlgmr.msra.gmra.mrb[10].mxu1 %vm1889_vm4, %v1888_v59 }
 0x5a6   : > { %5413 = vmatpush3.xpose.msk.msra.mxu1 %vm1209_vm3, %v2074_v50  ;;  %5414 = vmatprep.mubr.msk.f32.mxu1 %vm6260_vm1, %v7831_v4 }
 0x5a7   : > { %5422 = vmatprep.subr.mxu1 %v7831_v4 }
 0x5a9   : > { %5415 = vmatmul.mubr.msk.f32.vlgmr.msra.gmra.mrb[12].mxu1 %vm1209_vm3, %v6974_v18  ;;  %v7928_v18 = vmov 14  }
 0x5aa   : > { %5424 = vmatprep.mubr.msk.f32.mxu1 %vm6260_vm1, %v7831_v4 }
 0x5ca   : > { %v5411_v52 = vpop.f32.mrb[4].mxu0 }
 0x5cb   : > { %2068 = vperm.xlu0 %5739, %v5411_v52   ;;  %v2052_v58 = vpop.f32.mrb[5].mxu0 }
 0x5cc   : > { %2063 = vperm.xlu1 %5738, %v2052_v58  }
 0x5cf   : > { %5741 = vset.pattern.permute.xlu0 %v7843_v11 }
 0x5d0   : > { %2234 = vperm.xlu0 %5741, %v2052_v58   ;;  %5740 = vset.pattern.permute.xlu1 %v7845_v24 }
 0x5d1   : > { %2222 = vperm.xlu1 %5740, %v2052_v58  }
 0x5d2   : > { %v7104_v2 = vpop.f32.mrb[6].mxu1 }
 0x5d3   : > { %v5394_v39 = vpop.f32.mrb[7].mxu1 }
 0x5d4   : > { %5744 = vset.pattern.permute.xlu0 %v7839_v26 }
 0x5d5   : > { %2250 = vperm.xlu0 %5744, %v5411_v52   ;;  %2226 = vperm.xlu1 %5740, %v5411_v52  }
 0x5d9   : > { %5746 = vset.pattern.permute.xlu0 %v7835_v23  ;;  %5742 = vset.pattern.permute.xlu1 %v7843_v11 }
 0x5da   : > { %2270 = vperm.xlu0 %5746, %v2052_v58   ;;  %2238 = vperm.xlu1 %5742, %v5411_v52  }
 0x5de   : > { %5749 = vset.pattern.permute.xlu0 %v7841_v29  ;;  %5743 = vset.pattern.permute.xlu1 %v7839_v26 }
 0x5df   : > { %2286 = vperm.xlu0 %5749, %v5411_v52   ;;  %2246 = vperm.xlu1 %5743, %v2052_v58  }
 0x5e3   : > { %5751 = vset.pattern.permute.xlu0 %v7829_v25  ;;  %5745 = vset.pattern.permute.xlu1 %v7833_v28 }
 0x5e4   : > { %2306 = vperm.xlu0 %5751, %v2052_v58   ;;  %2258 = vperm.xlu1 %5745, %v2052_v58  }
 0x5e8   : > { %5754 = vset.pattern.permute.xlu0 %v7827_v31  ;;  %2262 = vperm.xlu1 %5745, %v5411_v52  }
 0x5e9   : > { %2322 = vperm.xlu0 %5754, %v5411_v52  }
 0x5ec   : > { %5747 = vset.pattern.permute.xlu1 %v7835_v23 }
 0x5ed   : > { %5756 = vset.pattern.permute.xlu0 %v7825_v27  ;;  %2274 = vperm.xlu1 %5747, %v5411_v52  }
 0x5ee   : > { %2342 = vperm.xlu0 %5756, %v2052_v58  }
 0x5f1   : > { %5748 = vset.pattern.permute.xlu1 %v7841_v29 }
 0x5f2   : > { %5759 = vset.pattern.permute.xlu0 %v7823_v33  ;;  %2282 = vperm.xlu1 %5748, %v2052_v58  }
 0x5f3   : > { %2358 = vperm.xlu0 %5759, %v5411_v52  }
 0x5f6   : > { %5750 = vset.pattern.permute.xlu1 %v7837_v30 }
 0x5f7   : > { %5761 = vset.pattern.permute.xlu0 %v7928_v18  ;;  %2294 = vperm.xlu1 %5750, %v2052_v58  }
 0x5f8   : > { %2378 = vperm.xlu0 %5761, %v2052_v58  }
 0x5fb   : > { %2298 = vperm.xlu1 %5750, %v5411_v52  }
 0x5fc   : > { %5767 = vset.pattern.permute.xlu0 %v7833_v28 }
 0x5ff   : > { %5752 = vset.pattern.permute.xlu1 %v7829_v25 }
 0x600   : > { %2310 = vperm.xlu1 %5752, %v5411_v52  }
 0x604   : > { %5753 = vset.pattern.permute.xlu1 %v7827_v31 }
 0x605   : > { %2318 = vperm.xlu1 %5753, %v2052_v58  }
 0x609   : > { %5755 = vset.pattern.permute.xlu1 %v7929_v9 }
 0x60a   : > { %2330 = vperm.xlu1 %5755, %v2052_v58  }
 0x60e   : > { %2334 = vperm.xlu1 %5755, %v5411_v52  }
 0x612   : > { %5757 = vset.pattern.permute.xlu1 %v7825_v27 }
 0x613   : > { %2346 = vperm.xlu1 %5757, %v5411_v52  }
 0x617   : > { %5758 = vset.pattern.permute.xlu1 %v7823_v33 }
 0x618   : > { %2354 = vperm.xlu1 %5758, %v2052_v58  }
 0x61c   : > { %5760 = vset.pattern.permute.xlu1 %v7930_v38 }
 0x61d   : > { %2366 = vperm.xlu1 %5760, %v2052_v58  }
 0x621   : > { %2370 = vperm.xlu1 %5760, %v5411_v52  }
 0x625   : > { %5762 = vset.pattern.permute.xlu1 %v7928_v18 }
 0x626   : > { %2382 = vperm.xlu1 %5762, %v5411_v52  }
 0x62a   : > { %5763 = vset.pattern.permute.xlu1 %v7931_v10 }
 0x64a   : > { %v2069_v37 = vpop.permute.xlu0 %2068 }
 0x64b   : > { %v2064_v13 = vpop.permute.xlu1 %2063  ;;  %v2072_v30 = vmul.f32 %v6861_v45, %v2069_v37 }
 0x64c   : > { %v2071_v31 = vmul.f32 %v6861_v45, %v2064_v13 }
 0x64f   : > { %v2235_v22 = vpop.permute.xlu0 %2234 }
 0x650   : > { %v2223_v19 = vpop.permute.xlu1 %2222 }
 0x651   : > { %v2229_v4 = vmul.f32 %v6866_v49, %v2223_v19 }
 0x654   : > { %v2227_v12 = vpop.permute.xlu1 %2226  ;;  %v2251_v59 = vpop.permute.xlu0 %2250 }
 0x655   : > { %v2230_v13 = vmul.f32 %v6866_v49, %v2227_v12  ;;  %v2254_v12 = vmul.f32 %v6875_v56, %v2251_v59 }
 0x658   : > { %v1789_v35 = vpop.f32.mrb[8].mxu1 }
 0x659   : > { %v5399_v34 = vpop.f32.mrb[9].mxu1  ;;  %v2239_v55 = vpop.permute.xlu1 %2238 }
 0x65a   : > { %v2271_v52 = vpop.permute.xlu0 %2270  ;;  %v2242_v37 = vmul.f32 %v6872_v54, %v2239_v55 }
 0x65e   : > { %v2217_v7 = vpop.f32.mrb[6].mxu0  ;;  %v2247_v48 = vpop.permute.xlu1 %2246 }
 0x65f   : > { %v5421_v43 = vpop.f32.mrb[7].mxu0  ;;  %v2287_v26 = vpop.permute.xlu0 %2286 }
 0x663   : > { %v2259_v16 = vpop.permute.xlu1 %2258  ;;  %v2307_v19 = vpop.permute.xlu0 %2306 }
 0x664   : > { %v2265_v43 = vmul.f32 %v6881_v62, %v2259_v16 }
 0x667   : > { %v2263_v40 = vpop.permute.xlu1 %2262 }
 0x668   : > { %v2323_v16 = vpop.permute.xlu0 %2322 }
 0x66c   : > { %v2275_v41 = vpop.permute.xlu1 %2274 }
 0x671   : > { %v2283_v51 = vpop.permute.xlu1 %2282 }
 0x676   : > { %v2295_v50 = vpop.permute.xlu1 %2294 }
 0x678   : > { %v5406_v58 = vpop.f32.mrb[10].mxu1 }
 0x679   : > { %v7129_v39 = vadd.f32 %v5406_v58, %v1789_v35  ;;  %v1966_v33 = vpop.f32.mrb[11].mxu1  ;;  %v2241_v35 = vmul.f32 %v6872_v54, %v2235_v22 }
 0x67a   : > { %v7132_v27 = vadd.f32 %v1966_v33, %v7104_v2  ;;  %v2299_v34 = vpop.permute.xlu1 %2298  ;;  %v2218_v33 = vadd.f32 %v2217_v7, %v2072_v30  ;;  %v2253_v2 = vmul.f32 %v6875_v56, %v2247_v48  ;;  %v2301_v7 = vmul.f32 %v6896_v15, %v2295_v50 }
 0x67b   : > { %v2302_v59 = vmul.f32 %v6896_v15, %v2299_v34 }
 0x67c   : > { %v2143_v25 = vpop.f32.mrb[12].mxu1  ;;  %v2232_v18 = vadd.f32 %v2230_v13, %v2218_v33 }
 0x67d   : > { %v2144_v28 = vadd.f32 %v2143_v25, %v2071_v31  ;;  %v5416_v23 = vpop.f32.mrb[13].mxu1 }
 0x67e   : > { %v2277_v23 = vmul.f32 %v6887_v3, %v2271_v52  ;;  %v2244_v30 = vadd.f32 %v2242_v37, %v2232_v18  ;;  %v2278_v52 = vmul.f32 %v6887_v3, %v2275_v41  ;;  %v2343_v18 = vpop.permute.xlu0 %2342 }
 0x67f   : > { %v2231_v58 = vadd.f32 %v2229_v4, %v2144_v28  ;;  %v2311_v29 = vpop.permute.xlu1 %2310  ;;  %v2289_v4 = vmul.f32 %v6890_v6, %v2283_v51 }
 0x681   : > { %v2243_v11 = vadd.f32 %v2241_v35, %v2231_v58  ;;  %v2256_v58 = vadd.f32 %v2254_v12, %v2244_v30 }
 0x682   : > { %v2359_v37 = vpop.permute.xlu0 %2358 }
 0x683   : > { %v2255_v24 = vadd.f32 %v2253_v2, %v2243_v11  ;;  %v2266_v11 = vmul.f32 %v6881_v62, %v2263_v40  ;;  %v2290_v2 = vmul.f32 %v6890_v6, %v2287_v26  ;;  %v2326_v26 = vmul.f32 %v6905_v36, %v2323_v16 }
 0x684   : > { %v2319_v25 = vpop.permute.xlu1 %2318  ;;  %v2362_v16 = vmul.f32 %v6920_v57, %v2359_v37 }
 0x685   : > { %v2267_v31 = vadd.f32 %v2265_v43, %v2255_v24  ;;  %v2313_v24 = vmul.f32 %v6902_v21, %v2307_v19  ;;  %v2268_v43 = vadd.f32 %v2266_v11, %v2256_v58  ;;  %v2325_v50 = vmul.f32 %v6905_v36, %v2319_v25 }
 0x686   : > { %v2379_v12 = vpop.permute.xlu0 %2378 }
 0x687   : > { %v2279_v28 = vadd.f32 %v2277_v23, %v2267_v31  ;;  %v2280_v33 = vadd.f32 %v2278_v52, %v2268_v43  ;;  %v2314_v31 = vmul.f32 %v6902_v21, %v2311_v29 }
 0x689   : > { %v2291_v48 = vadd.f32 %v2289_v4, %v2279_v28  ;;  %v2331_v22 = vpop.permute.xlu1 %2330  ;;  %v2292_v23 = vadd.f32 %v2290_v2, %v2280_v33 }
 0x68a   : > { %v2337_v41 = vmul.f32 %v6911_v47, %v2331_v22 }
 0x68b   : > { %v2303_v35 = vadd.f32 %v2301_v7, %v2291_v48  ;;  %v2304_v19 = vadd.f32 %v2302_v59, %v2292_v23  ;;  %v2349_v7 = vmul.f32 %v6917_v53, %v2343_v18 }
 0x68d   : > { %v2335_v55 = vpop.permute.xlu1 %2334  ;;  %v2315_v51 = vadd.f32 %v2313_v24, %v2303_v35  ;;  %v2316_v30 = vadd.f32 %v2314_v31, %v2304_v19  ;;  %v2385_v24 = vmul.f32 %v6930_v5, %v2379_v12 }
 0x68e   : > { %v2338_v34 = vmul.f32 %v6911_v47, %v2335_v55 }
 0x68f   : > { %v2327_v40 = vadd.f32 %v2325_v50, %v2315_v51  ;;  %v2328_v11 = vadd.f32 %v2326_v26, %v2316_v30 }
 0x691   : > { %v2339_v4 = vadd.f32 %v2337_v41, %v2327_v40  ;;  %v2340_v52 = vadd.f32 %v2338_v34, %v2328_v11 }
 0x692   : > { %v2347_v13 = vpop.permute.xlu1 %2346 }
 0x693   : > { %v2351_v48 = vadd.f32 %v2349_v7, %v2339_v4  ;;  %v2350_v29 = vmul.f32 %v6917_v53, %v2347_v13 }
 0x695   : > { %v2352_v51 = vadd.f32 %v2350_v29, %v2340_v52  ;;  %v7933_v52 = vmov 2  }
 0x697   : > { %v2355_v28 = vpop.permute.xlu1 %2354  ;;  %v2364_v2 = vadd.f32 %v2362_v16, %v2352_v51  ;;  %v7936_v51 = vmov 7  }
 0x698   : > { %v2361_v25 = vmul.f32 %v6920_v57, %v2355_v28 }
 0x69a   : > { %v2363_v22 = vadd.f32 %v2361_v25, %v2351_v48 }
 0x69c   : > { %v2367_v35 = vpop.permute.xlu1 %2366 }
 0x69d   : > { %v2373_v58 = vmul.f32 %v6927_v1, %v2367_v35 }
 0x69f   : > { %v2375_v43 = vadd.f32 %v2373_v58, %v2363_v22  ;;  %v7932_v58 = vmov 1  }
 0x6a0   : > { %v2371_v33 = vpop.permute.xlu1 %2370 }
 0x6a1   : > { %v2387_v18 = vadd.f32 %v2385_v24, %v2375_v43  ;;  %v2374_v55 = vmul.f32 %v6927_v1, %v2371_v33  ;;  %v7934_v24 = vmov 6   ;;  %v7935_v43 = vmov 3  }
 0x6a2   : > { %v7937_v33 = vmov 5  }
 0x6a3   : > { %v2389_v50 = vsel %vm1209_vm3, %v2387_v18, -inf  ;;  %v2376_v13 = vadd.f32 %v2374_v55, %v2364_v2 }
 0x6a4   : > { %2390 = vmax.xlane.f32.xlu1 %v2389_v50 }
 0x6a5   : > { %v2383_v59 = vpop.permute.xlu1 %2382 }
 0x6a6   : > { %v2386_v40 = vmul.f32 %v6930_v5, %v2383_v59 }
 0x6a8   : > { %v2388_v23 = vadd.f32 %v2386_v40, %v2376_v13 }
 0x6aa   : > { %v2392_v31 = vsel %vm1209_vm3, %v2388_v23, -inf }
 0x6ab   : > { %2393 = vmax.xlane.f32.xlu0 %v2392_v31 }
 0x731   : > { %v2391_v41 = vpop.xlane.xlu1 %2390 }
 0x732   : > { %v2395_v19 = vsub.f32 %v2387_v18, %v2391_v41  ;;  %v7938_v18 = vmov 4  }
 0x734   : > { %v2397_v4 = vmul.f32 1.442695, %v2395_v19 }
 0x736   : > { %5886 = vpow2.f32 %v2397_v4 }
 0x738   : > { %v2394_v28 = vpop.xlane.xlu0 %2393 }
 0x739   : > { %v2396_v37 = vsub.f32 %v2388_v23, %v2394_v28 }
 0x73b   : > { %v2399_v30 = vmul.f32 1.442695, %v2396_v37 }
 0x73d   : > { %5888 = vpow2.f32 %v2399_v30 }
 0x740   : > { %v5887_v7 = vpop.eup %5886 }
 0x741   : > { %v2401_v25 = vsel %vm1209_vm3, %v5887_v7, 0.0 }
 0x742   : > { %2402 = vadd.xlane.f32.xlu0 %v2401_v25 }
 0x747   : > { %v5889_v26 = vpop.eup %5888 }
 0x748   : > { %v2404_v34 = vsel %vm1209_vm3, %v5889_v26, 0.0 }
 0x749   : > { %2405 = vadd.xlane.f32.xlu1 %v2404_v34 }
 0x7cf   : > { %v2403_v12 = vpop.xlane.xlu0 %2402 }
 0x7d6   : > { %v2406_v48 = vpop.xlane.xlu1 %2405 }
 0x7d7   : > { %5890 = vrcp.f32 %v2406_v48 }
 0x7d8   : > { %5892 = vrcp.f32 %v2403_v12 }
 0x7e1   : > { %v5891_v11 = vpop.eup %5890 }
 0x7e2   : > { %v7170_v29 = vmul.f32 %v5891_v11, %v5889_v26  ;;  %v5893_v35 = vpop.eup %5892 }
 0x7e3   : > { %v7174_v22 = vmul.f32 %v5893_v35, %v5887_v7 }
 0x7e4   : > { %2616 = vperm.xlu0 %5767, %v7170_v29   ;;  %2568 = vperm.xlu1 %5763, %v7170_v29  }
 0x7e8   : > { %5770 = vset.pattern.permute.xlu0 %v7931_v10  ;;  %5764 = vset.pattern.permute.xlu1 %v7932_v58 }
 0x7e9   : > { %2580 = vperm.xlu1 %5764, %v7170_v29   ;;  %2564 = vperm.xlu0 %5770, %v7174_v22  }
 0x7ed   : > { %5765 = vset.pattern.permute.xlu1 %v7933_v52  ;;  %5776 = vset.pattern.permute.xlu0 %v7934_v24 }
 0x7ee   : > { %2592 = vperm.xlu1 %5765, %v7170_v29   ;;  %2636 = vperm.xlu0 %5776, %v7174_v22  }
 0x7f2   : > { %5766 = vset.pattern.permute.xlu1 %v7935_v43  ;;  %5778 = vset.pattern.permute.xlu0 %v7936_v51 }
 0x7f3   : > { %2604 = vperm.xlu1 %5766, %v7170_v29   ;;  %2652 = vperm.xlu0 %5778, %v7170_v29  }
 0x7f7   : > { %5768 = vset.pattern.permute.xlu1 %v7937_v33  ;;  %2838 = vrot.lane.b32.xlu0 %v6778_v14, %s6281_s10 }
 0x7f8   : > { %2628 = vperm.xlu1 %5768, %v7170_v29   ;;  %5780 = vset.pattern.permute.xlu0 %v7932_v58 }
 0x7fb   : > { %2933 = vrot.lane.b32.xlu0 %v6778_v14, %s6282_s1 }
 0x7fc   : > { %5769 = vset.pattern.permute.xlu1 %v7934_v24 }
 0x7fd   : > { %2640 = vperm.xlu1 %5769, %v7170_v29  }
 0x801   : > { %5771 = vset.pattern.permute.xlu1 %v7932_v58 }
 0x802   : > { %2576 = vperm.xlu1 %5771, %v7174_v22  }
 0x806   : > { %5772 = vset.pattern.permute.xlu1 %v7933_v52 }
 0x807   : > { %2588 = vperm.xlu1 %5772, %v7174_v22  }
 0x80b   : > { %5773 = vset.pattern.permute.xlu1 %v7935_v43 }
 0x80c   : > { %2600 = vperm.xlu1 %5773, %v7174_v22  }
 0x810   : > { %5774 = vset.pattern.permute.xlu1 %v7938_v18 }
 0x811   : > { %2612 = vperm.xlu1 %5774, %v7174_v22  }
 0x815   : > { %5775 = vset.pattern.permute.xlu1 %v7937_v33 }
 0x816   : > { %2624 = vperm.xlu1 %5775, %v7174_v22  }
 0x81a   : > { %5777 = vset.pattern.permute.xlu1 %v7936_v51 }
 0x81b   : > { %2648 = vperm.xlu1 %5777, %v7174_v22  }
 0x81f   : > { %2411 = vrot.lane.b32.xlu1 %v6778_v14, %s6283_s26 }
 0x820   : > { %5779 = vset.pattern.permute.xlu1 %v7931_v10 }
 0x823   : > { %2487 = vrot.lane.b32.xlu1 %v6780_v17, %s6283_s26  ;;  %s7972_s26 = sld [smem:[#allocation46_spill]] (!%p5267_p13) }
 0x827   : > { %2840 = vrot.lane.b32.xlu1 %v6780_v17, %s6281_s10 }
 0x82b   : > { %3007 = vrot.lane.b32.xlu1 %v6780_v17, %s6282_s1 }
 0x863   : > { %v2569_v16 = vpop.permute.xlu1 %2568  ;;  %v2617_v23 = vpop.permute.xlu0 %2616 }
 0x864   : > { %v2572_v37 = vmul.f32 %v7038_v20, %v2569_v16 }
 0x868   : > { %v2581_v55 = vpop.permute.xlu1 %2580  ;;  %v2565_v41 = vpop.permute.xlu0 %2564 }
 0x869   : > { %v2584_v4 = vmul.f32 %v7035_v44, %v2581_v55  ;;  %v2571_v30 = vmul.f32 %v7038_v20, %v2565_v41  ;;  %v2620_v41 = vmul.f32 %v7065_v0, %v2617_v23 }
 0x86b   : > { %v2586_v26 = vadd.f32 %v2584_v4, %v2572_v37 }
 0x86d   : > { %v2593_v50 = vpop.permute.xlu1 %2592  ;;  %v2637_v20 = vpop.permute.xlu0 %2636 }
 0x86e   : > { %v2596_v7 = vmul.f32 %v7043_v61, %v2593_v50 }
 0x870   : > { %v2598_v35 = vadd.f32 %v2596_v7, %v2586_v26 }
 0x872   : > { %v2605_v2 = vpop.permute.xlu1 %2604  ;;  %v2653_v26 = vpop.permute.xlu0 %2652 }
 0x873   : > { %v2608_v34 = vmul.f32 %v7059_v46, %v2605_v2 }
 0x877   : > { %v2629_v59 = vpop.permute.xlu1 %2628 }
 0x878   : > { %v2632_v2 = vmul.f32 %v7075_v60, %v2629_v59 }
 0x87c   : > { %v2641_v13 = vpop.permute.xlu1 %2640 }
 0x87d   : > { %v2644_v37 = vmul.f32 %v7080_v32, %v2641_v13  ;;  %v7939_v13 = vmov 0.0  }
 0x881   : > { %v2577_v40 = vpop.permute.xlu1 %2576 }
 0x882   : > { %v2583_v28 = vmul.f32 %v7035_v44, %v2577_v40  ;;  %v2610_v40 = vadd.f32 %v2608_v34, %v2598_v35  ;;  %v7940_v35 = vpack.c.bf16 %v7129_v39, %v7132_v27  ;;  %v7263_v27 = vld [vmem:[%s6757_s29] sm:$0xff]  ;;  %s6287_s29 = smov 40  }
 0x884   : > { %v2585_v48 = vadd.f32 %v2583_v28, %v2571_v30  ;;  %v2622_v4 = vadd.f32 %v2620_v41, %v2610_v40 }
 0x886   : > { %v2589_v31 = vpop.permute.xlu1 %2588 }
 0x887   : > { %v2595_v25 = vmul.f32 %v7043_v61, %v2589_v31 }
 0x889   : > { %v2597_v17 = vadd.f32 %v2595_v25, %v2585_v48  ;;  %v2634_v25 = vadd.f32 %v2632_v2, %v2622_v4  ;;  %v1114_v48 = vld [vmem:[%s6737_s18] sm:$0xf] }
 0x88b   : > { %v2601_v19 = vpop.permute.xlu1 %2600  ;;  %v2646_v23 = vadd.f32 %v2644_v37, %v2634_v25 }
 0x88c   : > { %v2607_v12 = vmul.f32 %v7059_v46, %v2601_v19  ;;  %v2643_v19 = vmul.f32 %v7080_v32, %v2637_v20 }
 0x88e   : > { %v2609_v44 = vadd.f32 %v2607_v12, %v2597_v17  ;;  %v2656_v12 = vmul.f32 %v7084_v42, %v2653_v26 }
 0x890   : > { %v2613_v11 = vpop.permute.xlu1 %2612  ;;  %v2658_v20 = vadd.f32 %v2656_v12, %v2646_v23 }
 0x891   : > { %v2619_v55 = vmul.f32 %v7065_v0, %v2613_v11  ;;  %v2795_v11 = vsel %vm2746_vm5, %v1114_v48, 0 }
 0x893   : > { %v2621_v50 = vadd.f32 %v2619_v55, %v2609_v44  ;;  %v1115_v55 = vld [vmem:[%s6737_s18 + $0x4] sm:$0xf] }
 0x894   : > { %v2748_v40 = vsel %vm2746_vm5, %v1115_v55, 0 }
 0x895   : > { %v2625_v16 = vpop.permute.xlu1 %2624 }
 0x896   : > { %v2631_v31 = vmul.f32 %v7075_v60, %v2625_v16 }
 0x898   : > { %v2633_v28 = vadd.f32 %v2631_v31, %v2621_v50 }
 0x89a   : > { %v2649_v30 = vpop.permute.xlu1 %2648  ;;  %v2645_v7 = vadd.f32 %v2643_v19, %v2633_v28 }
 0x89b   : > { %v2655_v17 = vmul.f32 %v7084_v42, %v2649_v30 }
 0x89d   : > { %v2657_v44 = vadd.f32 %v2655_v17, %v2645_v7 }
 0x89e   : > { %v2412_v34 = vpop.permute.xlu1 %2411 }
 0x89f   : > { %5423 = vmatpush3.msra.mxu1 %v2412_v34 }
 0x8a0   : > { %5425 = vmatmul.mubr.msk.f32.vlgmr.msra.gmra.mrb[14].mxu1 %vm1209_vm3, %v7174_v22  ;;  %5563 = vmatprep.subr.msk.bf16.mxu1 %vm7016_vm8, %v7014_v8  ;;  %v2839_v22 = vpop.permute.xlu0 %2838 }
 0x8a1   : > { %5566 = vmatpush3.bf16.msk.msra.mxu1 %vm7016_vm8, %v7014_v8  ;;  %5436 = vmatprep.mubr.msk.f32.mxu1 %vm1889_vm4, %v2657_v44 }
 0x8a2   : > { %v2488_v59 = vpop.permute.xlu1 %2487  ;;  %5445 = vmatprep.subr.bf16.mxu1 %v7939_v13 }
 0x8a3   : > { %5428 = vmatpush3.msra.mxu0 %v2488_v59 }
 0x8a4   : > { %5430 = vmatmul.mubr.msk.f32.vlgmr.msra.gmra.mrb[8].mxu0 %vm1209_vm3, %v7170_v29  ;;  %5437 = vmatmul.mubr.msk.f32.vlgmr.msra.gmra.mrb[16].mxu1 %vm1889_vm4, %v2658_v20  ;;  %v2934_v29 = vpop.permute.xlu0 %2933 }
 0x8a5   : > { %5446 = vmatpush3.bf16.msra.mxu1 %v2795_v11  ;;  %5447 = vmatprep.mubr.msk.bf16.mxu1 %vm6260_vm1, %v7939_v13 }
 0x8a6   : > { %5456 = vmatprep.subr.mxu1 %v7939_v13  ;;  %5439 = vmatprep.subr.bf16.mxu0 %v7939_v13  ;;  %v2841_v25 = vpop.permute.xlu1 %2840 }
 0x8a7   : > { %5441 = vmatprep.mubr.msk.bf16.mxu0 %vm6260_vm1, %v7939_v13  ;;  %5440 = vmatpush3.bf16.msra.mxu0 %v2748_v40  ;;  %v7943_v40 = vmov 8  }
 0x8a8   : > { %5448 = vmatmul.mubr.msk.bf16.vlgmr.msra.gmra.mrb[20].mxu1 %vm1209_vm3, %v7940_v35  ;;  %5451 = vmatprep.subr.mxu0 %v7263_v27 }
 0x8a9   : > { %5458 = vmatprep.mubr.msk.f32.mxu1 %vm6260_vm1, %v7939_v13 }
 0x8aa   : > { %v3008_v23 = vpop.permute.xlu1 %3007 }
 0x8ae   : > { %5457 = vmatpush3.xpose.msk.msra.mxu1 %vm1209_vm3, %v2934_v29 }
 0x8af   : > { %5466 = vmatprep.subr.mxu1 %v7939_v13 }
 0x8b1   : > { %5459 = vmatmul.mubr.msk.f32.vlgmr.msra.gmra.mrb[18].mxu1 %vm1209_vm3, %v2839_v22 }
 0x8b2   : > { %5468 = vmatprep.mubr.msk.f32.mxu1 %vm6260_vm1, %v7939_v13 }
 0x973   : > { %v2483_v39 = vpop.f32.mrb[14].mxu1 }
 0x974   : > { %v5426_v16 = vpop.f32.mrb[15].mxu1 }
 0x975   : > { %v7945_v16 = vmov 11  }
 0x977   : > { %v2559_v41 = vpop.f32.mrb[8].mxu0  ;;  %v5438_v50 = vpop.f32.mrb[16].mxu1 }
 0x978   : > { %v2741_v31 = vadd.f32 %v5438_v50, %v2559_v41  ;;  %v5431_v4 = vpop.f32.mrb[9].mxu0  ;;  %v2731_v2 = vpop.f32.mrb[17].mxu1  ;;  %v7946_v41 = vmov 12   ;;  %v7947_v50 = vmov 14  }
 0x979   : > { %v2740_v28 = vadd.f32 %v2731_v2, %v2483_v39  ;;  %v7944_v39 = vmov 9  }
 0x97b   : > { %v2742_v19 = vpack.c.bf16 %v2741_v31, %v2740_v28  ;;  %v2831_v37 = vpop.f32.mrb[20].mxu1 }
 0x97c   : > { %v5449_v30 = vpop.f32.mrb[21].mxu1 }
 0x97d   : > { %5442 = vmatmul.mubr.msk.bf16.vlgmr.msra.gmra.mrb[12].mxu0 %vm1209_vm3, %v2742_v19  ;;  %v2834_v7 = vpop.f32.mrb[22].mxu1 }
 0x97e   : > { %v5450_v17 = vpop.f32.mrb[23].mxu1  ;;  %5452 = vmatpush3.msra.mxu0 %v7263_v27  ;;  %5453 = vmatprep.mubr.msk.f32.mxu0 %vm1209_vm3, %v2839_v22 }
 0x97f   : > { %5461 = vmatprep.subr.mxu0 %v7939_v13 }
 0x984   : > { %v7270_v26 = vpop.f32.mrb[18].mxu1 }
 0x985   : > { %5454 = vmatmul.mubr.msk.f32.vlgmr.msra.gmra.mrb[10].mxu0 %vm1209_vm3, %v2841_v25  ;;  %v5460_v34 = vpop.f32.mrb[19].mxu1 }
 0x986   : > { %5462 = vmatpush3.xpose.msk.msra.mxu0 %vm1209_vm3, %v3008_v23  ;;  %5463 = vmatprep.mubr.msk.f32.mxu0 %vm6260_vm1, %v7939_v13 }
 0x987   : > { %5471 = vmatprep.subr.mxu0 %v7939_v13 }
 0x989   : > { %5464 = vmatmul.mubr.msk.f32.vlgmr.msra.gmra.mrb[16].mxu0 %vm1209_vm3, %v2841_v25 }
 0x98a   : > { %5473 = vmatprep.mubr.msk.f32.mxu0 %vm6260_vm1, %v7939_v13 }
 0xa50   : > { %v2784_v44 = vpop.f32.mrb[12].mxu0 }
 0xa51   : > { %v7280_v48 = vadd.f32 %v2831_v37, %v2784_v44  ;;  %v5443_v12 = vpop.f32.mrb[13].mxu0 }
 0xa52   : > { %v2787_v20 = vpop.f32.mrb[14].mxu0 }
 0xa53   : > { %7941 = vst [vmem:[#allocation34_spill] sm:$0xff] %v7280_v48  ;;  %v7282_v59 = vadd.f32 %v2834_v7, %v2787_v20  ;;  %v5444_v11 = vpop.f32.mrb[15].mxu0 }
 0xa55   : > { %7942 = vst [vmem:[#allocation35_spill] sm:$0xff] %v7282_v59 }
 0xa58   : > { %v5455_v22 = vpop.f32.mrb[10].mxu0 }
 0xa59   : > { %3086 = vperm.xlu0 %5780, %v5455_v22   ;;  %2928 = vperm.xlu1 %5779, %v5455_v22   ;;  %v2912_v35 = vpop.f32.mrb[11].mxu0 }
 0xa5c   : > { %v7284_v29 = vpop.f32.mrb[16].mxu0 }
 0xa5d   : > { %5783 = vset.pattern.permute.xlu0 %v7938_v18  ;;  %5781 = vset.pattern.permute.xlu1 %v7933_v52  ;;  %v5465_v55 = vpop.f32.mrb[17].mxu0 }
 0xa5e   : > { %3122 = vperm.xlu0 %5783, %v5455_v22   ;;  %3098 = vperm.xlu1 %5781, %v5455_v22  }
 0xa62   : > { %5786 = vset.pattern.permute.xlu0 %v7936_v51  ;;  %5782 = vset.pattern.permute.xlu1 %v7935_v43 }
 0xa63   : > { %3158 = vperm.xlu0 %5786, %v5455_v22   ;;  %3110 = vperm.xlu1 %5782, %v5455_v22  }
 0xa67   : > { %5789 = vset.pattern.permute.xlu0 %v7929_v9  ;;  %5784 = vset.pattern.permute.xlu1 %v7937_v33 }
 0xa68   : > { %3194 = vperm.xlu0 %5789, %v5455_v22   ;;  %3134 = vperm.xlu1 %5784, %v5455_v22  }
 0xa6c   : > { %5792 = vset.pattern.permute.xlu0 %v7931_v10  ;;  %5785 = vset.pattern.permute.xlu1 %v7934_v24 }
 0xa6d   : > { %3146 = vperm.xlu1 %5785, %v5455_v22   ;;  %2923 = vperm.xlu0 %5792, %v2912_v35  }
 0xa71   : > { %5787 = vset.pattern.permute.xlu1 %v7943_v40  ;;  %5795 = vset.pattern.permute.xlu0 %v7935_v43 }
 0xa72   : > { %3170 = vperm.xlu1 %5787, %v5455_v22   ;;  %3106 = vperm.xlu0 %5795, %v2912_v35  }
 0xa76   : > { %5788 = vset.pattern.permute.xlu1 %v7944_v39  ;;  %5798 = vset.pattern.permute.xlu0 %v7934_v24 }
 0xa77   : > { %3182 = vperm.xlu1 %5788, %v5455_v22   ;;  %3142 = vperm.xlu0 %5798, %v2912_v35  }
 0xa7b   : > { %5790 = vset.pattern.permute.xlu1 %v7945_v16  ;;  %5801 = vset.pattern.permute.xlu0 %v7944_v39 }
 0xa7c   : > { %3206 = vperm.xlu1 %5790, %v5455_v22   ;;  %3178 = vperm.xlu0 %5801, %v2912_v35  }
 0xa80   : > { %5791 = vset.pattern.permute.xlu1 %v7946_v41  ;;  %5804 = vset.pattern.permute.xlu0 %v7946_v41 }
 0xa81   : > { %3218 = vperm.xlu1 %5791, %v5455_v22   ;;  %3214 = vperm.xlu0 %5804, %v2912_v35  }
 0xa85   : > { %5793 = vset.pattern.permute.xlu1 %v7932_v58  ;;  %5805 = vset.pattern.permute.xlu0 %v7930_v38 }
 0xa86   : > { %3082 = vperm.xlu1 %5793, %v2912_v35   ;;  %3230 = vperm.xlu0 %5805, %v5455_v22  }
 0xa8a   : > { %5794 = vset.pattern.permute.xlu1 %v7933_v52  ;;  %5812 = vset.pattern.permute.xlu0 %v7938_v18 }
 0xa8b   : > { %3094 = vperm.xlu1 %5794, %v2912_v35  }
 0xa8f   : > { %5796 = vset.pattern.permute.xlu1 %v7938_v18 }
 0xa90   : > { %3118 = vperm.xlu1 %5796, %v2912_v35  }
 0xa94   : > { %5797 = vset.pattern.permute.xlu1 %v7937_v33 }
 0xa95   : > { %3130 = vperm.xlu1 %5797, %v2912_v35  }
 0xa99   : > { %5799 = vset.pattern.permute.xlu1 %v7936_v51 }
 0xa9a   : > { %3154 = vperm.xlu1 %5799, %v2912_v35  }
 0xa9e   : > { %5800 = vset.pattern.permute.xlu1 %v7943_v40 }
 0xa9f   : > { %3166 = vperm.xlu1 %5800, %v2912_v35  }
 0xaa3   : > { %5802 = vset.pattern.permute.xlu1 %v7929_v9 }
 0xaa4   : > { %3190 = vperm.xlu1 %5802, %v2912_v35  }
 0xaa8   : > { %5803 = vset.pattern.permute.xlu1 %v7945_v16 }
 0xaa9   : > { %3202 = vperm.xlu1 %5803, %v2912_v35  }
 0xaad   : > { %5806 = vset.pattern.permute.xlu1 %v7930_v38 }
 0xaae   : > { %3226 = vperm.xlu1 %5806, %v2912_v35  }
 0xab2   : > { %5807 = vset.pattern.permute.xlu1 %v7947_v50 }
 0xab3   : > { %3238 = vperm.xlu1 %5807, %v2912_v35  }
 0xab7   : > { %3242 = vperm.xlu1 %5807, %v5455_v22  }
 0xabb   : > { %5808 = vset.pattern.permute.xlu1 %v7931_v10 }
 0xad8   : > { %v2929_v31 = vpop.permute.xlu1 %2928  ;;  %v3087_v19 = vpop.permute.xlu0 %3086 }
 0xad9   : > { %v2932_v35 = vmul.f32 %v6861_v45, %v2929_v31  ;;  %v3090_v39 = vmul.f32 %v6866_v49, %v3087_v19 }
 0xadb   : > { %v3078_v41 = vadd.f32 %v7284_v29, %v2932_v35 }
 0xadd   : > { %v3099_v4 = vpop.permute.xlu1 %3098  ;;  %v3123_v30 = vpop.permute.xlu0 %3122  ;;  %v3092_v9 = vadd.f32 %v3090_v39, %v3078_v41 }
 0xade   : > { %v3126_v19 = vmul.f32 %v6881_v62, %v3123_v30 }
 0xae2   : > { %v3111_v2 = vpop.permute.xlu1 %3110  ;;  %v3159_v17 = vpop.permute.xlu0 %3158 }
 0xae3   : > { %v3162_v30 = vmul.f32 %v6896_v15, %v3159_v17 }
 0xae7   : > { %v3135_v28 = vpop.permute.xlu1 %3134  ;;  %v3195_v34 = vpop.permute.xlu0 %3194 }
 0xae8   : > { %v3198_v17 = vmul.f32 %v6911_v47, %v3195_v34 }
 0xaec   : > { %v3147_v37 = vpop.permute.xlu1 %3146  ;;  %v2924_v12 = vpop.permute.xlu0 %2923 }
 0xaed   : > { %v2931_v20 = vmul.f32 %v6861_v45, %v2924_v12 }
 0xaef   : > { %v3004_v55 = vadd.f32 %v7270_v26, %v2931_v20  ;;  %v3114_v26 = vmul.f32 %v6875_v56, %v3111_v2  ;;  %v3150_v2 = vmul.f32 %v6890_v6, %v3147_v37 }
 0xaf1   : > { %v3171_v7 = vpop.permute.xlu1 %3170  ;;  %v3107_v38 = vpop.permute.xlu0 %3106 }
 0xaf2   : > { %v3113_v40 = vmul.f32 %v6875_v56, %v3107_v38 }
 0xaf6   : > { %v3183_v25 = vpop.permute.xlu1 %3182  ;;  %v3143_v29 = vpop.permute.xlu0 %3142 }
 0xaf7   : > { %v3149_v38 = vmul.f32 %v6890_v6, %v3143_v29  ;;  %v3186_v37 = vmul.f32 %v6905_v36, %v3183_v25 }
 0xafb   : > { %v7315_v23 = vpop.permute.xlu1 %3206 }
 0xb00   : > { %v7317_v44 = vpop.permute.xlu1 %3218 }
 0xb05   : > { %v3083_v11 = vpop.permute.xlu1 %3082 }
 0xb06   : > { %v3089_v22 = vmul.f32 %v6866_v49, %v3083_v11  ;;  %v3102_v11 = vmul.f32 %v6872_v54, %v3099_v4 }
 0xb08   : > { %v3091_v48 = vadd.f32 %v3089_v22, %v3004_v55  ;;  %v3104_v22 = vadd.f32 %v3102_v11, %v3092_v9  ;;  %v3179_v11 = vpop.permute.xlu0 %3178 }
 0xb0a   : > { %v3095_v59 = vpop.permute.xlu1 %3094 }
 0xb0b   : > { %v3101_v50 = vmul.f32 %v6872_v54, %v3095_v59 }
 0xb0d   : > { %v3103_v16 = vadd.f32 %v3101_v50, %v3091_v48  ;;  %v3116_v48 = vadd.f32 %v3114_v26, %v3104_v22 }
 0xb0f   : > { %v3119_v12 = vpop.permute.xlu1 %3118  ;;  %v3115_v13 = vadd.f32 %v3113_v40, %v3103_v16  ;;  %v3128_v41 = vadd.f32 %v3126_v19, %v3116_v48  ;;  %v3138_v40 = vmul.f32 %v6887_v3, %v3135_v28  ;;  %v3174_v28 = vmul.f32 %v6902_v21, %v3171_v7 }
 0xb10   : > { %v3125_v31 = vmul.f32 %v6881_v62, %v3119_v12  ;;  %v3210_v7 = vmul.f32 %v6917_v53, %v7315_v23 }
 0xb12   : > { %v3127_v59 = vadd.f32 %v3125_v31, %v3115_v13  ;;  %v3140_v13 = vadd.f32 %v3138_v40, %v3128_v41 }
 0xb14   : > { %v3131_v20 = vpop.permute.xlu1 %3130  ;;  %v3152_v31 = vadd.f32 %v3150_v2, %v3140_v13 }
 0xb15   : > { %v3137_v55 = vmul.f32 %v6887_v3, %v3131_v20  ;;  %v3185_v20 = vmul.f32 %v6905_v36, %v3179_v11 }
 0xb17   : > { %v3139_v50 = vadd.f32 %v3137_v55, %v3127_v59  ;;  %v3164_v59 = vadd.f32 %v3162_v30, %v3152_v31 }
 0xb19   : > { %v3155_v39 = vpop.permute.xlu1 %3154  ;;  %v3151_v16 = vadd.f32 %v3149_v38, %v3139_v50  ;;  %v3176_v50 = vadd.f32 %v3174_v28, %v3164_v59 }
 0xb1a   : > { %v3161_v4 = vmul.f32 %v6896_v15, %v3155_v39  ;;  %v3215_v39 = vpop.permute.xlu0 %3214 }
 0xb1b   : > { %v3188_v41 = vadd.f32 %v3186_v37, %v3176_v50 }
 0xb1c   : > { %v3163_v35 = vadd.f32 %v3161_v4, %v3151_v16  ;;  %v3221_v16 = vmul.f32 %v6920_v57, %v3215_v39 }
 0xb1d   : > { %v3200_v2 = vadd.f32 %v3198_v17, %v3188_v41 }
 0xb1e   : > { %v3167_v9 = vpop.permute.xlu1 %3166  ;;  %v3231_v13 = vpop.permute.xlu0 %3230 }
 0xb1f   : > { %v3173_v12 = vmul.f32 %v6902_v21, %v3167_v9  ;;  %v3212_v11 = vadd.f32 %v3210_v7, %v3200_v2  ;;  %v3234_v31 = vmul.f32 %v6927_v1, %v3231_v13  ;;  %v7948_v13 = vld [vmem:[#allocation28_spill] sm:$0xff] }
 0xb21   : > { %v3175_v26 = vadd.f32 %v3173_v12, %v3163_v35  ;;  %v3222_v35 = vmul.f32 %v6920_v57, %v7317_v44 }
 0xb23   : > { %v3191_v22 = vpop.permute.xlu1 %3190  ;;  %v3187_v55 = vadd.f32 %v3185_v20, %v3175_v26  ;;  %v3224_v30 = vadd.f32 %v3222_v35, %v3212_v11 }
 0xb24   : > { %v3197_v29 = vmul.f32 %v6911_v47, %v3191_v22 }
 0xb25   : > { %v3236_v59 = vadd.f32 %v3234_v31, %v3224_v30 }
 0xb26   : > { %v3199_v19 = vadd.f32 %v3197_v29, %v3187_v55 }
 0xb28   : > { %v3203_v48 = vpop.permute.xlu1 %3202 }
 0xb29   : > { %v3209_v38 = vmul.f32 %v6917_v53, %v3203_v48 }
 0xb2b   : > { %v3211_v40 = vadd.f32 %v3209_v38, %v3199_v19 }
 0xb2d   : > { %v3227_v4 = vpop.permute.xlu1 %3226  ;;  %v3223_v9 = vadd.f32 %v3221_v16, %v3211_v40 }
 0xb2e   : > { %v3233_v25 = vmul.f32 %v6927_v1, %v3227_v4 }
 0xb30   : > { %v3235_v26 = vadd.f32 %v3233_v25, %v3223_v9 }
 0xb32   : > { %v3239_v12 = vpop.permute.xlu1 %3238 }
 0xb33   : > { %v3245_v34 = vmul.f32 %v6930_v5, %v3239_v12 }
 0xb35   : > { %v3247_v20 = vadd.f32 %v3245_v34, %v3235_v26 }
 0xb36   : > { %v3243_v22 = vpop.permute.xlu1 %3242 }
 0xb37   : > { %v3246_v23 = vmul.f32 %v6930_v5, %v3243_v22  ;;  %v3249_v28 = vsel %vm1209_vm3, %v3247_v20, -inf }
 0xb38   : > { %3250 = vmax.xlane.f32.xlu0 %v3249_v28  ;;  %v7949_v28 = vld [vmem:[#allocation31_spill] sm:$0xff] }
 0xb39   : > { %v3248_v55 = vadd.f32 %v3246_v23, %v3236_v59 }
 0xb3b   : > { %v3252_v29 = vsel %vm1209_vm3, %v3248_v55, -inf }
 0xb3c   : > { %3253 = vmax.xlane.f32.xlu1 %v3252_v29  ;;  %v7950_v29 = vld [vmem:[#allocation32_spill] sm:$0xff] }
 0xbc5   : > { %v3251_v44 = vpop.xlane.xlu0 %3250 }
 0xbc6   : > { %v3255_v37 = vsub.f32 %v3247_v20, %v3251_v44 }
 0xbc8   : > { %v3257_v48 = vmul.f32 1.442695, %v3255_v37 }
 0xbc9   : > { %v3254_v50 = vpop.xlane.xlu1 %3253 }
 0xbca   : > { %5894 = vpow2.f32 %v3257_v48  ;;  %v3256_v19 = vsub.f32 %v3248_v55, %v3254_v50 }
 0xbcc   : > { %v3259_v38 = vmul.f32 1.442695, %v3256_v19 }
 0xbce   : > { %5896 = vpow2.f32 %v3259_v38 }
 0xbd4   : > { %v5895_v39 = vpop.eup %5894 }
 0xbd5   : > { %v3261_v41 = vsel %vm1209_vm3, %v5895_v39, 0.0 }
 0xbd6   : > { %3262 = vadd.xlane.f32.xlu0 %v3261_v41 }
 0xbd8   : > { %v5897_v40 = vpop.eup %5896 }
 0xbd9   : > { %v3264_v17 = vsel %vm1209_vm3, %v5897_v40, 0.0 }
 0xbda   : > { %3265 = vadd.xlane.f32.xlu0 %v3264_v17 }
 0xc63   : > { %v3263_v16 = vpop.xlane.xlu0 %3262 }
 0xc67   : > { %v3266_v4 = vpop.xlane.xlu0 %3265 }
 0xc68   : > { %5898 = vrcp.f32 %v3266_v4 }
 0xc69   : > { %5900 = vrcp.f32 %v3263_v16 }
 0xc72   : > { %v5899_v2 = vpop.eup %5898 }
 0xc73   : > { %v7357_v7 = vmul.f32 %v5899_v2, %v5897_v40  ;;  %v5901_v9 = vpop.eup %5900 }
 0xc74   : > { %v7361_v25 = vmul.f32 %v5901_v9, %v5895_v39 }
 0xc75   : > { %3476 = vperm.xlu0 %5812, %v7357_v7   ;;  %3428 = vperm.xlu1 %5808, %v7357_v7  }
 0xc79   : > { %5816 = vset.pattern.permute.xlu0 %v7932_v58  ;;  %5809 = vset.pattern.permute.xlu1 %v7932_v58 }
 0xc7a   : > { %3436 = vperm.xlu0 %5816, %v7361_v25   ;;  %3440 = vperm.xlu1 %5809, %v7357_v7  }
 0xc7e   : > { %5821 = vset.pattern.permute.xlu0 %v7934_v24  ;;  %5810 = vset.pattern.permute.xlu1 %v7933_v52 }
 0xc7f   : > { %3496 = vperm.xlu0 %5821, %v7361_v25   ;;  %3452 = vperm.xlu1 %5810, %v7357_v7  }
 0xc83   : > { %5823 = vset.pattern.permute.xlu0 %v7936_v51  ;;  %5811 = vset.pattern.permute.xlu1 %v7935_v43 }
 0xc84   : > { %3512 = vperm.xlu0 %5823, %v7357_v7   ;;  %3464 = vperm.xlu1 %5811, %v7357_v7  }
 0xc88   : > { %3652 = vrot.lane.b32.xlu0 %v6778_v14, %s6284_s23  ;;  %5813 = vset.pattern.permute.xlu1 %v7937_v33 }
 0xc89   : > { %3488 = vperm.xlu1 %5813, %v7357_v7   ;;  %5825 = vset.pattern.permute.xlu0 %v7932_v58 }
 0xc8c   : > { %3747 = vrot.lane.b32.xlu0 %v6778_v14, %s6285_s2 }
 0xc8d   : > { %5814 = vset.pattern.permute.xlu1 %v7934_v24 }
 0xc8e   : > { %3500 = vperm.xlu1 %5814, %v7357_v7  }
 0xc92   : > { %5815 = vset.pattern.permute.xlu1 %v7931_v10 }
 0xc93   : > { %3424 = vperm.xlu1 %5815, %v7361_v25  }
 0xc97   : > { %5817 = vset.pattern.permute.xlu1 %v7933_v52 }
 0xc98   : > { %3448 = vperm.xlu1 %5817, %v7361_v25  }
 0xc9c   : > { %5818 = vset.pattern.permute.xlu1 %v7935_v43 }
 0xc9d   : > { %3460 = vperm.xlu1 %5818, %v7361_v25  }
 0xca1   : > { %5819 = vset.pattern.permute.xlu1 %v7938_v18 }
 0xca2   : > { %3472 = vperm.xlu1 %5819, %v7361_v25  }
 0xca6   : > { %5820 = vset.pattern.permute.xlu1 %v7937_v33 }
 0xca7   : > { %3484 = vperm.xlu1 %5820, %v7361_v25  }
 0xcab   : > { %5822 = vset.pattern.permute.xlu1 %v7936_v51 }
 0xcac   : > { %3508 = vperm.xlu1 %5822, %v7361_v25  }
 0xcb0   : > { %3271 = vrot.lane.b32.xlu1 %v6778_v14, %s6286_s22 }
 0xcb1   : > { %5824 = vset.pattern.permute.xlu1 %v7931_v10 }
 0xcb4   : > { %3347 = vrot.lane.b32.xlu1 %v7948_v13, %s6286_s22  ;;  %s7973_s22 = sld [smem:[#allocation47_spill]] (!%p5267_p13) }
 0xcb8   : > { %3654 = vrot.lane.b32.xlu1 %v7948_v13, %s6284_s23 }
 0xcbc   : > { %3821 = vrot.lane.b32.xlu1 %v7948_v13, %s6285_s2 }
 0xcf4   : > { %v3429_v35 = vpop.permute.xlu1 %3428  ;;  %v3477_v20 = vpop.permute.xlu0 %3476 }
 0xcf5   : > { %v3432_v37 = vmul.f32 %v7950_v29, %v3429_v35 }
 0xcf9   : > { %v3441_v12 = vpop.permute.xlu1 %3440  ;;  %v3437_v59 = vpop.permute.xlu0 %3436 }
 0xcfa   : > { %v3444_v55 = vmul.f32 %v7949_v28, %v3441_v12  ;;  %v3443_v48 = vmul.f32 %v7949_v28, %v3437_v59 }
 0xcfc   : > { %v3446_v38 = vadd.f32 %v3444_v55, %v3432_v37 }
 0xcfe   : > { %v3453_v11 = vpop.permute.xlu1 %3452  ;;  %v3497_v59 = vpop.permute.xlu0 %3496 }
 0xcff   : > { %v3456_v50 = vmul.f32 %v7043_v61, %v3453_v11 }
 0xd01   : > { %v3458_v16 = vadd.f32 %v3456_v50, %v3446_v38 }
 0xd03   : > { %v3465_v31 = vpop.permute.xlu1 %3464 }
 0xd04   : > { %v3468_v39 = vmul.f32 %v7059_v46, %v3465_v31 }
 0xd06   : > { %v3470_v9 = vadd.f32 %v3468_v39, %v3458_v16  ;;  %v3513_v39 = vpop.permute.xlu0 %3512 }
 0xd08   : > { %v3489_v26 = vpop.permute.xlu1 %3488 }
 0xd09   : > { %v3492_v31 = vmul.f32 %v7075_v60, %v3489_v26 }
 0xd0a   : > { %v3653_v16 = vpop.permute.xlu0 %3652 }
 0xd0d   : > { %v3501_v34 = vpop.permute.xlu1 %3500 }
 0xd0e   : > { %v3504_v37 = vmul.f32 %v7080_v32, %v3501_v34 }
 0xd12   : > { %v3425_v30 = vpop.permute.xlu1 %3424 }
 0xd13   : > { %v3431_v44 = vmul.f32 %v7950_v29, %v3425_v30  ;;  %v3480_v30 = vmul.f32 %v7065_v0, %v3477_v20 }
 0xd15   : > { %v3445_v41 = vadd.f32 %v3443_v48, %v3431_v44  ;;  %v3482_v55 = vadd.f32 %v3480_v30, %v3470_v9 }
 0xd17   : > { %v3449_v22 = vpop.permute.xlu1 %3448  ;;  %v3494_v38 = vadd.f32 %v3492_v31, %v3482_v55 }
 0xd18   : > { %v3455_v19 = vmul.f32 %v7043_v61, %v3449_v22 }
 0xd1a   : > { %v3457_v4 = vadd.f32 %v3455_v19, %v3445_v41  ;;  %v3506_v41 = vadd.f32 %v3504_v37, %v3494_v38  ;;  %v7953_v38 = vmov 8  }
 0xd1c   : > { %v3461_v23 = vpop.permute.xlu1 %3460 }
 0xd1d   : > { %v3467_v40 = vmul.f32 %v7059_v46, %v3461_v23  ;;  %v3503_v23 = vmul.f32 %v7080_v32, %v3497_v59 }
 0xd1f   : > { %v3469_v12 = vadd.f32 %v3467_v40, %v3457_v4  ;;  %v7951_v4 = vmov 0.0  }
 0xd21   : > { %v3473_v17 = vpop.permute.xlu1 %3472 }
 0xd22   : > { %v3479_v2 = vmul.f32 %v7065_v0, %v3473_v17  ;;  %v3516_v17 = vmul.f32 %v7084_v42, %v3513_v39  ;;  %v7954_v39 = vmov 9  }
 0xd24   : > { %v3481_v11 = vadd.f32 %v3479_v2, %v3469_v12  ;;  %v3518_v26 = vadd.f32 %v3516_v17, %v3506_v41  ;;  %v7955_v41 = vmov 11   ;;  %v7958_v17 = vmov 14  }
 0xd26   : > { %v3485_v35 = vpop.permute.xlu1 %3484 }
 0xd27   : > { %v3491_v22 = vmul.f32 %v7075_v60, %v3485_v35 }
 0xd29   : > { %v3493_v44 = vadd.f32 %v3491_v22, %v3481_v11 }
 0xd2b   : > { %v3509_v48 = vpop.permute.xlu1 %3508  ;;  %v3505_v50 = vadd.f32 %v3503_v23, %v3493_v44 }
 0xd2c   : > { %v3515_v19 = vmul.f32 %v7084_v42, %v3509_v48 }
 0xd2e   : > { %v3517_v40 = vadd.f32 %v3515_v19, %v3505_v50  ;;  %v7952_v19 = vmov 10  }
 0xd2f   : > { %v3272_v20 = vpop.permute.xlu1 %3271 }
 0xd30   : > { %5467 = vmatpush3.msra.mxu1 %v3272_v20  ;;  %v7956_v20 = vmov 12  }
 0xd31   : > { %5469 = vmatmul.mubr.msk.f32.vlgmr.msra.gmra.mrb[24].mxu1 %vm1209_vm3, %v7361_v25  ;;  %5569 = vmatprep.subr.msk.bf16.mxu1 %vm7016_vm8, %v7014_v8 }
 0xd32   : > { %5572 = vmatpush3.bf16.msk.msra.mxu1 %vm7016_vm8, %v7014_v8  ;;  %5480 = vmatprep.mubr.msk.f32.mxu1 %vm1889_vm4, %v3517_v40  ;;  %v7957_v40 = vmov 13  }
 0xd33   : > { %v3348_v34 = vpop.permute.xlu1 %3347  ;;  %5489 = vmatprep.subr.mxu1 %v7263_v27 }
 0xd34   : > { %5472 = vmatpush3.msra.mxu0 %v3348_v34 }
 0xd35   : > { %5474 = vmatmul.mubr.msk.f32.vlgmr.msra.gmra.mrb[18].mxu0 %vm1209_vm3, %v7357_v7  ;;  %5481 = vmatmul.mubr.msk.f32.vlgmr.msra.gmra.mrb[26].mxu1 %vm1889_vm4, %v3518_v26  ;;  %v3748_v7 = vpop.permute.xlu0 %3747 }
 0xd36   : > { %5490 = vmatpush3.msra.mxu1 %v7263_v27  ;;  %5491 = vmatprep.mubr.msk.f32.mxu1 %vm1209_vm3, %v3653_v16  ;;  %v1116_v27 = vld [vmem:[%s6737_s18 + $0x8] sm:$0xf] }
 0xd37   : > { %v3655_v25 = vpop.permute.xlu1 %3654  ;;  %5494 = vmatprep.subr.mxu1 %v7951_v4  ;;  %5483 = vmatprep.subr.bf16.mxu0 %v7951_v4  ;;  %v3607_v2 = vsel %vm2746_vm5, %v1116_v27, 0 }
 0xd38   : > { %5485 = vmatprep.mubr.msk.bf16.mxu0 %vm6260_vm1, %v7951_v4  ;;  %5484 = vmatpush3.bf16.msra.mxu0 %v3607_v2 }
 0xd39   : > { %5492 = vmatmul.mubr.msk.f32.vlgmr.msra.gmra.mrb[28].mxu1 %vm1209_vm3, %v3655_v25  ;;  %5499 = vmatprep.subr.mxu0 %v7951_v4 }
 0xd3a   : > { %5496 = vmatprep.mubr.msk.f32.mxu1 %vm6260_vm1, %v7951_v4 }
 0xd3b   : > { %v3822_v37 = vpop.permute.xlu1 %3821 }
 0xd3d   : > { %5495 = vmatpush3.xpose.msk.msra.mxu1 %vm1209_vm3, %v3748_v7 }
 0xd3e   : > { %5504 = vmatprep.subr.mxu1 %v7951_v4 }
 0xd40   : > { %5497 = vmatmul.mubr.msk.f32.vlgmr.msra.gmra.mrb[30].mxu1 %vm1209_vm3, %v3653_v16 }
 0xd41   : > { %5506 = vmatprep.mubr.msk.f32.mxu1 %vm6260_vm1, %v7951_v4 }
 0xe04   : > { %v3343_v9 = vpop.f32.mrb[24].mxu1 }
 0xe05   : > { %v5470_v12 = vpop.f32.mrb[25].mxu1 }
 0xe08   : > { %v3419_v35 = vpop.f32.mrb[18].mxu0  ;;  %v5482_v30 = vpop.f32.mrb[26].mxu1 }
 0xe09   : > { %v3601_v59 = vadd.f32 %v5482_v30, %v3419_v35  ;;  %v5475_v11 = vpop.f32.mrb[19].mxu0  ;;  %v3591_v22 = vpop.f32.mrb[27].mxu1 }
 0xe0a   : > { %v3600_v55 = vadd.f32 %v3591_v22, %v3343_v9 }
 0xe0c   : > { %v3602_v31 = vpack.c.bf16 %v3601_v59, %v3600_v55  ;;  %v7445_v44 = vpop.f32.mrb[28].mxu1 }
 0xe0d   : > { %3900 = vperm.xlu0 %5825, %v7445_v44   ;;  %3742 = vperm.xlu1 %5824, %v7445_v44   ;;  %v7449_v23 = vpop.f32.mrb[29].mxu1 }
 0xe0e   : > { %5486 = vmatmul.mubr.msk.bf16.vlgmr.msra.gmra.mrb[20].mxu0 %vm1209_vm3, %v3602_v31 }
 0xe0f   : > { %5500 = vmatpush3.xpose.msk.msra.mxu0 %vm1209_vm3, %v3822_v37  ;;  %5501 = vmatprep.mubr.msk.f32.mxu0 %vm6260_vm1, %v7951_v4 }
 0xe10   : > { %5509 = vmatprep.subr.mxu0 %v7951_v4 }
 0xe11   : > { %5828 = vset.pattern.permute.xlu0 %v7938_v18  ;;  %5826 = vset.pattern.permute.xlu1 %v7933_v52 }
 0xe12   : > { %3936 = vperm.xlu0 %5828, %v7445_v44   ;;  %3912 = vperm.xlu1 %5826, %v7445_v44  }
 0xe13   : > { %v7460_v48 = vpop.f32.mrb[30].mxu1 }
 0xe14   : > { %v5498_v50 = vpop.f32.mrb[31].mxu1 }
 0xe16   : > { %5831 = vset.pattern.permute.xlu0 %v7936_v51  ;;  %5827 = vset.pattern.permute.xlu1 %v7935_v43 }
 0xe17   : > { %5502 = vmatmul.mubr.msk.f32.vlgmr.msra.gmra.mrb[24].mxu0 %vm1209_vm3, %v3655_v25  ;;  %3972 = vperm.xlu0 %5831, %v7445_v44  }
 0xe18   : > { %3924 = vperm.xlu1 %5827, %v7445_v44   ;;  %5511 = vmatprep.mubr.msk.f32.mxu0 %vm6260_vm1, %v7951_v4 }
 0xe1b   : > { %5834 = vset.pattern.permute.xlu0 %v7952_v19 }
 0xe1c   : > { %5829 = vset.pattern.permute.xlu1 %v7937_v33  ;;  %4008 = vperm.xlu0 %5834, %v7445_v44  }
 0xe1d   : > { %3948 = vperm.xlu1 %5829, %v7445_v44  }
 0xe20   : > { %5837 = vset.pattern.permute.xlu0 %v7931_v10 }
 0xe21   : > { %5830 = vset.pattern.permute.xlu1 %v7934_v24  ;;  %3737 = vperm.xlu0 %5837, %v7449_v23  }
 0xe22   : > { %3960 = vperm.xlu1 %5830, %v7445_v44  }
 0xe25   : > { %5840 = vset.pattern.permute.xlu0 %v7935_v43 }
 0xe26   : > { %5832 = vset.pattern.permute.xlu1 %v7953_v38  ;;  %3920 = vperm.xlu0 %5840, %v7449_v23  }
 0xe27   : > { %3984 = vperm.xlu1 %5832, %v7445_v44  }
 0xe2a   : > { %5843 = vset.pattern.permute.xlu0 %v7934_v24 }
 0xe2b   : > { %5833 = vset.pattern.permute.xlu1 %v7954_v39  ;;  %3956 = vperm.xlu0 %5843, %v7449_v23  }
 0xe2c   : > { %3996 = vperm.xlu1 %5833, %v7445_v44  }
 0xe2f   : > { %5846 = vset.pattern.permute.xlu0 %v7954_v39 }
 0xe30   : > { %5835 = vset.pattern.permute.xlu1 %v7955_v41  ;;  %3992 = vperm.xlu0 %5846, %v7449_v23  }
 0xe31   : > { %4020 = vperm.xlu1 %5835, %v7445_v44  }
 0xe34   : > { %5849 = vset.pattern.permute.xlu0 %v7956_v20 }
 0xe35   : > { %5836 = vset.pattern.permute.xlu1 %v7956_v20  ;;  %4028 = vperm.xlu0 %5849, %v7449_v23  }
 0xe36   : > { %4032 = vperm.xlu1 %5836, %v7445_v44  }
 0xe39   : > { %5850 = vset.pattern.permute.xlu0 %v7957_v40 }
 0xe3a   : > { %5838 = vset.pattern.permute.xlu1 %v7932_v58  ;;  %4044 = vperm.xlu0 %5850, %v7445_v44  }
 0xe3b   : > { %3896 = vperm.xlu1 %5838, %v7449_v23  }
 0xe3e   : > { %5854 = vset.pattern.permute.xlu0 %v7932_v58 }
 0xe3f   : > { %5839 = vset.pattern.permute.xlu1 %v7933_v52 }
 0xe40   : > { %3908 = vperm.xlu1 %5839, %v7449_v23  }
 0xe44   : > { %5841 = vset.pattern.permute.xlu1 %v7938_v18 }
 0xe45   : > { %3932 = vperm.xlu1 %5841, %v7449_v23  }
 0xe49   : > { %5842 = vset.pattern.permute.xlu1 %v7937_v33 }
 0xe4a   : > { %3944 = vperm.xlu1 %5842, %v7449_v23  }
 0xe4e   : > { %5844 = vset.pattern.permute.xlu1 %v7936_v51 }
 0xe4f   : > { %3968 = vperm.xlu1 %5844, %v7449_v23  }
 0xe53   : > { %5845 = vset.pattern.permute.xlu1 %v7953_v38 }
 0xe54   : > { %3980 = vperm.xlu1 %5845, %v7449_v23  }
 0xe58   : > { %5847 = vset.pattern.permute.xlu1 %v7952_v19 }
 0xe59   : > { %4004 = vperm.xlu1 %5847, %v7449_v23  }
 0xe5d   : > { %5848 = vset.pattern.permute.xlu1 %v7955_v41 }
 0xe5e   : > { %4016 = vperm.xlu1 %5848, %v7449_v23  }
 0xe62   : > { %5851 = vset.pattern.permute.xlu1 %v7957_v40 }
 0xe63   : > { %4040 = vperm.xlu1 %5851, %v7449_v23  }
 0xe67   : > { %5852 = vset.pattern.permute.xlu1 %v7958_v17 }
 0xe68   : > { %4052 = vperm.xlu1 %5852, %v7449_v23  }
 0xe6c   : > { %4056 = vperm.xlu1 %5852, %v7445_v44  }
 0xe70   : > { %5853 = vset.pattern.permute.xlu1 %v7931_v10 }
 0xe8c   : > { %v7518_v26 = vpop.permute.xlu1 %3742  ;;  %v3901_v7 = vpop.permute.xlu0 %3900 }
 0xe91   : > { %v7520_v34 = vpop.permute.xlu1 %3912  ;;  %v7528_v2 = vpop.permute.xlu0 %3936 }
 0xe96   : > { %v7532_v12 = vpop.permute.xlu0 %3972 }
 0xe97   : > { %v7522_v16 = vpop.permute.xlu1 %3924 }
 0xe9b   : > { %v7538_v59 = vpop.permute.xlu0 %4008 }
 0xe9c   : > { %v7524_v25 = vpop.permute.xlu1 %3948 }
 0xea0   : > { %v3738_v22 = vpop.permute.xlu0 %3737 }
 0xea1   : > { %v7526_v27 = vpop.permute.xlu1 %3960  ;;  %v3745_v55 = vmul.f32 %v6861_v45, %v3738_v22 }
 0xea3   : > { %v3818_v23 = vadd.f32 %v7460_v48, %v3745_v55 }
 0xea5   : > { %v3921_v38 = vpop.permute.xlu0 %3920 }
 0xea6   : > { %v7530_v9 = vpop.permute.xlu1 %3984  ;;  %v3927_v41 = vmul.f32 %v6875_v56, %v3921_v38 }
 0xeaa   : > { %v3957_v8 = vpop.permute.xlu0 %3956 }
 0xeab   : > { %v7534_v35 = vpop.permute.xlu1 %3996  ;;  %v3963_v48 = vmul.f32 %v6890_v6, %v3957_v8 }
 0xeaf   : > { %v3993_v38 = vpop.permute.xlu0 %3992 }
 0xeb0   : > { %v7536_v30 = vpop.permute.xlu1 %4020 }
 0xeb5   : > { %v7540_v11 = vpop.permute.xlu1 %4032 }
 0xeba   : > { %v3897_v31 = vpop.permute.xlu1 %3896 }
 0xebb   : > { %v3903_v44 = vmul.f32 %v6866_v49, %v3897_v31 }
 0xebd   : > { %v3905_v50 = vadd.f32 %v3903_v44, %v3818_v23 }
 0xebf   : > { %v3909_v37 = vpop.permute.xlu1 %3908 }
 0xec0   : > { %v3915_v19 = vmul.f32 %v6872_v54, %v3909_v37 }
 0xec2   : > { %v3917_v39 = vadd.f32 %v3915_v19, %v3905_v50 }
 0xec4   : > { %v3933_v20 = vpop.permute.xlu1 %3932  ;;  %v3929_v40 = vadd.f32 %v3927_v41, %v3917_v39  ;;  %v3999_v41 = vmul.f32 %v6905_v36, %v3993_v38 }
 0xec5   : > { %v3939_v17 = vmul.f32 %v6881_v62, %v3933_v20 }
 0xec7   : > { %v3941_v63 = vadd.f32 %v3939_v17, %v3929_v40 }
 0xec9   : > { %v3945_v4 = vpop.permute.xlu1 %3944 }
 0xeca   : > { %v3951_v22 = vmul.f32 %v6887_v3, %v3945_v4 }
 0xecc   : > { %v3953_v31 = vadd.f32 %v3951_v22, %v3941_v63  ;;  %v4029_v22 = vpop.permute.xlu0 %4028 }
 0xece   : > { %v3969_v55 = vpop.permute.xlu1 %3968  ;;  %v3965_v44 = vadd.f32 %v3963_v48, %v3953_v31 }
 0xecf   : > { %v3975_v23 = vmul.f32 %v6896_v15, %v3969_v55  ;;  %v4035_v55 = vmul.f32 %v6920_v57, %v4029_v22 }
 0xed1   : > { %v3977_v50 = vadd.f32 %v3975_v23, %v3965_v44  ;;  %v7959_v23 = vld [vmem:[#allocation34_spill] sm:$0xff] }
 0xed3   : > { %v3981_v37 = vpop.permute.xlu1 %3980 }
 0xed4   : > { %v3987_v19 = vmul.f32 %v6902_v21, %v3981_v37 }
 0xed6   : > { %v3989_v39 = vadd.f32 %v3987_v19, %v3977_v50 }
 0xed8   : > { %v4005_v20 = vpop.permute.xlu1 %4004  ;;  %v4001_v40 = vadd.f32 %v3999_v41, %v3989_v39  ;;  %v7960_v41 = vld [vmem:[#allocation35_spill] sm:$0xff] }
 0xed9   : > { %v4011_v4 = vmul.f32 %v6911_v47, %v4005_v20 }
 0xedb   : > { %v4013_v63 = vadd.f32 %v4011_v4, %v4001_v40 }
 0xedd   : > { %v4017_v17 = vpop.permute.xlu1 %4016 }
 0xede   : > { %v4023_v8 = vmul.f32 %v6917_v53, %v4017_v17 }
 0xee0   : > { %v4025_v31 = vadd.f32 %v4023_v8, %v4013_v63  ;;  %v3746_v8 = vmul.f32 %v6861_v45, %v7518_v26  ;;  %v3940_v45 = vmul.f32 %v6881_v62, %v7528_v2  ;;  %v4000_v62 = vmul.f32 %v6905_v36, %v7534_v35 }
 0xee1   : > { %v3643_v48 = vpop.f32.mrb[20].mxu0 }
 0xee2   : > { %v4041_v44 = vpop.permute.xlu1 %4040  ;;  %v7557_v37 = vadd.f32 %v3643_v48, %v7959_v23  ;;  %v5487_v50 = vpop.f32.mrb[21].mxu0  ;;  %v4037_v38 = vadd.f32 %v4035_v55, %v4025_v31  ;;  %v3904_v48 = vmul.f32 %v6866_v49, %v3901_v7  ;;  %v3916_v55 = vmul.f32 %v6872_v54, %v7520_v34 }
 0xee3   : > { %v3646_v19 = vpop.f32.mrb[22].mxu0  ;;  %v4047_v39 = vmul.f32 %v6927_v1, %v4041_v44  ;;  %v3952_v49 = vmul.f32 %v6887_v3, %v7524_v25  ;;  %v3964_v7 = vmul.f32 %v6890_v6, %v7526_v27  ;;  %v3976_v54 = vmul.f32 %v6896_v15, %v7532_v12 }
 0xee4   : > { %v7561_v20 = vadd.f32 %v3646_v19, %v7960_v41  ;;  %v5488_v40 = vpop.f32.mrb[23].mxu0  ;;  %v3928_v19 = vmul.f32 %v6875_v56, %v7522_v16  ;;  %v3988_v56 = vmul.f32 %v6902_v21, %v7530_v9  ;;  %v4012_v3 = vmul.f32 %v6911_v47, %v7538_v59  ;;  %v4045_v41 = vpop.permute.xlu0 %4044 }
 0xee5   : > { %v4049_v17 = vadd.f32 %v4047_v39, %v4037_v38  ;;  %v4024_v6 = vmul.f32 %v6917_v53, %v7536_v30  ;;  %v4036_v15 = vmul.f32 %v6920_v57, %v7540_v11  ;;  %v4048_v21 = vmul.f32 %v6927_v1, %v4045_v41 }
 0xee7   : > { %v4053_v4 = vpop.permute.xlu1 %4052 }
 0xee8   : > { %v4059_v63 = vmul.f32 %v6930_v5, %v4053_v4 }
 0xeea   : > { %v4061_v22 = vadd.f32 %v4059_v63, %v4049_v17  ;;  %v3891_v42 = vpop.f32.mrb[24].mxu0 }
 0xeeb   : > { %v3892_v23 = vadd.f32 %v3891_v42, %v3746_v8  ;;  %v5503_v50 = vpop.f32.mrb[25].mxu0  ;;  %v4057_v40 = vpop.permute.xlu1 %4056 }
 0xeec   : > { %v4063_v31 = vsel %vm1209_vm3, %v4061_v22, -inf  ;;  %v4060_v36 = vmul.f32 %v6930_v5, %v4057_v40 }
 0xeed   : > { %v3906_v44 = vadd.f32 %v3904_v48, %v3892_v23  ;;  %4064 = vmax.xlane.f32.xlu0 %v4063_v31 }
 0xeef   : > { %v3918_v38 = vadd.f32 %v3916_v55, %v3906_v44 }
 0xef1   : > { %v3930_v26 = vadd.f32 %v3928_v19, %v3918_v38 }
 0xef3   : > { %v3942_v42 = vadd.f32 %v3940_v45, %v3930_v26 }
 0xef5   : > { %v3954_v39 = vadd.f32 %v3952_v49, %v3942_v42 }
 0xef7   : > { %v3966_v34 = vadd.f32 %v3964_v7, %v3954_v39 }
 0xef9   : > { %v3978_v16 = vadd.f32 %v3976_v54, %v3966_v34 }
 0xefb   : > { %v3990_v2 = vadd.f32 %v3988_v56, %v3978_v16  ;;  %v7961_v56 = vld [vmem:[#allocation33_spill] sm:$0xff] }
 0xefd   : > { %v4002_v25 = vadd.f32 %v4000_v62, %v3990_v2 }
 0xeff   : > { %v4014_v27 = vadd.f32 %v4012_v3, %v4002_v25 }
 0xf01   : > { %v4026_v12 = vadd.f32 %v4024_v6, %v4014_v27  ;;  %v7962_v27 = vld [vmem:[#allocation29_spill] sm:$0xff] }
 0xf03   : > { %v4038_v9 = vadd.f32 %v4036_v15, %v4026_v12  ;;  %v7964_v15 = vmov 0.0  }
 0xf05   : > { %v4050_v4 = vadd.f32 %v4048_v21, %v4038_v9 }
 0xf07   : > { %v4062_v35 = vadd.f32 %v4060_v36, %v4050_v4 }
 0xf09   : > { %v4066_v47 = vsel %vm1209_vm3, %v4062_v35, -inf }
 0xf0a   : > { %4067 = vmax.xlane.f32.xlu1 %v4066_v47 }
 0xf7a   : > { %v4065_v59 = vpop.xlane.xlu0 %4064 }
 0xf7b   : > { %v4069_v17 = vsub.f32 %v4061_v22, %v4065_v59 }
 0xf7d   : > { %v4071_v53 = vmul.f32 1.442695, %v4069_v17 }
 0xf7f   : > { %5902 = vpow2.f32 %v4071_v53 }
 0xf89   : > { %v5903_v30 = vpop.eup %5902 }
 0xf8a   : > { %v4075_v63 = vsel %vm1209_vm3, %v5903_v30, 0.0 }
 0xf8b   : > { %4076 = vadd.xlane.f32.xlu0 %v4075_v63 }
 0xf97   : > { %v4068_v57 = vpop.xlane.xlu1 %4067 }
 0xf98   : > { %v4070_v11 = vsub.f32 %v4062_v35, %v4068_v57 }
 0xf9a   : > { %v4073_v8 = vmul.f32 1.442695, %v4070_v11 }
 0xf9c   : > { %5904 = vpow2.f32 %v4073_v8 }
 0xfa6   : > { %v5905_v1 = vpop.eup %5904 }
 0xfa7   : > { %v4078_v48 = vsel %vm1209_vm3, %v5905_v1, 0.0 }
 0xfa8   : > { %4079 = vadd.xlane.f32.xlu0 %v4078_v48 }
0x1018   : > { %v4077_v5 = vpop.xlane.xlu0 %4076 }
0x1019   : > { %5906 = vrcp.f32 %v4077_v5 }
0x1023   : > { %v5907_v23 = vpop.eup %5906 }
0x1024   : > { %v7595_v50 = vmul.f32 %v5907_v23, %v5903_v30 }
0x1026   : > { %4238 = vperm.xlu1 %5853, %v7595_v50   ;;  %4250 = vperm.xlu0 %5854, %v7595_v50  }
0x102a   : > { %5855 = vset.pattern.permute.xlu1 %v7933_v52  ;;  %5858 = vset.pattern.permute.xlu0 %v7937_v33 }
0x102b   : > { %4262 = vperm.xlu1 %5855, %v7595_v50   ;;  %4298 = vperm.xlu0 %5858, %v7595_v50  }
0x102f   : > { %5856 = vset.pattern.permute.xlu1 %v7935_v43  ;;  %5867 = vset.pattern.permute.xlu0 %v7934_v24 }
0x1030   : > { %4274 = vperm.xlu1 %5856, %v7595_v50  }
0x1034   : > { %5857 = vset.pattern.permute.xlu1 %v7938_v18 }
0x1035   : > { %4286 = vperm.xlu1 %5857, %v7595_v50   ;;  %v4080_v22 = vpop.xlane.xlu0 %4079 }
0x1036   : > { %5908 = vrcp.f32 %v4080_v22 }
0x1039   : > { %5859 = vset.pattern.permute.xlu1 %v7934_v24 }
0x103a   : > { %4310 = vperm.xlu1 %5859, %v7595_v50  }
0x103e   : > { %5860 = vset.pattern.permute.xlu1 %v7936_v51 }
0x103f   : > { %4322 = vperm.xlu1 %5860, %v7595_v50  }
0x1040   : > { %v5909_v31 = vpop.eup %5908 }
0x1041   : > { %v7612_v55 = vmul.f32 %v5909_v31, %v5905_v1 }
0x1043   : > { %5861 = vset.pattern.permute.xlu1 %v7931_v10  ;;  %4314 = vperm.xlu0 %5867, %v7612_v55  }
0x1044   : > { %4242 = vperm.xlu1 %5861, %v7612_v55  }
0x1047   : > { %4085 = vrot.lane.b32.xlu0 %v6778_v14, %s6287_s29 }
0x1048   : > { %5862 = vset.pattern.permute.xlu1 %v7932_v58  ;;  %5869 = vset.pattern.permute.xlu0 %v7936_v51 }
0x1049   : > { %4254 = vperm.xlu1 %5862, %v7612_v55  }
0x104d   : > { %5863 = vset.pattern.permute.xlu1 %v7933_v52 }
0x104e   : > { %4266 = vperm.xlu1 %5863, %v7612_v55  }
0x1052   : > { %5864 = vset.pattern.permute.xlu1 %v7935_v43 }
0x1053   : > { %4278 = vperm.xlu1 %5864, %v7612_v55  }
0x1057   : > { %5865 = vset.pattern.permute.xlu1 %v7938_v18 }
0x1058   : > { %4290 = vperm.xlu1 %5865, %v7612_v55  }
0x105c   : > { %5866 = vset.pattern.permute.xlu1 %v7937_v33 }
0x105d   : > { %4302 = vperm.xlu1 %5866, %v7612_v55  }
0x1061   : > { %5868 = vset.pattern.permute.xlu1 %v7936_v51 }
0x1062   : > { %4326 = vperm.xlu1 %5868, %v7612_v55  }
0x1066   : > { %4161 = vrot.lane.b32.xlu1 %v7948_v13, %s6287_s29 }
0x10a5   : > { %v4239_v14 = vpop.permute.xlu1 %4238  ;;  %v4251_v52 = vpop.permute.xlu0 %4250 }
0x10a6   : > { %v4257_v24 = vmul.f32 %v7949_v28, %v4251_v52  ;;  %v4245_v43 = vmul.f32 %v7950_v29, %v4239_v14 }
0x10a8   : > { %v4259_v33 = vadd.f32 %v4257_v24, %v4245_v43 }
0x10aa   : > { %v4263_v10 = vpop.permute.xlu1 %4262  ;;  %v4299_v13 = vpop.permute.xlu0 %4298 }
0x10ab   : > { %v4269_v44 = vmul.f32 %v7043_v61, %v4263_v10  ;;  %v4305_v7 = vmul.f32 %v7075_v60, %v4299_v13 }
0x10ad   : > { %v4271_v38 = vadd.f32 %v4269_v44, %v4259_v33 }
0x10af   : > { %v4275_v58 = vpop.permute.xlu1 %4274 }
0x10b0   : > { %v4281_v19 = vmul.f32 %v7059_v46, %v4275_v58 }
0x10b2   : > { %v4283_v26 = vadd.f32 %v4281_v19, %v4271_v38  ;;  %v5919_v38 = vld [vmem:[#allocation2] sm:$0xff] }
0x10b4   : > { %v4287_v18 = vpop.permute.xlu1 %4286 }
0x10b5   : > { %v4293_v51 = vmul.f32 %v7065_v0, %v4287_v18 }
0x10b7   : > { %v4295_v49 = vadd.f32 %v4293_v51, %v4283_v26  ;;  %v5920_v26 = vld [vmem:[#allocation2 + $0x8] sm:$0xff] }
0x10b9   : > { %v4311_v45 = vpop.permute.xlu1 %4310  ;;  %v4307_v39 = vadd.f32 %v4305_v7, %v4295_v49 }
0x10ba   : > { %v4317_v54 = vmul.f32 %v7080_v32, %v4311_v45 }
0x10bc   : > { %v4319_v2 = vadd.f32 %v4317_v54, %v4307_v39 }
0x10be   : > { %v4323_v42 = vpop.permute.xlu1 %4322 }
0x10bf   : > { %v4329_v16 = vmul.f32 %v7961_v56, %v4323_v42 }
0x10c1   : > { %v4331_v25 = vadd.f32 %v4329_v16, %v4319_v2  ;;  %v5872_v2 = vld [vmem:[%s6742_s6] sm:$0xff]  }
0x10c2   : > { %v4315_v34 = vpop.permute.xlu0 %4314 }
0x10c3   : > { %v4243_v62 = vpop.permute.xlu1 %4242  ;;  %v4318_v11 = vmul.f32 %v7080_v32, %v4315_v34 }
0x10c4   : > { %v4246_v9 = vmul.f32 %v7950_v29, %v4243_v62 }
0x10c6   : > { %v4086_v3 = vpop.permute.xlu0 %4085 }
0x10c7   : > { %5505 = vmatpush3.msra.mxu1 %v4086_v3  ;;  %v5873_v3 = vld [vmem:[%s6742_s6 + $0x8] sm:$0xff]   ;;  %s7966_s6 = scalar_lea.vmem [#allocation9], %s6696_s21 }
0x10c8   : > { %5507 = vmatmul.mubr.msk.f32.vlgmr.msra.gmra.mrb[32].mxu1 %vm1209_vm3, %v7595_v50  ;;  %v4255_v6 = vpop.permute.xlu1 %4254  ;;  %5575 = vmatprep.subr.msk.bf16.mxu1 %vm7016_vm8, %v7962_v27 }
0x10c9   : > { %5518 = vmatprep.mubr.msk.f32.mxu1 %vm1889_vm4, %v4331_v25  ;;  %5578 = vmatpush3.bf16.msk.msra.mxu1 %vm7016_vm8, %v7962_v27  ;;  %v4258_v21 = vmul.f32 %v7949_v28, %v4255_v6  ;;  %v5874_v25 = vld [vmem:[%s6747_s28] sm:$0xff]   ;;  %v5875_v6 = vld [vmem:[%s6747_s28 + $0x8] sm:$0xff]  }
0x10ca   : > { %5527 = vmatprep.subr.bf16.mxu1 %v7964_v15 }
0x10cb   : > { %v4260_v36 = vadd.f32 %v4258_v21, %v4246_v9 }
0x10cd   : > { %v4267_v12 = vpop.permute.xlu1 %4266 }
0x10ce   : > { %v4270_v4 = vmul.f32 %v7043_v61, %v4267_v12 }
0x10d0   : > { %v4272_v59 = vadd.f32 %v4270_v4, %v4260_v36 }
0x10d2   : > { %v4279_v40 = vpop.permute.xlu1 %4278 }
0x10d3   : > { %v4282_v35 = vmul.f32 %v7059_v46, %v4279_v40  ;;  %v1117_v46 = vld [vmem:[%s6737_s18 + $0xc] sm:$0xf]  ;;  %s7965_s18 = scalar_lea.vmem [#allocation7], %s6696_s21 }
0x10d4   : > { %v5252_v58 = vld [vmem:[%s7965_s18] ss:$0 sm:$0xff] }
0x10d5   : > { %v4284_v53 = vadd.f32 %v4282_v35, %v4272_v59  ;;  %v5253_v35 = vld [vmem:[%s7966_s6] ss:$0 sm:$0xff]  ;;  %s7974_s6 = sld [smem:[#allocation48_spill]] (!%p5267_p13) }
0x10d7   : > { %v4291_v47 = vpop.permute.xlu1 %4290 }
0x10d8   : > { %v4294_v17 = vmul.f32 %v7065_v0, %v4291_v47  ;;  %v4421_v0 = vsel %vm2746_vm5, %v1117_v46, 0 }
0x10da   : > { %v4296_v63 = vadd.f32 %v4294_v17, %v4284_v53  ;;  %v5254_v53 = vld [vmem:[%s7967_s27] ss:$0 sm:$0xff] }
0x10dc   : > { %v4303_v30 = vpop.permute.xlu1 %4302 }
0x10dd   : > { %v4306_v57 = vmul.f32 %v7075_v60, %v4303_v30 }
0x10df   : > { %v4308_v28 = vadd.f32 %v4306_v57, %v4296_v63 }
0x10e1   : > { %v4320_v8 = vadd.f32 %v4318_v11, %v4308_v28  ;;  %v4327_v29 = vpop.permute.xlu1 %4326  ;;  %v5876_v28 = vld [vmem:[%s6747_s28 + $0x10] sm:$0xff]  }
0x10e2   : > { %v4330_v61 = vmul.f32 %v7961_v56, %v4327_v29  ;;  %v5255_v29 = vld [vmem:[%s7968_s25] ss:$0 sm:$0xff] }
0x10e4   : > { %v4332_v1 = vadd.f32 %v4330_v61, %v4320_v8  ;;  %v5877_v8 = vld [vmem:[%s6747_s28 + $0x18] sm:$0xff]   ;;  %s7970_s28 = scalar_lea.vmem [#allocation15], %s6696_s21 }
0x10e5   : > { %v4162_v48 = vpop.permute.xlu1 %4161 }
0x10e6   : > { %5510 = vmatpush3.msra.mxu0 %v4162_v48  ;;  %5519 = vmatmul.mubr.msk.f32.vlgmr.msra.gmra.mrb[34].mxu1 %vm1889_vm4, %v4332_v1 }
0x10e7   : > { %5512 = vmatmul.mubr.msk.f32.vlgmr.msra.gmra.mrb[26].mxu0 %vm1209_vm3, %v7612_v55  ;;  %5521 = vmatprep.subr.bf16.mxu0 %v7964_v15 }
0x10e8   : > { %5523 = vmatprep.mubr.msk.bf16.mxu0 %vm6260_vm1, %v7964_v15  ;;  %5531 = vmatprep.mubr.msk.bf16.mxu1 %vm6260_vm1, %v7964_v15 }
0x10e9   : > { %5522 = vmatpush3.bf16.msra.mxu0 %v4421_v0  ;;  %5528 = vmatpush3.bf16.msra.mxu1 %v5872_v2  ;;  %v5266_v2 = vld [vmem:[%s7971_s4] ss:$0 sm:$0xff] }
0x10ea   : > { %5535 = vmatprep.subr.bf16.mxu0 %v7964_v15  ;;  %5529 = vmatprep.subr.bf16.mxu1 %v7964_v15 }
0x10ed   : > { %5530 = vmatpush3.bf16.msra.mxu1 %v5873_v3 }
0x119b   : > { %v4157_v60 = vpop.f32.mrb[32].mxu1 }
0x119c   : > { %v5508_v32 = vpop.f32.mrb[33].mxu1 }
0x11b9   : > { %v5520_v5 = vpop.f32.mrb[34].mxu1 }
0x11ba   : > { %v4233_v23 = vpop.f32.mrb[26].mxu0  ;;  %v4405_v50 = vpop.f32.mrb[35].mxu1 }
0x11bb   : > { %v4415_v22 = vadd.f32 %v5520_v5, %v4233_v23  ;;  %v4414_v31 = vadd.f32 %v4405_v50, %v4157_v60  ;;  %v5513_v55 = vpop.f32.mrb[27].mxu0  ;;  %v5259_v50 = vld [vmem:[%s7969_s0] ss:$0 sm:$0xff]  ;;  %s7975_s0 = sld [smem:[#allocation49_spill]] (!%p5267_p13) }
0x11bd   : > { %v4416_v14 = vpack.c.bf16 %v4415_v22, %v4414_v31 }
0x11bf   : > { %5524 = vmatmul.mubr.msk.bf16.vlgmr.msra.gmra.mrb[28].mxu0 %vm1209_vm3, %v4416_v14  ;;  %vm6289_vm3 = vmmov (!%p5267_p13), 0  }
0x11c0   : > { %5543 = vmatprep.mubr.msk.bf16.mxu0 %vm6260_vm1, %v7964_v15  ;;  %5536 = vmatpush3.bf16.msra.mxu0 %v5874_v25  ;;  %vm4632_vm1 = vcmask 523264  }
0x11c1   : > { %5537 = vmatprep.subr.bf16.mxu0 %v7964_v15 }
0x11c4   : > { %5538 = vmatpush3.bf16.msra.mxu0 %v5875_v6 }
0x11c5   : > { %5539 = vmatprep.subr.bf16.mxu0 %v7964_v15 }
0x11c8   : > { %5540 = vmatpush3.bf16.msra.mxu0 %v5876_v28 }
0x11c9   : > { %5541 = vmatprep.subr.bf16.mxu0 %v7964_v15 }
0x11cc   : > { %5542 = vmatpush3.bf16.msra.mxu0 %v5877_v8 }
0x1292   : > { %v4457_v10 = vpop.f32.mrb[28].mxu0 }
0x1293   : > { %v4464_v52 = vadd.f32 %v4457_v10, %v7557_v37  ;;  %v5525_v24 = vpop.f32.mrb[29].mxu0 }
0x1294   : > { %v4460_v43 = vpop.f32.mrb[30].mxu0 }
0x1295   : > { %v4473_v18 = vadd.f32 %v5252_v58, %v4464_v52  ;;  %v4465_v44 = vadd.f32 %v4460_v43, %v7561_v20  ;;  %v5526_v33 = vpop.f32.mrb[31].mxu0 }
0x1297   : > { %v4474_v19 = vadd.f32 %v5252_v58, %v4465_v44  ;;  %v4475_v51 = vadd.f32 %v5919_v38, %v4473_v18 }
0x1299   : > { %v4479_v45 = vsel %vm1066_vm2, %v4475_v51, 0.0  ;;  %v4476_v13 = vadd.f32 %v5920_v26, %v4474_v19 }
0x129a   : > { %4480 = vadd.xlane.f32.xlu0 %v4479_v45 }
0x129b   : > { %v4482_v49 = vsel %vm1066_vm2, %v4476_v13, 0.0 }
0x129c   : > { %4483 = vadd.xlane.f32.xlu1 %v4482_v49 }
0x1327   : > { %v4481_v37 = vpop.xlane.xlu0 %4480 }
0x1328   : > { %v4486_v42 = vmul.f32 0.03125, %v4481_v37 }
0x1329   : > { %v4484_v7 = vpop.xlane.xlu1 %4483 }
0x132a   : > { %v4488_v39 = vsub.f32 %v4475_v51, %v4486_v42  ;;  %v4487_v20 = vmul.f32 0.03125, %v4484_v7 }
0x132c   : > { %v4489_v54 = vsub.f32 %v4476_v13, %v4487_v20  ;;  %v4490_v34 = vmul.f32 %v4488_v39, %v4488_v39 }
0x132e   : > { %v4492_v56 = vsel %vm1066_vm2, %v4490_v34, 0.0  ;;  %v4491_v16 = vmul.f32 %v4489_v54, %v4489_v54 }
0x132f   : > { %4493 = vadd.xlane.f32.xlu0 %v4492_v56  ;;  %v5265_v56 = vld [vmem:[%s7970_s28] ss:$0 sm:$0xff] }
0x1330   : > { %v4495_v62 = vsel %vm1066_vm2, %v4491_v16, 0.0 }
0x1333   : > { %4496 = vadd.xlane.f32.xlu0 %v4495_v62 }
0x13bc   : > { %v4494_v27 = vpop.xlane.xlu0 %4493 }
0x13bd   : > { %v4498_v41 = vmul.f32 0.03125, %v4494_v27 }
0x13bf   : > { %v4500_v12 = vadd.f32 1e-05, %v4498_v41 }
0x13c0   : > { %v4497_v40 = vpop.xlane.xlu0 %4496 }
0x13c1   : > { %5910 = vrsqrt.f32 %v4500_v12  ;;  %v4499_v21 = vmul.f32 0.03125, %v4497_v40  ;;  %v5921_v12 = vld [vmem:[%s7792_s15] sm:$0xff] (!%p5267_p13)   ;;  %v6288_v40 = vmov (!%p5267_p13), 0.0  }
0x13c2   : > { %5547 = vmatprep.subr.bf16.mxu0 (!%p5267_p13), %v6288_v40 }
0x13c3   : > { %v4501_v9 = vadd.f32 1e-05, %v4499_v21  ;;  %v5922_v21 = vld [vmem:[%s7792_s15 + $0x8] sm:$0xff] (!%p5267_p13)  }
0x13c5   : > { %5912 = vrsqrt.f32 %v4501_v9 }
0x13cb   : > { %v5911_v4 = vpop.eup %5910 }
0x13cc   : > { %v4504_v36 = vmul.f32 %v5911_v4, %v4488_v39  ;;  %v5268_v4 = vld [vmem:[%s7793_s16] ss:$0 sm:$0xff] (!%p5267_p13) }
0x13ce   : > { %v4512_v59 = vmul.f32 %v5253_v35, %v4504_v36 }
0x13cf   : > { %v5913_v47 = vpop.eup %5912 }
0x13d0   : > { %v4505_v17 = vmul.f32 %v5913_v47, %v4489_v54  ;;  %v4520_v63 = vadd.f32 %v5254_v53, %v4512_v59 }
0x13d2   : > { %v4513_v30 = vmul.f32 %v5253_v35, %v4505_v17 }
0x13d4   : > { %v4521_v57 = vadd.f32 %v5254_v53, %v4513_v30 }
0x13d6   : > { %v4522_v11 = vpack.c.bf16 %v4521_v57, %v4520_v63 }
0x13d8   : > { %5532 = vmatmul.mubr.msk.bf16.vlgmr.msra.gmra.mrb[36].mxu1 %vm1066_vm2, %v4522_v11 }
0x14ab   : > { %v4583_v61 = vpop.f32.mrb[36].mxu1 }
0x14ac   : > { %v4584_v1 = vadd.f32 %v5255_v29, %v4583_v61  ;;  %v5533_v48 = vpop.f32.mrb[37].mxu1 }
0x14ad   : > { %v4586_v46 = vpop.f32.mrb[38].mxu1 }
0x14ae   : > { %v4587_v0 = vadd.f32 %v5255_v29, %v4586_v46  ;;  %v5534_v60 = vpop.f32.mrb[39].mxu1  ;;  %v4590_v32 = vmax.f32 %v4584_v1, 0.0 }
0x14b0   : > { %v4591_v5 = vmax.f32 %v4587_v0, 0.0 }
0x14b2   : > { %v4592_v23 = vpack.c.bf16 %v4591_v5, %v4590_v32 }
0x14b4   : > { %5544 = vmatmul.mubr.msk.bf16.vlgmr.msra.gmra.mrb[32].mxu0 %vm4632_vm1, %v4592_v23 }
0x14b5   : > { %5548 = vmatpush3.bf16.msra.mxu0 (!%p5267_p13), %v5921_v12  ;;  %5551 = vmatprep.mubr.msk.bf16.mxu0 (!%p5267_p13), %vm6289_vm3, %v6288_v40  ;;  %v5274_v12 = vld [vmem:[#allocation3] ss:$0 sm:$0xff] (!%p5267_p13) }
0x14b6   : > { %5549 = vmatprep.subr.bf16.mxu0 (!%p5267_p13), %v6288_v40 }
0x14b9   : > { %5550 = vmatpush3.bf16.msra.mxu0 (!%p5267_p13), %v5922_v21 }
0x1587   : > { %v4670_v22 = vpop.f32.mrb[32].mxu0 }
0x1588   : > { %v4671_v15 = vadd.f32 %v5259_v50, %v4670_v22  ;;  %v5545_v31 = vpop.f32.mrb[33].mxu0 }
0x1589   : > { %v4673_v55 = vpop.f32.mrb[34].mxu0 }
0x158a   : > { %v4677_v14 = vadd.f32 %v4671_v15, %v4520_v63  ;;  %v4674_v10 = vadd.f32 %v5259_v50, %v4673_v55  ;;  %v5546_v58 = vpop.f32.mrb[35].mxu0 }
0x158c   : > { %v4678_v52 = vadd.f32 %v4674_v10, %v4521_v57  ;;  %v4681_v24 = vsel %vm1066_vm2, %v4677_v14, 0.0 }
0x158d   : > { %4682 = vadd.xlane.f32.xlu1 %v4681_v24 }
0x158e   : > { %v4684_v43 = vsel %vm1066_vm2, %v4678_v52, 0.0 }
0x158f   : > { %4685 = vadd.xlane.f32.xlu0 %v4684_v43  ;;  %v5272_v43 = vld [vmem:[%s7972_s26] ss:$0 sm:$0xff] (!%p5267_p13) }
0x161a   : > { %v4683_v18 = vpop.xlane.xlu1 %4682 }
0x161b   : > { %v4687_v44 = vmul.f32 0.03125, %v4683_v18 }
0x161c   : > { %v4686_v33 = vpop.xlane.xlu0 %4685 }
0x161d   : > { %v4689_v19 = vsub.f32 %v4677_v14, %v4687_v44  ;;  %v4688_v38 = vmul.f32 0.03125, %v4686_v33  ;;  %v5273_v33 = vld [vmem:[%s7973_s22] ss:$0 sm:$0xff] (!%p5267_p13) }
0x161f   : > { %v4690_v51 = vsub.f32 %v4678_v52, %v4688_v38  ;;  %v4691_v45 = vmul.f32 %v4689_v19, %v4689_v19 }
0x1621   : > { %v4693_v26 = vsel %vm1066_vm2, %v4691_v45, 0.0  ;;  %v4692_v13 = vmul.f32 %v4690_v51, %v4690_v51 }
0x1622   : > { %4694 = vadd.xlane.f32.xlu1 %v4693_v26 }
0x1623   : > { %v4696_v49 = vsel %vm1066_vm2, %v4692_v13, 0.0 }
0x1624   : > { %4697 = vadd.xlane.f32.xlu0 %v4696_v49 }
0x16af   : > { %v4695_v37 = vpop.xlane.xlu1 %4694 }
0x16b0   : > { %v4699_v42 = vmul.f32 0.03125, %v4695_v37 }
0x16b1   : > { %v4698_v7 = vpop.xlane.xlu0 %4697 }
0x16b2   : > { %v4701_v39 = vadd.f32 1e-05, %v4699_v42  ;;  %v4700_v20 = vmul.f32 0.03125, %v4698_v7 }
0x16b4   : > { %5914 = vrsqrt.f32 %v4701_v39  ;;  %v4702_v54 = vadd.f32 1e-05, %v4700_v20 }
0x16b6   : > { %5916 = vrsqrt.f32 %v4702_v54 }
0x16be   : > { %v5915_v34 = vpop.eup %5914 }
0x16bf   : > { %v4705_v16 = vmul.f32 %v5915_v34, %v4689_v19 }
0x16c0   : > { %v5917_v62 = vpop.eup %5916 }
0x16c1   : > { %v4713_v3 = vmul.f32 %v5265_v56, %v4705_v16  ;;  %v4706_v25 = vmul.f32 %v5917_v62, %v4690_v51  ;;  %4728 = sbr.rel (%p5267_p13) target bundleno = 6294 (0x1896), region = 144  ;;  %v4846_v51 = vld [vmem:[%s7974_s6] sm:$0xff] (!%p5267_p13) }
0x16c3   : > { %v4721_v6 = vadd.f32 %v5266_v2, %v4713_v3  ;;  %v4714_v27 = vmul.f32 %v5265_v56, %v4706_v25 }
0x16c5   : > { %4723 = vst.msk [vmem:[#allocation2] sm:$0xff] %vm1066_vm2, %v4721_v6  ;;  %v4722_v41 = vadd.f32 %v5266_v2, %v4714_v27  ;;  %4729 = vst.msk [vmem:[#allocation18] sm:$0xff] (!%p5267_p13), %vm1066_vm2, %v4721_v6 }
0x16c7   : > { %4724 = vst.msk [vmem:[#allocation2 + $0x8] sm:$0xff] %vm1066_vm2, %v4722_v41  ;;  %4730 = vst.msk [vmem:[#allocation18 + $0x8] sm:$0xff] (!%p5267_p13), %vm1066_vm2, %v4722_v41  ;;  %v4731_v9 = vpack.c.bf16 (!%p5267_p13), %v4722_v41, %v4721_v6 }
0x16c9   : > { %5552 = vmatmul.mubr.msk.bf16.vlgmr.msra.gmra.mrb[0].mxu0 %vm1066_vm2, %v4731_v9  ;;  %vm4865_vm2 = vcmask 1041409  }
0x179c   : > { %v4792_v36 = vpop.f32.mrb[0].mxu0 }
0x179d   : > { %v4793_v35 = vadd.f32 %v5268_v4, %v4792_v36  ;;  %v5553_v47 = vpop.f32.mrb[1].mxu0 }
0x179e   : > { %v4795_v59 = vpop.f32.mrb[2].mxu0 }
0x179f   : > { %v4796_v17 = vadd.f32 %v5268_v4, %v4795_v59  ;;  %v5554_v53 = vpop.f32.mrb[3].mxu0  ;;  %v4799_v30 = vsel %vm4632_vm1, %v4793_v35, 0.0 }
0x17a1   : > { %v4800_v63 = vsel %vm4632_vm1, %v4796_v17, 0.0 }
0x17a2   : > { %v4801_v57 = vadd.f32 %v4800_v63, %v4799_v30 }
0x17a4   : > { %v4802_v11 = vrot.slane %v4801_v57, 4 }
0x17a6   : > { %v4803_v28 = vadd.f32 %v4802_v11, %v4801_v57 }
0x17a8   : > { %v4804_v8 = vrot.slane %v4803_v28, 2 }
0x17aa   : > { %v4805_v29 = vadd.f32 %v4804_v8, %v4803_v28 }
0x17ac   : > { %v4806_v61 = vrot.slane %v4805_v29, 1 }
0x17ae   : > { %v4807_v1 = vadd.f32 %v4806_v61, %v4805_v29 }
0x17b0   : > { %v4809_v48 = vmul.f32 0.0625, %v4807_v1 }
0x17b2   : > { %v4810_v46 = vsub.f32 %v4793_v35, %v4809_v48  ;;  %v4811_v0 = vsub.f32 %v4796_v17, %v4809_v48 }
0x17b4   : > { %v4812_v60 = vmul.f32 %v4810_v46, %v4810_v46  ;;  %v4813_v32 = vmul.f32 %v4811_v0, %v4811_v0 }
0x17b6   : > { %v4814_v5 = vsel %vm4632_vm1, %v4812_v60, 0.0  ;;  %v4815_v23 = vsel %vm4632_vm1, %v4813_v32, 0.0 }
0x17b7   : > { %v4816_v50 = vadd.f32 %v4815_v23, %v4814_v5 }
0x17b9   : > { %v4817_v22 = vrot.slane %v4816_v50, 4 }
0x17bb   : > { %v4818_v15 = vadd.f32 %v4817_v22, %v4816_v50 }
0x17bd   : > { %v4819_v31 = vrot.slane %v4818_v15, 2 }
0x17bf   : > { %v4820_v55 = vadd.f32 %v4819_v31, %v4818_v15 }
0x17c1   : > { %v4821_v14 = vrot.slane %v4820_v55, 1 }
0x17c3   : > { %v4822_v10 = vadd.f32 %v4821_v14, %v4820_v55 }
0x17c5   : > { %v4823_v58 = vmul.f32 0.0625, %v4822_v10 }
0x17c7   : > { %v4824_v52 = vadd.f32 1e-05, %v4823_v58 }
0x17c9   : > { %5923 = vrsqrt.f32 %v4824_v52 }
0x17d3   : > { %v5924_v24 = vpop.eup %5923 }
0x17d4   : > { %v4826_v18 = vmul.f32 %v5924_v24, %v4810_v46  ;;  %v4827_v44 = vmul.f32 %v5924_v24, %v4811_v0 }
0x17d6   : > { %v4835_v19 = vmul.f32 %v5272_v43, %v4826_v18  ;;  %v4836_v38 = vmul.f32 %v5272_v43, %v4827_v44 }
0x17d8   : > { %v4844_v45 = vadd.f32 %v5273_v33, %v4835_v19  ;;  %v4845_v26 = vadd.f32 %v5273_v33, %v4836_v38 }
0x17da   : > { %v4848_v13 = vmul.f32 %v4846_v51, %v4845_v26  ;;  %v4847_v49 = vmul.f32 %v4846_v51, %v4844_v45 }
0x17dc   : > { %v4849_v37 = vsel %vm4632_vm1, %v4847_v49, 0.0  ;;  %v4856_v42 = vsel %vm4632_vm1, %v4848_v13, 0.0 }
0x17dd   : > { %v4850_v7 = vrot.slane %v4849_v37, 4  ;;  %v4857_v39 = vrot.slane %v4856_v42, 4 }
0x17df   : > { %v4851_v20 = vadd.f32 %v4850_v7, %v4849_v37  ;;  %v4858_v54 = vadd.f32 %v4857_v39, %v4856_v42 }
0x17e1   : > { %v4852_v34 = vrot.slane %v4851_v20, 2  ;;  %v4859_v56 = vrot.slane %v4858_v54, 2 }
0x17e3   : > { %v4853_v16 = vadd.f32 %v4852_v34, %v4851_v20  ;;  %v4860_v62 = vadd.f32 %v4859_v56, %v4858_v54 }
0x17e5   : > { %v4854_v2 = vrot.slane %v4853_v16, 1  ;;  %v4861_v3 = vrot.slane %v4860_v62, 1 }
0x17e7   : > { %v4855_v25 = vadd.f32 %v4854_v2, %v4853_v16  ;;  %v4862_v6 = vadd.f32 %v4861_v3, %v4860_v62 }
0x17e9   : > { %v4866_v27 = vsel %vm4865_vm2, %v4862_v6, %v4855_v25 }
0x17ea   : > { %v4869_v41 = vsel %vm4868_vm6, %v4866_v27, 0.0 }
0x17eb   : > { %4870 = vadd.xlane.f32.xlu0 %v4869_v41 }
0x1878   : > { %v4871_v40 = vpop.xlane.xlu0 %4870 }
0x1879   : > { %v4879_v21 = vadd.f32 %v5274_v12, %v4871_v40 }
0x187b   : > { %v5275_v9 = vmul.f32 -1.442695, %v4879_v21 }
0x187d   : > { %5925 = vpow2.f32 %v5275_v9 }
0x1887   : > { %v5926_v4 = vpop.eup %5925 }
0x1888   : > { %v4883_v36 = vadd.f32 1.0, %v5926_v4 }
0x188a   : > { %5927 = vrcp.f32 %v4883_v36 }
0x1894   : > { %v5928_v35 = vpop.eup %5927 }
0x1895   : > { %4887 = vst.msk [vmem:[%s7975_s0] sm:$0x3] %vm4886_vm7, %v5928_v35 }
0x1896 PF: > { %p5625_p7 = scmp.eq.s32.totalorder %s6430_s20, 1  ;;  %s6290_s28 = smov [#allocation18]  }
0x1897   : > { %s4897_s4 = sshll.u32 %s6290_s28, 4  ;;  %s4898_s4 = int_to_ptr.vmem [resolvable:$true] %s4897_s4 }
0x1898   : > { %s6169_s8 = scalar_lea.vmem %s4898_s4, 256  ;;  %p6176_p4 = scmp.lt.s32.totalorder %s4898_s4, %s4898_s4 }
0x1899   : > { %p6170_p8 = scmp.ne.s32.totalorder %s4898_s4, %s6169_s8  ;;  %p6177_p9 = scmp.lt.s32.totalorder %s6169_s8, %s6169_s8 }
0x189b   : > { %p6171_p3 = pnand %p6170_p8, %p5625_p7  ;;  %p6178_p10 = por %p6177_p9, %p6176_p4 }
0x189d   : > { %p6172_p5 = pneg %p6171_p3 }
0x189f   : > { %p6179_p0 = pnand %p6178_p10, %p6172_p5 }
0x18a1   : > { %6182 = shalt.err (!%p6179_p0)
}
0x18a2   : > { %s7976_s5 = sld [smem:[#allocation50_spill]] }
0x18a8   : > { %s6183_s3 = scalar_lea.hbm %s7976_s5, 256 }
0x18a9   : > { %p6184_p12 = scmp.ne.s32.totalorder %s7976_s5, %s6183_s3  ;;  %p6189_p6 = scmp.lt.u32.totalorder %s6183_s3, %s7976_s5 }
0x18ab   : > { %p6185_p1 = pnand %p6184_p12, %p5625_p7 }
0x18ad   : > { %p6186_p11 = pneg %p6185_p1 }
0x18af   : > { %p6191_p2 = pnand %p6189_p6, %p6186_p11 }
0x18b1   : > { %6194 = shalt.err (!%p6191_p2)
}
0x18b2   : > { %s6291_s23 = smov 128   ;;  %s6292_s2 = smov 8  }
0x18b3   : > { %5596 = dma.vmem_to_hbm [thread:$0]  (%p5625_p7), %s4898_s4, 256, %s7976_s5, [#allocation6], %s6291_s23, %s6291_s23, %s6292_s2  }
0x18b4   : > { %6232 = dma.done.wait (%p5625_p7), [#allocation6], 256  }
0x18b5   : > { %6234 = vsyncadd (%p5625_p7), [#allocation6], 4294967040 }
0x18b6 PF: > { %s7977_s0 = sld [smem:[#allocation26_spill]]  ;;  %s7978_s18 = sld [smem:[#allocation25_spill]] }
0x18b7   : > { %s7979_s4 = sld [smem:[#allocation27_spill]]  ;;  %s7980_s29 = smov %s6241_s30 }
0x18bc   : > { %p48_p13 = scmp.ge.s32.totalorder %s7977_s0, 4   ;;  %s7981_s30 = smov %s7978_s18 }
0x18be   :  { %50 = sbr.rel (!%p48_p13) target bundleno = 28 (0x1c), region = 260 }
0x18c5   :  { %4916 = vsyncpa [#allocation5], 1 }
0x18c6   :  { %4918 = vsyncpa [#allocation5 + $0x1], 1 }
0x18c7   :  { %4919 = vsyncpa [#allocation8], 1 }
0x18c8   :  { %4921 = vsyncpa [#allocation8 + $0x1], 1 }
0x18c9   :  { %4922 = vsyncpa [#allocation11], 1 }
0x18ca   :  { %4924 = vsyncpa [#allocation11 + $0x1], 1 }
0x18cb   :  { %4925 = vsyncpa [#allocation14], 1 }
0x18cc   :  { %4927 = vsyncpa [#allocation14 + $0x1], 1 }
0x18cd   :  { %4928 = vsyncpa [#allocation17], 1 }
0x18ce   :  { %4930 = vsyncpa [#allocation17 + $0x1], 1 }
0x18cf   :  { %4931 = vsyncpa [#allocation6], 1 }
0x18d0   :  { %4933 = vsyncpa [#allocation6 + $0x1], 1 }

</bundles_post_ra>
